<compile_context>
chip_gen: v7x
topology: tpu7x:2x2x1
jax: 0.10.0
libtpu: 0.0.40
codegen_flags: <defaults>
</compile_context>

<pallas_src>
import functools

import jax
import jax.numpy as jnp
from jax import lax
from jax.experimental import pallas as pl
from jax.experimental.pallas import tpu as pltpu


def _round_up(v, m):
    return ((v + m - 1) // m) * m


# ---------------------------------------------------------------------------
# Parameter packing: PyTorch gate-stacked (3H, in) weights are transposed and
# zero-padded so each gate occupies its own 128-lane-aligned H_pad stripe.
# ---------------------------------------------------------------------------
def _pack_gates_w(w, H, H_pad, in_pad):
    """w: (3H, in_dim) -> (in_pad, 3*H_pad), transposed, gate-striped."""
    in_dim = w.shape[1]
    w3 = w.reshape(3, H, in_dim)
    w3 = jnp.pad(w3, ((0, 0), (0, H_pad - H), (0, in_pad - in_dim)))
    return jnp.transpose(w3, (2, 0, 1)).reshape(in_pad, 3 * H_pad)


def _pack_gates_b(b, H, H_pad):
    """b: (3H,) -> (1, 3*H_pad), gate-striped."""
    return jnp.pad(b.reshape(3, H), ((0, 0), (0, H_pad - H))).reshape(1, 3 * H_pad)


def _fold_biases(b_ih, b_hh, H, H_pad):
    """Fold b_hh's r/z stripes into the chunk-wide input-gate bias.

    Returns (b_fold (1, 3H_pad), b_hn (1, H_pad)):
      b_fold = [b_ir + b_hr | b_iz + b_hz | b_in]   (added once per chunk)
      b_hn   = b_hn stripe of b_hh                  (must stay inside r * (...))
    """
    bi = _pack_gates_b(b_ih, H, H_pad).astype(jnp.float32)
    bh = _pack_gates_b(b_hh, H, H_pad).astype(jnp.float32)
    Hp = H_pad
    b_fold = jnp.concatenate([bi[:, :2 * Hp] + bh[:, :2 * Hp], bi[:, 2 * Hp:]],
                             axis=1)
    return b_fold, bh[:, 2 * Hp:]


# ---------------------------------------------------------------------------
# Tile-size heuristics (review items: Bc multiple of 16, fill MXU rows when
# batch allows, keep >= 2 batch chunks for megacore, bound big scratch).
# ---------------------------------------------------------------------------
def _pick_b_chunk(batch):
    bp = _round_up(batch, 16)
    bc = min(bp, 256)                       # up to one MXU row tile (v6e/v7x)
    if bp // bc < 2 and bp >= 32:           # keep 2 chunks for megacore
        bc = _round_up(bp // 2, 16)
    return bc


def _pick_t_chunk(T, b_chunk, max_hp, budget_bytes=12 << 20):
    # Per-(t,b) scratch: gi (f32, 3Hp) + bf16 h staging (Hp).
    per_step = b_chunk * (3 * max_hp * 4 + max_hp * 2)
    return max(1, min(32, T, budget_bytes // max(per_step, 1)))


def _vmem_limit_bytes(t_chunk, b_chunk, Ip, Hp, out_w, readout,
                      single_buffer_weights):
    """Generation-aware scoped-VMEM limit from the actual tile footprint."""
    wmul = 1 if single_buffer_weights else 2
    weights = wmul * ((Ip + Hp) * 3 * Hp * 2 + (3 * Hp + Hp) * 4)
    if readout:
        weights += wmul * (Hp * out_w * 2 + out_w * 4)
    io = (2 * t_chunk * b_chunk * (Ip + out_w) * 2   # x + out blocks (bf16, 2x)
          + 2 * b_chunk * Hp * 4)                    # h0 block (f32, 2x)
    scratch = (b_chunk * Hp * 4                       # h carry
               + t_chunk * b_chunk * 3 * Hp * 4       # chunk input gates
               + (t_chunk * b_chunk * Hp * 2 if readout else 0))
    est = weights + io + scratch
    try:
        cap = pltpu.get_tpu_info().vmem_capacity_bytes
    except Exception:
        cap = 64 * 1024 * 1024                        # conservative (v7x per-TC)
    budget = cap * 3 // 4                             # headroom for compiler scratch
    return int(max(16 * 1024 * 1024, min(budget, est * 2 + (4 << 20))))


# ---------------------------------------------------------------------------
# GRU layer kernel (optionally with the final Linear fused into the epilogue).
# Gate order [r, z, n] (PyTorch):
#   r = sigmoid(x W_ir + b_ir + h W_hr + b_hr)
#   z = sigmoid(x W_iz + b_iz + h W_hz + b_hz)
#   n = tanh   (x W_in + b_in + r * (h W_hn + b_hn))
#   h' = (1 - z) * n + z * h  ==  n + z * (h - n)
# ---------------------------------------------------------------------------
def _gru_chunk_kernel(h0_ref, x_ref, wih_ref, bfold_ref, whh_ref, bhn_ref,
                      *rest, readout, unroll):
    if readout:
        wout_ref, bout_ref, out_ref, h_scr, gi_scr, hbuf = rest
    else:
        out_ref, h_scr, gi_scr = rest
        hbuf = None

    Tc, Bc, Ip = x_ref.shape
    Hp = whh_ref.shape[0]

    # Hidden-state carry lives in VMEM scratch across the serial time-chunk
    # axis; re-initialize it at the first time chunk of every batch chunk.
    @pl.when(pl.program_id(1) == 0)
    def _():
        h_scr[...] = h0_ref[...]

    # Hoisted chunk-wide input projection: one (Tc*Bc, Ip) x (Ip, 3Hp) bf16 MXU
    # GEMM per chunk.  No f32 round-trip on the x slab (bf16 reshaped directly;
    # Bc % 16 == 0 and Ip % 128 == 0 make the merge a free relayout).  The
    # r/z stripes of b_hh are already folded into bfold, so the serial loop
    # carries no chunk-wide bias adds at all.
    xm = x_ref[...].reshape(Tc * Bc, Ip)
    gi_scr[...] = jnp.dot(xm, wih_ref[...],
                          preferred_element_type=jnp.float32) + bfold_ref[...]

    whh = whh_ref[...]                                # (Hp, 3Hp) bf16, hoisted
    # Pre-broadcast b_hn once (JAX does not CSE broadcasts in unrolled loops).
    bhn = jnp.broadcast_to(bhn_ref[...], (Bc, Hp))    # (Bc, Hp) f32, hoisted

    def step(i, h):
        off = pl.multiple_of(i * Bc, Bc)              # aligned sublane offset
        gi_t = gi_scr[pl.ds(off, Bc), :]              # (Bc, 3Hp) f32, no reshape
        gh = jnp.dot(h.astype(jnp.bfloat16), whh,
                     preferred_element_type=jnp.float32)
        r = jax.nn.sigmoid(gi_t[:, :Hp] + gh[:, :Hp])
        z = jax.nn.sigmoid(gi_t[:, Hp:2 * Hp] + gh[:, Hp:2 * Hp])
        n = jnp.tanh(gi_t[:, 2 * Hp:] + r * (gh[:, 2 * Hp:] + bhn))
        h_new = n + z * (h - n)                       # == (1-z)*n + z*h
        if readout:
            hbuf[pl.ds(off, Bc), :] = h_new.astype(jnp.bfloat16)
        else:
            out_ref[i] = h_new.astype(out_ref.dtype)
        return h_new

    h_last = lax.fori_loop(0, Tc, step, h_scr[...], unroll=unroll)
    h_scr[...] = h_last

    if readout:
        # Fused final Linear: one (Tc*Bc, Hp) x (Hp, O) GEMM per chunk from the
        # bf16 staging buffer; output stored bf16 (halves writeback bytes).
        y = jnp.dot(hbuf[...], wout_ref[...],
                    preferred_element_type=jnp.float32) + bout_ref[...]
        out_ref[...] = y.reshape(Tc, Bc, -1).astype(out_ref.dtype)


def gru_layer(x_tbi, h0, wih_t, b_fold, whh_t, b_hn, *, t_chunk, b_chunk,
              wout_t=None, bout=None, single_buffer_weights=False):
    """One GRU layer over a padded, time-major sequence.

    x_tbi : (T_pad, B_pad, I_pad) bf16   (zero-padded)
    h0    : (B_pad, H_pad) f32
    wih_t : (I_pad, 3*H_pad) bf16, whh_t: (H_pad, 3*H_pad) bf16 (gate-striped)
    b_fold: (1, 3*H_pad) f32 (b_ih with b_hh r/z folded in), b_hn: (1, H_pad) f32
    wout_t/bout: optional fused readout weights (H_pad, O_pad) bf16 / (1, O_pad)
    returns (T_pad, B_pad, H_pad) bf16, or (T_pad, B_pad, O_pad) bf16 if fused.
    """
    Tp, Bp, Ip = x_tbi.shape
    Hp = whh_t.shape[0]
    readout = wout_t is not None
    grid = (Bp // b_chunk, Tp // t_chunk)

    # Constant-index blocks are fetched once by the pipeline; on v7x with large
    # H, single-buffering them (pl.Buffered(1)) halves their resident VMEM.
    def const_spec(shape):
        idx = lambda b, t: (0,) * len(shape)
        if single_buffer_weights:
            return pl.BlockSpec(shape, idx, pipeline_mode=pl.Buffered(1))
        return pl.BlockSpec(shape, idx)

    in_specs = [
        pl.BlockSpec((b_chunk, Hp), lambda b, t: (b, 0)),              # h0
        pl.BlockSpec((t_chunk, b_chunk, Ip), lambda b, t: (t, b, 0)),  # x chunk
        const_spec((Ip, 3 * Hp)),                                      # W_ih^T
        const_spec((1, 3 * Hp)),                                       # b_fold
        const_spec((Hp, 3 * Hp)),                                      # W_hh^T
        const_spec((1, Hp)),                                           # b_hn
    ]
    args = [h0, x_tbi, wih_t, b_fold, whh_t, b_hn]
    scratch = [
        pltpu.VMEM((b_chunk, Hp), jnp.float32),                 # h carry
        pltpu.VMEM((t_chunk * b_chunk, 3 * Hp), jnp.float32),   # chunk input gates
    ]

    if readout:
        Op = wout_t.shape[1]
        in_specs += [const_spec((Hp, Op)), const_spec((1, Op))]
        args += [wout_t, bout]
        scratch += [pltpu.VMEM((t_chunk * b_chunk, Hp), jnp.bfloat16)]  # h staging
        out_w = Op
    else:
        out_w = Hp

    out_shape = jax.ShapeDtypeStruct((Tp, Bp, out_w), jnp.bfloat16)
    out_spec = pl.BlockSpec((t_chunk, b_chunk, out_w), lambda b, t: (t, b, 0))

    # Full unroll at small batch tiles (LLO visibility); partial unroll at large
    # Bc to keep vreg pressure / spills in check.
    if b_chunk <= 64:
        unroll = True
    else:
        unroll = 4 if t_chunk % 4 == 0 else (2 if t_chunk % 2 == 0 else 1)

    return pl.pallas_call(
        functools.partial(_gru_chunk_kernel, readout=readout, unroll=unroll),
        out_shape=out_shape,
        grid_spec=pltpu.PrefetchScalarGridSpec(
            num_scalar_prefetch=0,
            grid=grid,
            in_specs=in_specs,
            out_specs=out_spec,
            scratch_shapes=scratch,
        ),
        compiler_params=pltpu.CompilerParams(
            # batch chunks are independent (megacore); time carries state.
            dimension_semantics=("parallel", "arbitrary"),
            vmem_limit_bytes=_vmem_limit_bytes(
                t_chunk, b_chunk, Ip, Hp, out_w, readout, single_buffer_weights),
        ),
    )(*args)


# ---------------------------------------------------------------------------
# MultiLayerRNN parameters + forward
# ---------------------------------------------------------------------------
def init_multilayer_rnn(key, input_size, output_size, hidden_size, num_layers):
    """Deterministic init mirroring PyTorch's U(-1/sqrt(H), 1/sqrt(H)) scheme."""
    params = {"grus": [], "fc": None}
    in_sz = input_size
    for gru_idx, H in enumerate(hidden_size):
        layers = []
        layer_in = in_sz
        for _ in range(num_layers[gru_idx]):
            k = 1.0 / jnp.sqrt(H)
            key, k1, k2, k3, k4 = jax.random.split(key, 5)
            layers.append({
                "w_ih": jax.random.uniform(k1, (3 * H, layer_in), jnp.float32, -k, k),
                "w_hh": jax.random.uniform(k2, (3 * H, H), jnp.float32, -k, k),
                "b_ih": jax.random.uniform(k3, (3 * H,), jnp.float32, -k, k),
                "b_hh": jax.random.uniform(k4, (3 * H,), jnp.float32, -k, k),
            })
            layer_in = H
        params["grus"].append(layers)
        in_sz = H
    H_last = hidden_size[-1]
    kf = 1.0 / jnp.sqrt(H_last)
    key, k1, k2 = jax.random.split(key, 3)
    params["fc"] = {
        "w": jax.random.uniform(k1, (output_size, H_last), jnp.float32, -kf, kf),
        "b": jax.random.uniform(k2, (output_size,), jnp.float32, -kf, kf),
    }
    return params


def multilayer_rnn_forward(params, initial_state, x, *, t_chunk=None,
                           b_chunk=None, single_buffer_weights=False):
    """x: (B, T, input_size) -> (B, T, output_size) (batch_first, like PyTorch)."""
    B, T, in_size = x.shape
    if b_chunk is None:
        b_chunk = _pick_b_chunk(B)
    assert b_chunk % 16 == 0, "b_chunk must be a multiple of 16 (bf16 sublanes)"
    B_pad = _round_up(B, b_chunk)

    max_H = max(p["w_hh"].shape[1] for layers in params["grus"] for p in layers)
    if t_chunk is None:
        t_chunk = _pick_t_chunk(T, b_chunk, _round_up(max_H, 128))
    T_pad = _round_up(T, t_chunk)

    out_size = params["fc"]["w"].shape[0]
    O_pad = _round_up(out_size, 128)

    # Time-major, zero-padded, bf16 activations.
    h = jnp.transpose(x, (1, 0, 2)).astype(jnp.float32)        # (T, B, I)
    h = jnp.pad(h, ((0, T_pad - T), (0, B_pad - B),
                    (0, _round_up(in_size, 128) - in_size))).astype(jnp.bfloat16)

    n_stacks = len(params["grus"])
    for si, layers in enumerate(params["grus"]):
        for li, p in enumerate(layers):
            H = p["w_hh"].shape[1]
            Hp = _round_up(H, 128)
            in_pad = h.shape[2]
            wih_t = _pack_gates_w(p["w_ih"], H, Hp, in_pad).astype(jnp.bfloat16)
            whh_t = _pack_gates_w(p["w_hh"], H, Hp, Hp).astype(jnp.bfloat16)
            b_fold, b_hn = _fold_biases(p["b_ih"], p["b_hh"], H, Hp)
            h0 = jnp.pad(initial_state[si][li].astype(jnp.float32),
                         ((0, B_pad - B), (0, Hp - H)))
            is_last = (si == n_stacks - 1) and (li == len(layers) - 1)
            kw = dict(t_chunk=t_chunk, b_chunk=b_chunk,
                      single_buffer_weights=single_buffer_weights)
            if is_last:
                wout_t = jnp.pad(jnp.transpose(params["fc"]["w"]),
                                 ((0, Hp - H), (0, O_pad - out_size))
                                 ).astype(jnp.bfloat16)
                bout = jnp.pad(params["fc"]["b"], (0, O_pad - out_size)
                               ).reshape(1, O_pad).astype(jnp.float32)
                h = gru_layer(h, h0, wih_t, b_fold, whh_t, b_hn,
                              wout_t=wout_t, bout=bout, **kw)
            else:
                h = gru_layer(h, h0, wih_t, b_fold, whh_t, b_hn, **kw)

    # (T_pad, B_pad, O_pad) bf16 -> (B, T, O) f32, single upcast outside kernels.
    out = h[:T, :B, :out_size].astype(jnp.float32)
    return jnp.transpose(out, (1, 0, 2))


# ---------------------------------------------------------------------------
# Pure-JAX f32 reference (PyTorch GRU semantics) for a correctness check.
# ---------------------------------------------------------------------------
def _reference_forward(params, initial_state, x):
    B, T, _ = x.shape
    h_seq = x.astype(jnp.float32)
    for si, layers in enumerate(params["grus"]):
        for li, p in enumerate(layers):
            H = p["w_hh"].shape[1]
            h = initial_state[si][li].astype(jnp.float32)
            outs = []
            for t in range(T):
                xt = h_seq[:, t, :]
                gi = xt @ p["w_ih"].T + p["b_ih"]
                gh = h @ p["w_hh"].T + p["b_hh"]
                r = jax.nn.sigmoid(gi[:, :H] + gh[:, :H])
                z = jax.nn.sigmoid(gi[:, H:2 * H] + gh[:, H:2 * H])
                n = jnp.tanh(gi[:, 2 * H:] + r * gh[:, 2 * H:])
                h = (1.0 - z) * n + z * h
                outs.append(h)
            h_seq = jnp.stack(outs, axis=1)
    return h_seq @ params["fc"]["w"].T + params["fc"]["b"]


if __name__ == "__main__":
    # Small config consistent with the module's constructor.
    B, T = 2, 8
    input_size = 16
    hidden_size = [32, 32]
    num_layers = [1, 1]
    output_size = 8

    key = jax.random.PRNGKey(0)
    key, kx, kh0, kh1 = jax.random.split(key, 4)

    params = init_multilayer_rnn(key, input_size, output_size,
                                 hidden_size, num_layers)
    initial_state = [
        jax.random.normal(kh0, (num_layers[0], B, hidden_size[0]), jnp.float32),
        jax.random.normal(kh1, (num_layers[1], B, hidden_size[1]), jnp.float32),
    ]
    x = jax.random.normal(kx, (B, T, input_size), jnp.float32)

    fwd = jax.jit(functools.partial(multilayer_rnn_forward, params, initial_state))
    out = fwd(x)
    jax.block_until_ready(out)

    assert out.shape == (B, T, output_size), out.shape
    assert out.dtype == jnp.float32

    ref = _reference_forward(params, initial_state, x)
    max_err = float(jnp.max(jnp.abs(out - ref)))
    assert max_err < 5e-2, f"max abs error vs f32 reference: {max_err}"

    print("KERNEL_OK")
</pallas_src>

<mosaic_0001>
module attributes {stable_mosaic.version = 11 : i64} {
  func.func @_gru_chunk_kernel(%arg0: i32, %arg1: i32, %arg2: memref<16x128xf32, #tpu.memory_space<vmem>>, %arg3: memref<8x16x128xbf16, #tpu.memory_space<vmem>>, %arg4: memref<128x384xbf16, #tpu.memory_space<vmem>>, %arg5: memref<1x384xf32, #tpu.memory_space<vmem>>, %arg6: memref<128x384xbf16, #tpu.memory_space<vmem>>, %arg7: memref<1x128xf32, #tpu.memory_space<vmem>>, %arg8: memref<8x16x128xbf16, #tpu.memory_space<vmem>>, %arg9: memref<16x128xf32, #tpu.memory_space<vmem>>, %arg10: memref<128x384xf32, #tpu.memory_space<vmem>>) attributes {dimension_semantics = [#tpu.dimension_semantics<parallel>, #tpu.dimension_semantics<arbitrary>], iteration_bounds = array<i64: 1, 1>, scalar_prefetch = 0 : i64, scratch_operands = 2 : i64, tpu.core_type = #tpu.core_type<tc>, window_params = [{transform_indices = @transform_0, window_bounds = array<i64: 16, 128>}, {transform_indices = @transform_1, window_bounds = array<i64: 8, 16, 128>}, {pipeline_mode = #tpu.pipeline_mode<synchronous>, transform_indices = @transform_2, window_bounds = array<i64: 128, 384>}, {pipeline_mode = #tpu.pipeline_mode<synchronous>, transform_indices = @transform_3, window_bounds = array<i64: 1, 384>}, {pipeline_mode = #tpu.pipeline_mode<synchronous>, transform_indices = @transform_4, window_bounds = array<i64: 128, 384>}, {pipeline_mode = #tpu.pipeline_mode<synchronous>, transform_indices = @transform_5, window_bounds = array<i64: 1, 128>}, {transform_indices = @transform_6, window_bounds = array<i64: 8, 16, 128>}]} {
    %c0_i32 = arith.constant 0 : i32
    %0 = arith.cmpi eq, %arg1, %c0_i32 : i32
    %1 = arith.extui %0 : i1 to i32
    %c0_i32_0 = arith.constant 0 : i32
    %2 = arith.cmpi ne, %1, %c0_i32_0 : i32
    scf.if %2 {
      %c0_73 = arith.constant 0 : index
      %c0_74 = arith.constant 0 : index
      %305 = vector.load %arg2[%c0_73, %c0_74] : memref<16x128xf32, #tpu.memory_space<vmem>>, vector<16x128xf32>
      %c0_75 = arith.constant 0 : index
      %c0_76 = arith.constant 0 : index
      %306 = vector.load %arg9[%c0_75, %c0_76] : memref<16x128xf32, #tpu.memory_space<vmem>>, vector<16x128xf32>
      tpu.vector_store %arg9[%c0_75, %c0_76], %305 {strides = array<i32>} : memref<16x128xf32, #tpu.memory_space<vmem>>, vector<16x128xf32>,
    } else {
    }
    %c0 = arith.constant 0 : index
    %c0_1 = arith.constant 0 : index
    %c0_2 = arith.constant 0 : index
    %3 = vector.load %arg3[%c0, %c0_1, %c0_2] : memref<8x16x128xbf16, #tpu.memory_space<vmem>>, vector<8x16x128xbf16>
    %4 = vector.shape_cast %3 : vector<8x16x128xbf16> to vector<128x128xbf16>
    %c0_3 = arith.constant 0 : index
    %c0_4 = arith.constant 0 : index
    %5 = vector.load %arg4[%c0_3, %c0_4] : memref<128x384xbf16, #tpu.memory_space<vmem>>, vector<128x384xbf16>
    %cst = arith.constant dense<0.000000e+00> : vector<128x384xf32>
    %6 = tpu.matmul %4, %5, %cst {dimension_numbers = #tpu.dot_dimension_numbers<[1], [0], [0], [1], [0, 0, 1, 1], [], []>} : vector<128x128xbf16>, vector<128x384xbf16>, vector<128x384xf32> -> vector<128x384xf32>
    %c0_5 = arith.constant 0 : index
    %c0_6 = arith.constant 0 : index
    %7 = vector.load %arg5[%c0_5, %c0_6] : memref<1x384xf32, #tpu.memory_space<vmem>>, vector<1x384xf32>
    %8 = vector.broadcast %7 : vector<1x384xf32> to vector<128x384xf32>
    %9 = arith.addf %6, %8 : vector<128x384xf32>
    %c0_7 = arith.constant 0 : index
    %c0_8 = arith.constant 0 : index
    %10 = vector.load %arg10[%c0_7, %c0_8] : memref<128x384xf32, #tpu.memory_space<vmem>>, vector<128x384xf32>
    tpu.vector_store %arg10[%c0_7, %c0_8], %9 {strides = array<i32>} : memref<128x384xf32, #tpu.memory_space<vmem>>, vector<128x384xf32>,
    %c0_9 = arith.constant 0 : index
    %c0_10 = arith.constant 0 : index
    %11 = vector.load %arg6[%c0_9, %c0_10] : memref<128x384xbf16, #tpu.memory_space<vmem>>, vector<128x384xbf16>
    %c0_11 = arith.constant 0 : index
    %c0_12 = arith.constant 0 : index
    %12 = vector.load %arg7[%c0_11, %c0_12] : memref<1x128xf32, #tpu.memory_space<vmem>>, vector<1x128xf32>
    %13 = vector.shape_cast %12 : vector<1x128xf32> to vector<1x128xf32>
    %14 = vector.broadcast %13 : vector<1x128xf32> to vector<16x128xf32>
    %c0_13 = arith.constant 0 : index
    %c0_14 = arith.constant 0 : index
    %15 = vector.load %arg9[%c0_13, %c0_14] : memref<16x128xf32, #tpu.memory_space<vmem>>, vector<16x128xf32>
    %c0_i32_15 = arith.constant 0 : i32
    %c16_i32 = arith.constant 16 : i32
    %16 = arith.muli %c0_i32_15, %c16_i32 : i32
    %17 = tpu.assume_multiple %16, 16 : i32
    %18 = arith.index_cast %17 : i32 to index
    %c0_16 = arith.constant 0 : index
    %19 = vector.load %arg10[%18, %c0_16] : memref<128x384xf32, #tpu.memory_space<vmem>>, vector<16x384xf32>
    %20 = arith.truncf %15 : vector<16x128xf32> to vector<16x128xbf16>
    %cst_17 = arith.constant dense<0.000000e+00> : vector<16x384xf32>
    %21 = tpu.matmul %20, %11, %cst_17 {dimension_numbers = #tpu.dot_dimension_numbers<[1], [0], [0], [1], [0, 0, 1, 1], [], []>} : vector<16x128xbf16>, vector<128x384xbf16>, vector<16x384xf32> -> vector<16x384xf32>
    %22 = vector.extract_strided_slice %19 {offsets = [0, 0], sizes = [16, 128], strides = [1, 1]} : vector<16x384xf32> to vector<16x128xf32>
    %23 = vector.extract_strided_slice %21 {offsets = [0, 0], sizes = [16, 128], strides = [1, 1]} : vector<16x384xf32> to vector<16x128xf32>
    %24 = arith.addf %22, %23 : vector<16x128xf32>
    %25 = arith.negf %24 : vector<16x128xf32>
    %26 = math.exp %25 : vector<16x128xf32>
    %cst_18 = arith.constant 1.000000e+00 : f32
    %27 = vector.broadcast %cst_18 : f32 to vector<16x128xf32>
    %28 = arith.addf %27, %26 : vector<16x128xf32>
    %29 = arith.divf %27, %28 : vector<16x128xf32>
    %30 = vector.extract_strided_slice %19 {offsets = [0, 128], sizes = [16, 128], strides = [1, 1]} : vector<16x384xf32> to vector<16x128xf32>
    %31 = vector.extract_strided_slice %21 {offsets = [0, 128], sizes = [16, 128], strides = [1, 1]} : vector<16x384xf32> to vector<16x128xf32>
    %32 = arith.addf %30, %31 : vector<16x128xf32>
    %33 = arith.negf %32 : vector<16x128xf32>
    %34 = math.exp %33 : vector<16x128xf32>
    %cst_19 = arith.constant 1.000000e+00 : f32
    %35 = vector.broadcast %cst_19 : f32 to vector<16x128xf32>
    %36 = arith.addf %35, %34 : vector<16x128xf32>
    %37 = arith.divf %35, %36 : vector<16x128xf32>
    %38 = vector.extract_strided_slice %19 {offsets = [0, 256], sizes = [16, 128], strides = [1, 1]} : vector<16x384xf32> to vector<16x128xf32>
    %39 = vector.extract_strided_slice %21 {offsets = [0, 256], sizes = [16, 128], strides = [1, 1]} : vector<16x384xf32> to vector<16x128xf32>
    %40 = arith.addf %39, %14 : vector<16x128xf32>
    %41 = arith.mulf %29, %40 : vector<16x128xf32>
    %42 = arith.addf %38, %41 : vector<16x128xf32>
    %43 = math.tanh %42 : vector<16x128xf32>
    %44 = arith.subf %15, %43 : vector<16x128xf32>
    %45 = arith.mulf %37, %44 : vector<16x128xf32>
    %46 = arith.addf %43, %45 : vector<16x128xf32>
    %47 = arith.truncf %46 : vector<16x128xf32> to vector<16x128xbf16>
    %48 = arith.index_cast %c0_i32_15 : i32 to index
    %c0_20 = arith.constant 0 : index
    %c0_21 = arith.constant 0 : index
    %49 = vector.load %arg8[%48, %c0_20, %c0_21] : memref<8x16x128xbf16, #tpu.memory_space<vmem>>, vector<1x16x128xbf16>
    %50 = vector.shape_cast %49 : vector<1x16x128xbf16> to vector<16x128xbf16>
    %51 = vector.shape_cast %47 : vector<16x128xbf16> to vector<1x16x128xbf16>
    tpu.vector_store %arg8[%48, %c0_20, %c0_21], %51 {strides = array<i32>} : memref<8x16x128xbf16, #tpu.memory_space<vmem>>, vector<1x16x128xbf16>,
    %c1_i32 = arith.constant 1 : i32
    %c16_i32_22 = arith.constant 16 : i32
    %52 = arith.muli %c1_i32, %c16_i32_22 : i32
    %53 = tpu.assume_multiple %52, 16 : i32
    %54 = arith.index_cast %53 : i32 to index
    %c0_23 = arith.constant 0 : index
    %55 = vector.load %arg10[%54, %c0_23] : memref<128x384xf32, #tpu.memory_space<vmem>>, vector<16x384xf32>
    %56 = arith.truncf %46 : vector<16x128xf32> to vector<16x128xbf16>
    %cst_24 = arith.constant dense<0.000000e+00> : vector<16x384xf32>
    %57 = tpu.matmul %56, %11, %cst_24 {dimension_numbers = #tpu.dot_dimension_numbers<[1], [0], [0], [1], [0, 0, 1, 1], [], []>} : vector<16x128xbf16>, vector<128x384xbf16>, vector<16x384xf32> -> vector<16x384xf32>
    %58 = vector.extract_strided_slice %55 {offsets = [0, 0], sizes = [16, 128], strides = [1, 1]} : vector<16x384xf32> to vector<16x128xf32>
    %59 = vector.extract_strided_slice %57 {offsets = [0, 0], sizes = [16, 128], strides = [1, 1]} : vector<16x384xf32> to vector<16x128xf32>
    %60 = arith.addf %58, %59 : vector<16x128xf32>
    %61 = arith.negf %60 : vector<16x128xf32>
    %62 = math.exp %61 : vector<16x128xf32>
    %cst_25 = arith.constant 1.000000e+00 : f32
    %63 = vector.broadcast %cst_25 : f32 to vector<16x128xf32>
    %64 = arith.addf %63, %62 : vector<16x128xf32>
    %65 = arith.divf %63, %64 : vector<16x128xf32>
    %66 = vector.extract_strided_slice %55 {offsets = [0, 128], sizes = [16, 128], strides = [1, 1]} : vector<16x384xf32> to vector<16x128xf32>
    %67 = vector.extract_strided_slice %57 {offsets = [0, 128], sizes = [16, 128], strides = [1, 1]} : vector<16x384xf32> to vector<16x128xf32>
    %68 = arith.addf %66, %67 : vector<16x128xf32>
    %69 = arith.negf %68 : vector<16x128xf32>
    %70 = math.exp %69 : vector<16x128xf32>
    %cst_26 = arith.constant 1.000000e+00 : f32
    %71 = vector.broadcast %cst_26 : f32 to vector<16x128xf32>
    %72 = arith.addf %71, %70 : vector<16x128xf32>
    %73 = arith.divf %71, %72 : vector<16x128xf32>
    %74 = vector.extract_strided_slice %55 {offsets = [0, 256], sizes = [16, 128], strides = [1, 1]} : vector<16x384xf32> to vector<16x128xf32>
    %75 = vector.extract_strided_slice %57 {offsets = [0, 256], sizes = [16, 128], strides = [1, 1]} : vector<16x384xf32> to vector<16x128xf32>
    %76 = arith.addf %75, %14 : vector<16x128xf32>
    %77 = arith.mulf %65, %76 : vector<16x128xf32>
    %78 = arith.addf %74, %77 : vector<16x128xf32>
    %79 = math.tanh %78 : vector<16x128xf32>
    %80 = arith.subf %46, %79 : vector<16x128xf32>
    %81 = arith.mulf %73, %80 : vector<16x128xf32>
    %82 = arith.addf %79, %81 : vector<16x128xf32>
    %83 = arith.truncf %82 : vector<16x128xf32> to vector<16x128xbf16>
    %84 = arith.index_cast %c1_i32 : i32 to index
    %c0_27 = arith.constant 0 : index
    %c0_28 = arith.constant 0 : index
    %85 = vector.load %arg8[%84, %c0_27, %c0_28] : memref<8x16x128xbf16, #tpu.memory_space<vmem>>, vector<1x16x128xbf16>
    %86 = vector.shape_cast %85 : vector<1x16x128xbf16> to vector<16x128xbf16>
    %87 = vector.shape_cast %83 : vector<16x128xbf16> to vector<1x16x128xbf16>
    tpu.vector_store %arg8[%84, %c0_27, %c0_28], %87 {strides = array<i32>} : memref<8x16x128xbf16, #tpu.memory_space<vmem>>, vector<1x16x128xbf16>,
    %c2_i32 = arith.constant 2 : i32
    %c16_i32_29 = arith.constant 16 : i32
    %88 = arith.muli %c2_i32, %c16_i32_29 : i32
    %89 = tpu.assume_multiple %88, 16 : i32
    %90 = arith.index_cast %89 : i32 to index
    %c0_30 = arith.constant 0 : index
    %91 = vector.load %arg10[%90, %c0_30] : memref<128x384xf32, #tpu.memory_space<vmem>>, vector<16x384xf32>
    %92 = arith.truncf %82 : vector<16x128xf32> to vector<16x128xbf16>
    %cst_31 = arith.constant dense<0.000000e+00> : vector<16x384xf32>
    %93 = tpu.matmul %92, %11, %cst_31 {dimension_numbers = #tpu.dot_dimension_numbers<[1], [0], [0], [1], [0, 0, 1, 1], [], []>} : vector<16x128xbf16>, vector<128x384xbf16>, vector<16x384xf32> -> vector<16x384xf32>
    %94 = vector.extract_strided_slice %91 {offsets = [0, 0], sizes = [16, 128], strides = [1, 1]} : vector<16x384xf32> to vector<16x128xf32>
    %95 = vector.extract_strided_slice %93 {offsets = [0, 0], sizes = [16, 128], strides = [1, 1]} : vector<16x384xf32> to vector<16x128xf32>
    %96 = arith.addf %94, %95 : vector<16x128xf32>
    %97 = arith.negf %96 : vector<16x128xf32>
    %98 = math.exp %97 : vector<16x128xf32>
    %cst_32 = arith.constant 1.000000e+00 : f32
    %99 = vector.broadcast %cst_32 : f32 to vector<16x128xf32>
    %100 = arith.addf %99, %98 : vector<16x128xf32>
    %101 = arith.divf %99, %100 : vector<16x128xf32>
    %102 = vector.extract_strided_slice %91 {offsets = [0, 128], sizes = [16, 128], strides = [1, 1]} : vector<16x384xf32> to vector<16x128xf32>
    %103 = vector.extract_strided_slice %93 {offsets = [0, 128], sizes = [16, 128], strides = [1, 1]} : vector<16x384xf32> to vector<16x128xf32>
    %104 = arith.addf %102, %103 : vector<16x128xf32>
    %105 = arith.negf %104 : vector<16x128xf32>
    %106 = math.exp %105 : vector<16x128xf32>
    %cst_33 = arith.constant 1.000000e+00 : f32
    %107 = vector.broadcast %cst_33 : f32 to vector<16x128xf32>
    %108 = arith.addf %107, %106 : vector<16x128xf32>
    %109 = arith.divf %107, %108 : vector<16x128xf32>
    %110 = vector.extract_strided_slice %91 {offsets = [0, 256], sizes = [16, 128], strides = [1, 1]} : vector<16x384xf32> to vector<16x128xf32>
    %111 = vector.extract_strided_slice %93 {offsets = [0, 256], sizes = [16, 128], strides = [1, 1]} : vector<16x384xf32> to vector<16x128xf32>
    %112 = arith.addf %111, %14 : vector<16x128xf32>
    %113 = arith.mulf %101, %112 : vector<16x128xf32>
    %114 = arith.addf %110, %113 : vector<16x128xf32>
    %115 = math.tanh %114 : vector<16x128xf32>
    %116 = arith.subf %82, %115 : vector<16x128xf32>
    %117 = arith.mulf %109, %116 : vector<16x128xf32>
    %118 = arith.addf %115, %117 : vector<16x128xf32>
    %119 = arith.truncf %118 : vector<16x128xf32> to vector<16x128xbf16>
    %120 = arith.index_cast %c2_i32 : i32 to index
    %c0_34 = arith.constant 0 : index
    %c0_35 = arith.constant 0 : index
    %121 = vector.load %arg8[%120, %c0_34, %c0_35] : memref<8x16x128xbf16, #tpu.memory_space<vmem>>, vector<1x16x128xbf16>
    %122 = vector.shape_cast %121 : vector<1x16x128xbf16> to vector<16x128xbf16>
    %123 = vector.shape_cast %119 : vector<16x128xbf16> to vector<1x16x128xbf16>
    tpu.vector_store %arg8[%120, %c0_34, %c0_35], %123 {strides = array<i32>} : memref<8x16x128xbf16, #tpu.memory_space<vmem>>, vector<1x16x128xbf16>,
    %c3_i32 = arith.constant 3 : i32
    %c16_i32_36 = arith.constant 16 : i32
    %124 = arith.muli %c3_i32, %c16_i32_36 : i32
    %125 = tpu.assume_multiple %124, 16 : i32
    %126 = arith.index_cast %125 : i32 to index
    %c0_37 = arith.constant 0 : index
    %127 = vector.load %arg10[%126, %c0_37] : memref<128x384xf32, #tpu.memory_space<vmem>>, vector<16x384xf32>
    %128 = arith.truncf %118 : vector<16x128xf32> to vector<16x128xbf16>
    %cst_38 = arith.constant dense<0.000000e+00> : vector<16x384xf32>
    %129 = tpu.matmul %128, %11, %cst_38 {dimension_numbers = #tpu.dot_dimension_numbers<[1], [0], [0], [1], [0, 0, 1, 1], [], []>} : vector<16x128xbf16>, vector<128x384xbf16>, vector<16x384xf32> -> vector<16x384xf32>
    %130 = vector.extract_strided_slice %127 {offsets = [0, 0], sizes = [16, 128], strides = [1, 1]} : vector<16x384xf32> to vector<16x128xf32>
    %131 = vector.extract_strided_slice %129 {offsets = [0, 0], sizes = [16, 128], strides = [1, 1]} : vector<16x384xf32> to vector<16x128xf32>
    %132 = arith.addf %130, %131 : vector<16x128xf32>
    %133 = arith.negf %132 : vector<16x128xf32>
    %134 = math.exp %133 : vector<16x128xf32>
    %cst_39 = arith.constant 1.000000e+00 : f32
    %135 = vector.broadcast %cst_39 : f32 to vector<16x128xf32>
    %136 = arith.addf %135, %134 : vector<16x128xf32>
    %137 = arith.divf %135, %136 : vector<16x128xf32>
    %138 = vector.extract_strided_slice %127 {offsets = [0, 128], sizes = [16, 128], strides = [1, 1]} : vector<16x384xf32> to vector<16x128xf32>
    %139 = vector.extract_strided_slice %129 {offsets = [0, 128], sizes = [16, 128], strides = [1, 1]} : vector<16x384xf32> to vector<16x128xf32>
    %140 = arith.addf %138, %139 : vector<16x128xf32>
    %141 = arith.negf %140 : vector<16x128xf32>
    %142 = math.exp %141 : vector<16x128xf32>
    %cst_40 = arith.constant 1.000000e+00 : f32
    %143 = vector.broadcast %cst_40 : f32 to vector<16x128xf32>
    %144 = arith.addf %143, %142 : vector<16x128xf32>
    %145 = arith.divf %143, %144 : vector<16x128xf32>
    %146 = vector.extract_strided_slice %127 {offsets = [0, 256], sizes = [16, 128], strides = [1, 1]} : vector<16x384xf32> to vector<16x128xf32>
    %147 = vector.extract_strided_slice %129 {offsets = [0, 256], sizes = [16, 128], strides = [1, 1]} : vector<16x384xf32> to vector<16x128xf32>
    %148 = arith.addf %147, %14 : vector<16x128xf32>
    %149 = arith.mulf %137, %148 : vector<16x128xf32>
    %150 = arith.addf %146, %149 : vector<16x128xf32>
    %151 = math.tanh %150 : vector<16x128xf32>
    %152 = arith.subf %118, %151 : vector<16x128xf32>
    %153 = arith.mulf %145, %152 : vector<16x128xf32>
    %154 = arith.addf %151, %153 : vector<16x128xf32>
    %155 = arith.truncf %154 : vector<16x128xf32> to vector<16x128xbf16>
    %156 = arith.index_cast %c3_i32 : i32 to index
    %c0_41 = arith.constant 0 : index
    %c0_42 = arith.constant 0 : index
    %157 = vector.load %arg8[%156, %c0_41, %c0_42] : memref<8x16x128xbf16, #tpu.memory_space<vmem>>, vector<1x16x128xbf16>
    %158 = vector.shape_cast %157 : vector<1x16x128xbf16> to vector<16x128xbf16>
    %159 = vector.shape_cast %155 : vector<16x128xbf16> to vector<1x16x128xbf16>
    tpu.vector_store %arg8[%156, %c0_41, %c0_42], %159 {strides = array<i32>} : memref<8x16x128xbf16, #tpu.memory_space<vmem>>, vector<1x16x128xbf16>,
    %c4_i32 = arith.constant 4 : i32
    %c16_i32_43 = arith.constant 16 : i32
    %160 = arith.muli %c4_i32, %c16_i32_43 : i32
    %161 = tpu.assume_multiple %160, 16 : i32
    %162 = arith.index_cast %161 : i32 to index
    %c0_44 = arith.constant 0 : index
    %163 = vector.load %arg10[%162, %c0_44] : memref<128x384xf32, #tpu.memory_space<vmem>>, vector<16x384xf32>
    %164 = arith.truncf %154 : vector<16x128xf32> to vector<16x128xbf16>
    %cst_45 = arith.constant dense<0.000000e+00> : vector<16x384xf32>
    %165 = tpu.matmul %164, %11, %cst_45 {dimension_numbers = #tpu.dot_dimension_numbers<[1], [0], [0], [1], [0, 0, 1, 1], [], []>} : vector<16x128xbf16>, vector<128x384xbf16>, vector<16x384xf32> -> vector<16x384xf32>
    %166 = vector.extract_strided_slice %163 {offsets = [0, 0], sizes = [16, 128], strides = [1, 1]} : vector<16x384xf32> to vector<16x128xf32>
    %167 = vector.extract_strided_slice %165 {offsets = [0, 0], sizes = [16, 128], strides = [1, 1]} : vector<16x384xf32> to vector<16x128xf32>
    %168 = arith.addf %166, %167 : vector<16x128xf32>
    %169 = arith.negf %168 : vector<16x128xf32>
    %170 = math.exp %169 : vector<16x128xf32>
    %cst_46 = arith.constant 1.000000e+00 : f32
    %171 = vector.broadcast %cst_46 : f32 to vector<16x128xf32>
    %172 = arith.addf %171, %170 : vector<16x128xf32>
    %173 = arith.divf %171, %172 : vector<16x128xf32>
    %174 = vector.extract_strided_slice %163 {offsets = [0, 128], sizes = [16, 128], strides = [1, 1]} : vector<16x384xf32> to vector<16x128xf32>
    %175 = vector.extract_strided_slice %165 {offsets = [0, 128], sizes = [16, 128], strides = [1, 1]} : vector<16x384xf32> to vector<16x128xf32>
    %176 = arith.addf %174, %175 : vector<16x128xf32>
    %177 = arith.negf %176 : vector<16x128xf32>
    %178 = math.exp %177 : vector<16x128xf32>
    %cst_47 = arith.constant 1.000000e+00 : f32
    %179 = vector.broadcast %cst_47 : f32 to vector<16x128xf32>
    %180 = arith.addf %179, %178 : vector<16x128xf32>
    %181 = arith.divf %179, %180 : vector<16x128xf32>
    %182 = vector.extract_strided_slice %163 {offsets = [0, 256], sizes = [16, 128], strides = [1, 1]} : vector<16x384xf32> to vector<16x128xf32>
    %183 = vector.extract_strided_slice %165 {offsets = [0, 256], sizes = [16, 128], strides = [1, 1]} : vector<16x384xf32> to vector<16x128xf32>
    %184 = arith.addf %183, %14 : vector<16x128xf32>
    %185 = arith.mulf %173, %184 : vector<16x128xf32>
    %186 = arith.addf %182, %185 : vector<16x128xf32>
    %187 = math.tanh %186 : vector<16x128xf32>
    %188 = arith.subf %154, %187 : vector<16x128xf32>
    %189 = arith.mulf %181, %188 : vector<16x128xf32>
    %190 = arith.addf %187, %189 : vector<16x128xf32>
    %191 = arith.truncf %190 : vector<16x128xf32> to vector<16x128xbf16>
    %192 = arith.index_cast %c4_i32 : i32 to index
    %c0_48 = arith.constant 0 : index
    %c0_49 = arith.constant 0 : index
    %193 = vector.load %arg8[%192, %c0_48, %c0_49] : memref<8x16x128xbf16, #tpu.memory_space<vmem>>, vector<1x16x128xbf16>
    %194 = vector.shape_cast %193 : vector<1x16x128xbf16> to vector<16x128xbf16>
    %195 = vector.shape_cast %191 : vector<16x128xbf16> to vector<1x16x128xbf16>
    tpu.vector_store %arg8[%192, %c0_48, %c0_49], %195 {strides = array<i32>} : memref<8x16x128xbf16, #tpu.memory_space<vmem>>, vector<1x16x128xbf16>,
    %c5_i32 = arith.constant 5 : i32
    %c16_i32_50 = arith.constant 16 : i32
    %196 = arith.muli %c5_i32, %c16_i32_50 : i32
    %197 = tpu.assume_multiple %196, 16 : i32
    %198 = arith.index_cast %197 : i32 to index
    %c0_51 = arith.constant 0 : index
    %199 = vector.load %arg10[%198, %c0_51] : memref<128x384xf32, #tpu.memory_space<vmem>>, vector<16x384xf32>
    %200 = arith.truncf %190 : vector<16x128xf32> to vector<16x128xbf16>
    %cst_52 = arith.constant dense<0.000000e+00> : vector<16x384xf32>
    %201 = tpu.matmul %200, %11, %cst_52 {dimension_numbers = #tpu.dot_dimension_numbers<[1], [0], [0], [1], [0, 0, 1, 1], [], []>} : vector<16x128xbf16>, vector<128x384xbf16>, vector<16x384xf32> -> vector<16x384xf32>
    %202 = vector.extract_strided_slice %199 {offsets = [0, 0], sizes = [16, 128], strides = [1, 1]} : vector<16x384xf32> to vector<16x128xf32>
    %203 = vector.extract_strided_slice %201 {offsets = [0, 0], sizes = [16, 128], strides = [1, 1]} : vector<16x384xf32> to vector<16x128xf32>
    %204 = arith.addf %202, %203 : vector<16x128xf32>
    %205 = arith.negf %204 : vector<16x128xf32>
    %206 = math.exp %205 : vector<16x128xf32>
    %cst_53 = arith.constant 1.000000e+00 : f32
    %207 = vector.broadcast %cst_53 : f32 to vector<16x128xf32>
    %208 = arith.addf %207, %206 : vector<16x128xf32>
    %209 = arith.divf %207, %208 : vector<16x128xf32>
    %210 = vector.extract_strided_slice %199 {offsets = [0, 128], sizes = [16, 128], strides = [1, 1]} : vector<16x384xf32> to vector<16x128xf32>
    %211 = vector.extract_strided_slice %201 {offsets = [0, 128], sizes = [16, 128], strides = [1, 1]} : vector<16x384xf32> to vector<16x128xf32>
    %212 = arith.addf %210, %211 : vector<16x128xf32>
    %213 = arith.negf %212 : vector<16x128xf32>
    %214 = math.exp %213 : vector<16x128xf32>
    %cst_54 = arith.constant 1.000000e+00 : f32
    %215 = vector.broadcast %cst_54 : f32 to vector<16x128xf32>
    %216 = arith.addf %215, %214 : vector<16x128xf32>
    %217 = arith.divf %215, %216 : vector<16x128xf32>
    %218 = vector.extract_strided_slice %199 {offsets = [0, 256], sizes = [16, 128], strides = [1, 1]} : vector<16x384xf32> to vector<16x128xf32>
    %219 = vector.extract_strided_slice %201 {offsets = [0, 256], sizes = [16, 128], strides = [1, 1]} : vector<16x384xf32> to vector<16x128xf32>
    %220 = arith.addf %219, %14 : vector<16x128xf32>
    %221 = arith.mulf %209, %220 : vector<16x128xf32>
    %222 = arith.addf %218, %221 : vector<16x128xf32>
    %223 = math.tanh %222 : vector<16x128xf32>
    %224 = arith.subf %190, %223 : vector<16x128xf32>
    %225 = arith.mulf %217, %224 : vector<16x128xf32>
    %226 = arith.addf %223, %225 : vector<16x128xf32>
    %227 = arith.truncf %226 : vector<16x128xf32> to vector<16x128xbf16>
    %228 = arith.index_cast %c5_i32 : i32 to index
    %c0_55 = arith.constant 0 : index
    %c0_56 = arith.constant 0 : index
    %229 = vector.load %arg8[%228, %c0_55, %c0_56] : memref<8x16x128xbf16, #tpu.memory_space<vmem>>, vector<1x16x128xbf16>
    %230 = vector.shape_cast %229 : vector<1x16x128xbf16> to vector<16x128xbf16>
    %231 = vector.shape_cast %227 : vector<16x128xbf16> to vector<1x16x128xbf16>
    tpu.vector_store %arg8[%228, %c0_55, %c0_56], %231 {strides = array<i32>} : memref<8x16x128xbf16, #tpu.memory_space<vmem>>, vector<1x16x128xbf16>,
    %c6_i32 = arith.constant 6 : i32
    %c16_i32_57 = arith.constant 16 : i32
    %232 = arith.muli %c6_i32, %c16_i32_57 : i32
    %233 = tpu.assume_multiple %232, 16 : i32
    %234 = arith.index_cast %233 : i32 to index
    %c0_58 = arith.constant 0 : index
    %235 = vector.load %arg10[%234, %c0_58] : memref<128x384xf32, #tpu.memory_space<vmem>>, vector<16x384xf32>
    %236 = arith.truncf %226 : vector<16x128xf32> to vector<16x128xbf16>
    %cst_59 = arith.constant dense<0.000000e+00> : vector<16x384xf32>
    %237 = tpu.matmul %236, %11, %cst_59 {dimension_numbers = #tpu.dot_dimension_numbers<[1], [0], [0], [1], [0, 0, 1, 1], [], []>} : vector<16x128xbf16>, vector<128x384xbf16>, vector<16x384xf32> -> vector<16x384xf32>
    %238 = vector.extract_strided_slice %235 {offsets = [0, 0], sizes = [16, 128], strides = [1, 1]} : vector<16x384xf32> to vector<16x128xf32>
    %239 = vector.extract_strided_slice %237 {offsets = [0, 0], sizes = [16, 128], strides = [1, 1]} : vector<16x384xf32> to vector<16x128xf32>
    %240 = arith.addf %238, %239 : vector<16x128xf32>
    %241 = arith.negf %240 : vector<16x128xf32>
    %242 = math.exp %241 : vector<16x128xf32>
    %cst_60 = arith.constant 1.000000e+00 : f32
    %243 = vector.broadcast %cst_60 : f32 to vector<16x128xf32>
    %244 = arith.addf %243, %242 : vector<16x128xf32>
    %245 = arith.divf %243, %244 : vector<16x128xf32>
    %246 = vector.extract_strided_slice %235 {offsets = [0, 128], sizes = [16, 128], strides = [1, 1]} : vector<16x384xf32> to vector<16x128xf32>
    %247 = vector.extract_strided_slice %237 {offsets = [0, 128], sizes = [16, 128], strides = [1, 1]} : vector<16x384xf32> to vector<16x128xf32>
    %248 = arith.addf %246, %247 : vector<16x128xf32>
    %249 = arith.negf %248 : vector<16x128xf32>
    %250 = math.exp %249 : vector<16x128xf32>
    %cst_61 = arith.constant 1.000000e+00 : f32
    %251 = vector.broadcast %cst_61 : f32 to vector<16x128xf32>
    %252 = arith.addf %251, %250 : vector<16x128xf32>
    %253 = arith.divf %251, %252 : vector<16x128xf32>
    %254 = vector.extract_strided_slice %235 {offsets = [0, 256], sizes = [16, 128], strides = [1, 1]} : vector<16x384xf32> to vector<16x128xf32>
    %255 = vector.extract_strided_slice %237 {offsets = [0, 256], sizes = [16, 128], strides = [1, 1]} : vector<16x384xf32> to vector<16x128xf32>
    %256 = arith.addf %255, %14 : vector<16x128xf32>
    %257 = arith.mulf %245, %256 : vector<16x128xf32>
    %258 = arith.addf %254, %257 : vector<16x128xf32>
    %259 = math.tanh %258 : vector<16x128xf32>
    %260 = arith.subf %226, %259 : vector<16x128xf32>
    %261 = arith.mulf %253, %260 : vector<16x128xf32>
    %262 = arith.addf %259, %261 : vector<16x128xf32>
    %263 = arith.truncf %262 : vector<16x128xf32> to vector<16x128xbf16>
    %264 = arith.index_cast %c6_i32 : i32 to index
    %c0_62 = arith.constant 0 : index
    %c0_63 = arith.constant 0 : index
    %265 = vector.load %arg8[%264, %c0_62, %c0_63] : memref<8x16x128xbf16, #tpu.memory_space<vmem>>, vector<1x16x128xbf16>
    %266 = vector.shape_cast %265 : vector<1x16x128xbf16> to vector<16x128xbf16>
    %267 = vector.shape_cast %263 : vector<16x128xbf16> to vector<1x16x128xbf16>
    tpu.vector_store %arg8[%264, %c0_62, %c0_63], %267 {strides = array<i32>} : memref<8x16x128xbf16, #tpu.memory_space<vmem>>, vector<1x16x128xbf16>,
    %c7_i32 = arith.constant 7 : i32
    %c16_i32_64 = arith.constant 16 : i32
    %268 = arith.muli %c7_i32, %c16_i32_64 : i32
    %269 = tpu.assume_multiple %268, 16 : i32
    %270 = arith.index_cast %269 : i32 to index
    %c0_65 = arith.constant 0 : index
    %271 = vector.load %arg10[%270, %c0_65] : memref<128x384xf32, #tpu.memory_space<vmem>>, vector<16x384xf32>
    %272 = arith.truncf %262 : vector<16x128xf32> to vector<16x128xbf16>
    %cst_66 = arith.constant dense<0.000000e+00> : vector<16x384xf32>
    %273 = tpu.matmul %272, %11, %cst_66 {dimension_numbers = #tpu.dot_dimension_numbers<[1], [0], [0], [1], [0, 0, 1, 1], [], []>} : vector<16x128xbf16>, vector<128x384xbf16>, vector<16x384xf32> -> vector<16x384xf32>
    %274 = vector.extract_strided_slice %271 {offsets = [0, 0], sizes = [16, 128], strides = [1, 1]} : vector<16x384xf32> to vector<16x128xf32>
    %275 = vector.extract_strided_slice %273 {offsets = [0, 0], sizes = [16, 128], strides = [1, 1]} : vector<16x384xf32> to vector<16x128xf32>
    %276 = arith.addf %274, %275 : vector<16x128xf32>
    %277 = arith.negf %276 : vector<16x128xf32>
    %278 = math.exp %277 : vector<16x128xf32>
    %cst_67 = arith.constant 1.000000e+00 : f32
    %279 = vector.broadcast %cst_67 : f32 to vector<16x128xf32>
    %280 = arith.addf %279, %278 : vector<16x128xf32>
    %281 = arith.divf %279, %280 : vector<16x128xf32>
    %282 = vector.extract_strided_slice %271 {offsets = [0, 128], sizes = [16, 128], strides = [1, 1]} : vector<16x384xf32> to vector<16x128xf32>
    %283 = vector.extract_strided_slice %273 {offsets = [0, 128], sizes = [16, 128], strides = [1, 1]} : vector<16x384xf32> to vector<16x128xf32>
    %284 = arith.addf %282, %283 : vector<16x128xf32>
    %285 = arith.negf %284 : vector<16x128xf32>
    %286 = math.exp %285 : vector<16x128xf32>
    %cst_68 = arith.constant 1.000000e+00 : f32
    %287 = vector.broadcast %cst_68 : f32 to vector<16x128xf32>
    %288 = arith.addf %287, %286 : vector<16x128xf32>
    %289 = arith.divf %287, %288 : vector<16x128xf32>
    %290 = vector.extract_strided_slice %271 {offsets = [0, 256], sizes = [16, 128], strides = [1, 1]} : vector<16x384xf32> to vector<16x128xf32>
    %291 = vector.extract_strided_slice %273 {offsets = [0, 256], sizes = [16, 128], strides = [1, 1]} : vector<16x384xf32> to vector<16x128xf32>
    %292 = arith.addf %291, %14 : vector<16x128xf32>
    %293 = arith.mulf %281, %292 : vector<16x128xf32>
    %294 = arith.addf %290, %293 : vector<16x128xf32>
    %295 = math.tanh %294 : vector<16x128xf32>
    %296 = arith.subf %262, %295 : vector<16x128xf32>
    %297 = arith.mulf %289, %296 : vector<16x128xf32>
    %298 = arith.addf %295, %297 : vector<16x128xf32>
    %299 = arith.truncf %298 : vector<16x128xf32> to vector<16x128xbf16>
    %300 = arith.index_cast %c7_i32 : i32 to index
    %c0_69 = arith.constant 0 : index
    %c0_70 = arith.constant 0 : index
    %301 = vector.load %arg8[%300, %c0_69, %c0_70] : memref<8x16x128xbf16, #tpu.memory_space<vmem>>, vector<1x16x128xbf16>
    %302 = vector.shape_cast %301 : vector<1x16x128xbf16> to vector<16x128xbf16>
    %303 = vector.shape_cast %299 : vector<16x128xbf16> to vector<1x16x128xbf16>
    tpu.vector_store %arg8[%300, %c0_69, %c0_70], %303 {strides = array<i32>} : memref<8x16x128xbf16, #tpu.memory_space<vmem>>, vector<1x16x128xbf16>,
    %c8_i32 = arith.constant 8 : i32
    %c0_71 = arith.constant 0 : index
    %c0_72 = arith.constant 0 : index
    %304 = vector.load %arg9[%c0_71, %c0_72] : memref<16x128xf32, #tpu.memory_space<vmem>>, vector<16x128xf32>
    tpu.vector_store %arg9[%c0_71, %c0_72], %298 {strides = array<i32>} : memref<16x128xf32, #tpu.memory_space<vmem>>, vector<16x128xf32>,
    return
  }
  func.func @transform_0(%arg0: i32, %arg1: i32) -> (i32, i32) {
    %c0_i32 = arith.constant 0 : i32
    %c0_i32_0 = arith.constant 0 : i32
    return %arg0, %c0_i32 : i32, i32
  }
  func.func @transform_1(%arg0: i32, %arg1: i32) -> (i32, i32, i32) {
    %c0_i32 = arith.constant 0 : i32
    %c0_i32_0 = arith.constant 0 : i32
    return %arg1, %arg0, %c0_i32 : i32, i32, i32
  }
  func.func @transform_2(%arg0: i32, %arg1: i32) -> (i32, i32) {
    %c0_i32 = arith.constant 0 : i32
    %c0_i32_0 = arith.constant 0 : i32
    %c0_i32_1 = arith.constant 0 : i32
    return %c0_i32, %c0_i32_0 : i32, i32
  }
  func.func @transform_3(%arg0: i32, %arg1: i32) -> (i32, i32) {
    %c0_i32 = arith.constant 0 : i32
    %c0_i32_0 = arith.constant 0 : i32
    %c0_i32_1 = arith.constant 0 : i32
    return %c0_i32, %c0_i32_0 : i32, i32
  }
  func.func @transform_4(%arg0: i32, %arg1: i32) -> (i32, i32) {
    %c0_i32 = arith.constant 0 : i32
    %c0_i32_0 = arith.constant 0 : i32
    %c0_i32_1 = arith.constant 0 : i32
    return %c0_i32, %c0_i32_0 : i32, i32
  }
  func.func @transform_5(%arg0: i32, %arg1: i32) -> (i32, i32) {
    %c0_i32 = arith.constant 0 : i32
    %c0_i32_0 = arith.constant 0 : i32
    %c0_i32_1 = arith.constant 0 : i32
    return %c0_i32, %c0_i32_0 : i32, i32
  }
  func.func @transform_6(%arg0: i32, %arg1: i32) -> (i32, i32, i32) {
    %c0_i32 = arith.constant 0 : i32
    %c0_i32_0 = arith.constant 0 : i32
    return %arg1, %arg0, %c0_i32 : i32, i32, i32
  }
}

module attributes {stable_mosaic.version = 11 : i64} {
  func.func @_gru_chunk_kernel(%arg0: i32, %arg1: i32, %arg2: memref<16x128xf32, #tpu.memory_space<vmem>>, %arg3: memref<8x16x128xbf16, #tpu.memory_space<vmem>>, %arg4: memref<128x384xbf16, #tpu.memory_space<vmem>>, %arg5: memref<1x384xf32, #tpu.memory_space<vmem>>, %arg6: memref<128x384xbf16, #tpu.memory_space<vmem>>, %arg7: memref<1x128xf32, #tpu.memory_space<vmem>>, %arg8: memref<128x128xbf16, #tpu.memory_space<vmem>>, %arg9: memref<1x128xf32, #tpu.memory_space<vmem>>, %arg10: memref<8x16x128xbf16, #tpu.memory_space<vmem>>, %arg11: memref<16x128xf32, #tpu.memory_space<vmem>>, %arg12: memref<128x384xf32, #tpu.memory_space<vmem>>, %arg13: memref<128x128xbf16, #tpu.memory_space<vmem>>) attributes {dimension_semantics = [#tpu.dimension_semantics<parallel>, #tpu.dimension_semantics<arbitrary>], iteration_bounds = array<i64: 1, 1>, scalar_prefetch = 0 : i64, scratch_operands = 3 : i64, tpu.core_type = #tpu.core_type<tc>, window_params = [{transform_indices = @transform_0, window_bounds = array<i64: 16, 128>}, {transform_indices = @transform_1, window_bounds = array<i64: 8, 16, 128>}, {pipeline_mode = #tpu.pipeline_mode<synchronous>, transform_indices = @transform_2, window_bounds = array<i64: 128, 384>}, {pipeline_mode = #tpu.pipeline_mode<synchronous>, transform_indices = @transform_3, window_bounds = array<i64: 1, 384>}, {pipeline_mode = #tpu.pipeline_mode<synchronous>, transform_indices = @transform_4, window_bounds = array<i64: 128, 384>}, {pipeline_mode = #tpu.pipeline_mode<synchronous>, transform_indices = @transform_5, window_bounds = array<i64: 1, 128>}, {pipeline_mode = #tpu.pipeline_mode<synchronous>, transform_indices = @transform_6, window_bounds = array<i64: 128, 128>}, {pipeline_mode = #tpu.pipeline_mode<synchronous>, transform_indices = @transform_7, window_bounds = array<i64: 1, 128>}, {transform_indices = @transform_8, window_bounds = array<i64: 8, 16, 128>}]} {
    %c0_i32 = arith.constant 0 : i32
    %0 = arith.cmpi eq, %arg1, %c0_i32 : i32
    %1 = arith.extui %0 : i1 to i32
    %c0_i32_0 = arith.constant 0 : i32
    %2 = arith.cmpi ne, %1, %c0_i32_0 : i32
    scf.if %2 {
      %c0_75 = arith.constant 0 : index
      %c0_76 = arith.constant 0 : index
      %298 = vector.load %arg2[%c0_75, %c0_76] : memref<16x128xf32, #tpu.memory_space<vmem>>, vector<16x128xf32>
      %c0_77 = arith.constant 0 : index
      %c0_78 = arith.constant 0 : index
      %299 = vector.load %arg11[%c0_77, %c0_78] : memref<16x128xf32, #tpu.memory_space<vmem>>, vector<16x128xf32>
      tpu.vector_store %arg11[%c0_77, %c0_78], %298 {strides = array<i32>} : memref<16x128xf32, #tpu.memory_space<vmem>>, vector<16x128xf32>,
    } else {
    }
    %c0 = arith.constant 0 : index
    %c0_1 = arith.constant 0 : index
    %c0_2 = arith.constant 0 : index
    %3 = vector.load %arg3[%c0, %c0_1, %c0_2] : memref<8x16x128xbf16, #tpu.memory_space<vmem>>, vector<8x16x128xbf16>
    %4 = vector.shape_cast %3 : vector<8x16x128xbf16> to vector<128x128xbf16>
    %c0_3 = arith.constant 0 : index
    %c0_4 = arith.constant 0 : index
    %5 = vector.load %arg4[%c0_3, %c0_4] : memref<128x384xbf16, #tpu.memory_space<vmem>>, vector<128x384xbf16>
    %cst = arith.constant dense<0.000000e+00> : vector<128x384xf32>
    %6 = tpu.matmul %4, %5, %cst {dimension_numbers = #tpu.dot_dimension_numbers<[1], [0], [0], [1], [0, 0, 1, 1], [], []>} : vector<128x128xbf16>, vector<128x384xbf16>, vector<128x384xf32> -> vector<128x384xf32>
    %c0_5 = arith.constant 0 : index
    %c0_6 = arith.constant 0 : index
    %7 = vector.load %arg5[%c0_5, %c0_6] : memref<1x384xf32, #tpu.memory_space<vmem>>, vector<1x384xf32>
    %8 = vector.broadcast %7 : vector<1x384xf32> to vector<128x384xf32>
    %9 = arith.addf %6, %8 : vector<128x384xf32>
    %c0_7 = arith.constant 0 : index
    %c0_8 = arith.constant 0 : index
    %10 = vector.load %arg12[%c0_7, %c0_8] : memref<128x384xf32, #tpu.memory_space<vmem>>, vector<128x384xf32>
    tpu.vector_store %arg12[%c0_7, %c0_8], %9 {strides = array<i32>} : memref<128x384xf32, #tpu.memory_space<vmem>>, vector<128x384xf32>,
    %c0_9 = arith.constant 0 : index
    %c0_10 = arith.constant 0 : index
    %11 = vector.load %arg6[%c0_9, %c0_10] : memref<128x384xbf16, #tpu.memory_space<vmem>>, vector<128x384xbf16>
    %c0_11 = arith.constant 0 : index
    %c0_12 = arith.constant 0 : index
    %12 = vector.load %arg7[%c0_11, %c0_12] : memref<1x128xf32, #tpu.memory_space<vmem>>, vector<1x128xf32>
    %13 = vector.shape_cast %12 : vector<1x128xf32> to vector<1x128xf32>
    %14 = vector.broadcast %13 : vector<1x128xf32> to vector<16x128xf32>
    %c0_13 = arith.constant 0 : index
    %c0_14 = arith.constant 0 : index
    %15 = vector.load %arg11[%c0_13, %c0_14] : memref<16x128xf32, #tpu.memory_space<vmem>>, vector<16x128xf32>
    %c0_i32_15 = arith.constant 0 : i32
    %c16_i32 = arith.constant 16 : i32
    %16 = arith.muli %c0_i32_15, %c16_i32 : i32
    %17 = tpu.assume_multiple %16, 16 : i32
    %18 = arith.index_cast %17 : i32 to index
    %c0_16 = arith.constant 0 : index
    %19 = vector.load %arg12[%18, %c0_16] : memref<128x384xf32, #tpu.memory_space<vmem>>, vector<16x384xf32>
    %20 = arith.truncf %15 : vector<16x128xf32> to vector<16x128xbf16>
    %cst_17 = arith.constant dense<0.000000e+00> : vector<16x384xf32>
    %21 = tpu.matmul %20, %11, %cst_17 {dimension_numbers = #tpu.dot_dimension_numbers<[1], [0], [0], [1], [0, 0, 1, 1], [], []>} : vector<16x128xbf16>, vector<128x384xbf16>, vector<16x384xf32> -> vector<16x384xf32>
    %22 = vector.extract_strided_slice %19 {offsets = [0, 0], sizes = [16, 128], strides = [1, 1]} : vector<16x384xf32> to vector<16x128xf32>
    %23 = vector.extract_strided_slice %21 {offsets = [0, 0], sizes = [16, 128], strides = [1, 1]} : vector<16x384xf32> to vector<16x128xf32>
    %24 = arith.addf %22, %23 : vector<16x128xf32>
    %25 = arith.negf %24 : vector<16x128xf32>
    %26 = math.exp %25 : vector<16x128xf32>
    %cst_18 = arith.constant 1.000000e+00 : f32
    %27 = vector.broadcast %cst_18 : f32 to vector<16x128xf32>
    %28 = arith.addf %27, %26 : vector<16x128xf32>
    %29 = arith.divf %27, %28 : vector<16x128xf32>
    %30 = vector.extract_strided_slice %19 {offsets = [0, 128], sizes = [16, 128], strides = [1, 1]} : vector<16x384xf32> to vector<16x128xf32>
    %31 = vector.extract_strided_slice %21 {offsets = [0, 128], sizes = [16, 128], strides = [1, 1]} : vector<16x384xf32> to vector<16x128xf32>
    %32 = arith.addf %30, %31 : vector<16x128xf32>
    %33 = arith.negf %32 : vector<16x128xf32>
    %34 = math.exp %33 : vector<16x128xf32>
    %cst_19 = arith.constant 1.000000e+00 : f32
    %35 = vector.broadcast %cst_19 : f32 to vector<16x128xf32>
    %36 = arith.addf %35, %34 : vector<16x128xf32>
    %37 = arith.divf %35, %36 : vector<16x128xf32>
    %38 = vector.extract_strided_slice %19 {offsets = [0, 256], sizes = [16, 128], strides = [1, 1]} : vector<16x384xf32> to vector<16x128xf32>
    %39 = vector.extract_strided_slice %21 {offsets = [0, 256], sizes = [16, 128], strides = [1, 1]} : vector<16x384xf32> to vector<16x128xf32>
    %40 = arith.addf %39, %14 : vector<16x128xf32>
    %41 = arith.mulf %29, %40 : vector<16x128xf32>
    %42 = arith.addf %38, %41 : vector<16x128xf32>
    %43 = math.tanh %42 : vector<16x128xf32>
    %44 = arith.subf %15, %43 : vector<16x128xf32>
    %45 = arith.mulf %37, %44 : vector<16x128xf32>
    %46 = arith.addf %43, %45 : vector<16x128xf32>
    %47 = arith.truncf %46 : vector<16x128xf32> to vector<16x128xbf16>
    %48 = arith.index_cast %17 : i32 to index
    %c0_20 = arith.constant 0 : index
    %49 = vector.load %arg13[%48, %c0_20] : memref<128x128xbf16, #tpu.memory_space<vmem>>, vector<16x128xbf16>
    tpu.vector_store %arg13[%48, %c0_20], %47 {strides = array<i32>} : memref<128x128xbf16, #tpu.memory_space<vmem>>, vector<16x128xbf16>,
    %c1_i32 = arith.constant 1 : i32
    %c16_i32_21 = arith.constant 16 : i32
    %50 = arith.muli %c1_i32, %c16_i32_21 : i32
    %51 = tpu.assume_multiple %50, 16 : i32
    %52 = arith.index_cast %51 : i32 to index
    %c0_22 = arith.constant 0 : index
    %53 = vector.load %arg12[%52, %c0_22] : memref<128x384xf32, #tpu.memory_space<vmem>>, vector<16x384xf32>
    %54 = arith.truncf %46 : vector<16x128xf32> to vector<16x128xbf16>
    %cst_23 = arith.constant dense<0.000000e+00> : vector<16x384xf32>
    %55 = tpu.matmul %54, %11, %cst_23 {dimension_numbers = #tpu.dot_dimension_numbers<[1], [0], [0], [1], [0, 0, 1, 1], [], []>} : vector<16x128xbf16>, vector<128x384xbf16>, vector<16x384xf32> -> vector<16x384xf32>
    %56 = vector.extract_strided_slice %53 {offsets = [0, 0], sizes = [16, 128], strides = [1, 1]} : vector<16x384xf32> to vector<16x128xf32>
    %57 = vector.extract_strided_slice %55 {offsets = [0, 0], sizes = [16, 128], strides = [1, 1]} : vector<16x384xf32> to vector<16x128xf32>
    %58 = arith.addf %56, %57 : vector<16x128xf32>
    %59 = arith.negf %58 : vector<16x128xf32>
    %60 = math.exp %59 : vector<16x128xf32>
    %cst_24 = arith.constant 1.000000e+00 : f32
    %61 = vector.broadcast %cst_24 : f32 to vector<16x128xf32>
    %62 = arith.addf %61, %60 : vector<16x128xf32>
    %63 = arith.divf %61, %62 : vector<16x128xf32>
    %64 = vector.extract_strided_slice %53 {offsets = [0, 128], sizes = [16, 128], strides = [1, 1]} : vector<16x384xf32> to vector<16x128xf32>
    %65 = vector.extract_strided_slice %55 {offsets = [0, 128], sizes = [16, 128], strides = [1, 1]} : vector<16x384xf32> to vector<16x128xf32>
    %66 = arith.addf %64, %65 : vector<16x128xf32>
    %67 = arith.negf %66 : vector<16x128xf32>
    %68 = math.exp %67 : vector<16x128xf32>
    %cst_25 = arith.constant 1.000000e+00 : f32
    %69 = vector.broadcast %cst_25 : f32 to vector<16x128xf32>
    %70 = arith.addf %69, %68 : vector<16x128xf32>
    %71 = arith.divf %69, %70 : vector<16x128xf32>
    %72 = vector.extract_strided_slice %53 {offsets = [0, 256], sizes = [16, 128], strides = [1, 1]} : vector<16x384xf32> to vector<16x128xf32>
    %73 = vector.extract_strided_slice %55 {offsets = [0, 256], sizes = [16, 128], strides = [1, 1]} : vector<16x384xf32> to vector<16x128xf32>
    %74 = arith.addf %73, %14 : vector<16x128xf32>
    %75 = arith.mulf %63, %74 : vector<16x128xf32>
    %76 = arith.addf %72, %75 : vector<16x128xf32>
    %77 = math.tanh %76 : vector<16x128xf32>
    %78 = arith.subf %46, %77 : vector<16x128xf32>
    %79 = arith.mulf %71, %78 : vector<16x128xf32>
    %80 = arith.addf %77, %79 : vector<16x128xf32>
    %81 = arith.truncf %80 : vector<16x128xf32> to vector<16x128xbf16>
    %82 = arith.index_cast %51 : i32 to index
    %c0_26 = arith.constant 0 : index
    %83 = vector.load %arg13[%82, %c0_26] : memref<128x128xbf16, #tpu.memory_space<vmem>>, vector<16x128xbf16>
    tpu.vector_store %arg13[%82, %c0_26], %81 {strides = array<i32>} : memref<128x128xbf16, #tpu.memory_space<vmem>>, vector<16x128xbf16>,
    %c2_i32 = arith.constant 2 : i32
    %c16_i32_27 = arith.constant 16 : i32
    %84 = arith.muli %c2_i32, %c16_i32_27 : i32
    %85 = tpu.assume_multiple %84, 16 : i32
    %86 = arith.index_cast %85 : i32 to index
    %c0_28 = arith.constant 0 : index
    %87 = vector.load %arg12[%86, %c0_28] : memref<128x384xf32, #tpu.memory_space<vmem>>, vector<16x384xf32>
    %88 = arith.truncf %80 : vector<16x128xf32> to vector<16x128xbf16>
    %cst_29 = arith.constant dense<0.000000e+00> : vector<16x384xf32>
    %89 = tpu.matmul %88, %11, %cst_29 {dimension_numbers = #tpu.dot_dimension_numbers<[1], [0], [0], [1], [0, 0, 1, 1], [], []>} : vector<16x128xbf16>, vector<128x384xbf16>, vector<16x384xf32> -> vector<16x384xf32>
    %90 = vector.extract_strided_slice %87 {offsets = [0, 0], sizes = [16, 128], strides = [1, 1]} : vector<16x384xf32> to vector<16x128xf32>
    %91 = vector.extract_strided_slice %89 {offsets = [0, 0], sizes = [16, 128], strides = [1, 1]} : vector<16x384xf32> to vector<16x128xf32>
    %92 = arith.addf %90, %91 : vector<16x128xf32>
    %93 = arith.negf %92 : vector<16x128xf32>
    %94 = math.exp %93 : vector<16x128xf32>
    %cst_30 = arith.constant 1.000000e+00 : f32
    %95 = vector.broadcast %cst_30 : f32 to vector<16x128xf32>
    %96 = arith.addf %95, %94 : vector<16x128xf32>
    %97 = arith.divf %95, %96 : vector<16x128xf32>
    %98 = vector.extract_strided_slice %87 {offsets = [0, 128], sizes = [16, 128], strides = [1, 1]} : vector<16x384xf32> to vector<16x128xf32>
    %99 = vector.extract_strided_slice %89 {offsets = [0, 128], sizes = [16, 128], strides = [1, 1]} : vector<16x384xf32> to vector<16x128xf32>
    %100 = arith.addf %98, %99 : vector<16x128xf32>
    %101 = arith.negf %100 : vector<16x128xf32>
    %102 = math.exp %101 : vector<16x128xf32>
    %cst_31 = arith.constant 1.000000e+00 : f32
    %103 = vector.broadcast %cst_31 : f32 to vector<16x128xf32>
    %104 = arith.addf %103, %102 : vector<16x128xf32>
    %105 = arith.divf %103, %104 : vector<16x128xf32>
    %106 = vector.extract_strided_slice %87 {offsets = [0, 256], sizes = [16, 128], strides = [1, 1]} : vector<16x384xf32> to vector<16x128xf32>
    %107 = vector.extract_strided_slice %89 {offsets = [0, 256], sizes = [16, 128], strides = [1, 1]} : vector<16x384xf32> to vector<16x128xf32>
    %108 = arith.addf %107, %14 : vector<16x128xf32>
    %109 = arith.mulf %97, %108 : vector<16x128xf32>
    %110 = arith.addf %106, %109 : vector<16x128xf32>
    %111 = math.tanh %110 : vector<16x128xf32>
    %112 = arith.subf %80, %111 : vector<16x128xf32>
    %113 = arith.mulf %105, %112 : vector<16x128xf32>
    %114 = arith.addf %111, %113 : vector<16x128xf32>
    %115 = arith.truncf %114 : vector<16x128xf32> to vector<16x128xbf16>
    %116 = arith.index_cast %85 : i32 to index
    %c0_32 = arith.constant 0 : index
    %117 = vector.load %arg13[%116, %c0_32] : memref<128x128xbf16, #tpu.memory_space<vmem>>, vector<16x128xbf16>
    tpu.vector_store %arg13[%116, %c0_32], %115 {strides = array<i32>} : memref<128x128xbf16, #tpu.memory_space<vmem>>, vector<16x128xbf16>,
    %c3_i32 = arith.constant 3 : i32
    %c16_i32_33 = arith.constant 16 : i32
    %118 = arith.muli %c3_i32, %c16_i32_33 : i32
    %119 = tpu.assume_multiple %118, 16 : i32
    %120 = arith.index_cast %119 : i32 to index
    %c0_34 = arith.constant 0 : index
    %121 = vector.load %arg12[%120, %c0_34] : memref<128x384xf32, #tpu.memory_space<vmem>>, vector<16x384xf32>
    %122 = arith.truncf %114 : vector<16x128xf32> to vector<16x128xbf16>
    %cst_35 = arith.constant dense<0.000000e+00> : vector<16x384xf32>
    %123 = tpu.matmul %122, %11, %cst_35 {dimension_numbers = #tpu.dot_dimension_numbers<[1], [0], [0], [1], [0, 0, 1, 1], [], []>} : vector<16x128xbf16>, vector<128x384xbf16>, vector<16x384xf32> -> vector<16x384xf32>
    %124 = vector.extract_strided_slice %121 {offsets = [0, 0], sizes = [16, 128], strides = [1, 1]} : vector<16x384xf32> to vector<16x128xf32>
    %125 = vector.extract_strided_slice %123 {offsets = [0, 0], sizes = [16, 128], strides = [1, 1]} : vector<16x384xf32> to vector<16x128xf32>
    %126 = arith.addf %124, %125 : vector<16x128xf32>
    %127 = arith.negf %126 : vector<16x128xf32>
    %128 = math.exp %127 : vector<16x128xf32>
    %cst_36 = arith.constant 1.000000e+00 : f32
    %129 = vector.broadcast %cst_36 : f32 to vector<16x128xf32>
    %130 = arith.addf %129, %128 : vector<16x128xf32>
    %131 = arith.divf %129, %130 : vector<16x128xf32>
    %132 = vector.extract_strided_slice %121 {offsets = [0, 128], sizes = [16, 128], strides = [1, 1]} : vector<16x384xf32> to vector<16x128xf32>
    %133 = vector.extract_strided_slice %123 {offsets = [0, 128], sizes = [16, 128], strides = [1, 1]} : vector<16x384xf32> to vector<16x128xf32>
    %134 = arith.addf %132, %133 : vector<16x128xf32>
    %135 = arith.negf %134 : vector<16x128xf32>
    %136 = math.exp %135 : vector<16x128xf32>
    %cst_37 = arith.constant 1.000000e+00 : f32
    %137 = vector.broadcast %cst_37 : f32 to vector<16x128xf32>
    %138 = arith.addf %137, %136 : vector<16x128xf32>
    %139 = arith.divf %137, %138 : vector<16x128xf32>
    %140 = vector.extract_strided_slice %121 {offsets = [0, 256], sizes = [16, 128], strides = [1, 1]} : vector<16x384xf32> to vector<16x128xf32>
    %141 = vector.extract_strided_slice %123 {offsets = [0, 256], sizes = [16, 128], strides = [1, 1]} : vector<16x384xf32> to vector<16x128xf32>
    %142 = arith.addf %141, %14 : vector<16x128xf32>
    %143 = arith.mulf %131, %142 : vector<16x128xf32>
    %144 = arith.addf %140, %143 : vector<16x128xf32>
    %145 = math.tanh %144 : vector<16x128xf32>
    %146 = arith.subf %114, %145 : vector<16x128xf32>
    %147 = arith.mulf %139, %146 : vector<16x128xf32>
    %148 = arith.addf %145, %147 : vector<16x128xf32>
    %149 = arith.truncf %148 : vector<16x128xf32> to vector<16x128xbf16>
    %150 = arith.index_cast %119 : i32 to index
    %c0_38 = arith.constant 0 : index
    %151 = vector.load %arg13[%150, %c0_38] : memref<128x128xbf16, #tpu.memory_space<vmem>>, vector<16x128xbf16>
    tpu.vector_store %arg13[%150, %c0_38], %149 {strides = array<i32>} : memref<128x128xbf16, #tpu.memory_space<vmem>>, vector<16x128xbf16>,
    %c4_i32 = arith.constant 4 : i32
    %c16_i32_39 = arith.constant 16 : i32
    %152 = arith.muli %c4_i32, %c16_i32_39 : i32
    %153 = tpu.assume_multiple %152, 16 : i32
    %154 = arith.index_cast %153 : i32 to index
    %c0_40 = arith.constant 0 : index
    %155 = vector.load %arg12[%154, %c0_40] : memref<128x384xf32, #tpu.memory_space<vmem>>, vector<16x384xf32>
    %156 = arith.truncf %148 : vector<16x128xf32> to vector<16x128xbf16>
    %cst_41 = arith.constant dense<0.000000e+00> : vector<16x384xf32>
    %157 = tpu.matmul %156, %11, %cst_41 {dimension_numbers = #tpu.dot_dimension_numbers<[1], [0], [0], [1], [0, 0, 1, 1], [], []>} : vector<16x128xbf16>, vector<128x384xbf16>, vector<16x384xf32> -> vector<16x384xf32>
    %158 = vector.extract_strided_slice %155 {offsets = [0, 0], sizes = [16, 128], strides = [1, 1]} : vector<16x384xf32> to vector<16x128xf32>
    %159 = vector.extract_strided_slice %157 {offsets = [0, 0], sizes = [16, 128], strides = [1, 1]} : vector<16x384xf32> to vector<16x128xf32>
    %160 = arith.addf %158, %159 : vector<16x128xf32>
    %161 = arith.negf %160 : vector<16x128xf32>
    %162 = math.exp %161 : vector<16x128xf32>
    %cst_42 = arith.constant 1.000000e+00 : f32
    %163 = vector.broadcast %cst_42 : f32 to vector<16x128xf32>
    %164 = arith.addf %163, %162 : vector<16x128xf32>
    %165 = arith.divf %163, %164 : vector<16x128xf32>
    %166 = vector.extract_strided_slice %155 {offsets = [0, 128], sizes = [16, 128], strides = [1, 1]} : vector<16x384xf32> to vector<16x128xf32>
    %167 = vector.extract_strided_slice %157 {offsets = [0, 128], sizes = [16, 128], strides = [1, 1]} : vector<16x384xf32> to vector<16x128xf32>
    %168 = arith.addf %166, %167 : vector<16x128xf32>
    %169 = arith.negf %168 : vector<16x128xf32>
    %170 = math.exp %169 : vector<16x128xf32>
    %cst_43 = arith.constant 1.000000e+00 : f32
    %171 = vector.broadcast %cst_43 : f32 to vector<16x128xf32>
    %172 = arith.addf %171, %170 : vector<16x128xf32>
    %173 = arith.divf %171, %172 : vector<16x128xf32>
    %174 = vector.extract_strided_slice %155 {offsets = [0, 256], sizes = [16, 128], strides = [1, 1]} : vector<16x384xf32> to vector<16x128xf32>
    %175 = vector.extract_strided_slice %157 {offsets = [0, 256], sizes = [16, 128], strides = [1, 1]} : vector<16x384xf32> to vector<16x128xf32>
    %176 = arith.addf %175, %14 : vector<16x128xf32>
    %177 = arith.mulf %165, %176 : vector<16x128xf32>
    %178 = arith.addf %174, %177 : vector<16x128xf32>
    %179 = math.tanh %178 : vector<16x128xf32>
    %180 = arith.subf %148, %179 : vector<16x128xf32>
    %181 = arith.mulf %173, %180 : vector<16x128xf32>
    %182 = arith.addf %179, %181 : vector<16x128xf32>
    %183 = arith.truncf %182 : vector<16x128xf32> to vector<16x128xbf16>
    %184 = arith.index_cast %153 : i32 to index
    %c0_44 = arith.constant 0 : index
    %185 = vector.load %arg13[%184, %c0_44] : memref<128x128xbf16, #tpu.memory_space<vmem>>, vector<16x128xbf16>
    tpu.vector_store %arg13[%184, %c0_44], %183 {strides = array<i32>} : memref<128x128xbf16, #tpu.memory_space<vmem>>, vector<16x128xbf16>,
    %c5_i32 = arith.constant 5 : i32
    %c16_i32_45 = arith.constant 16 : i32
    %186 = arith.muli %c5_i32, %c16_i32_45 : i32
    %187 = tpu.assume_multiple %186, 16 : i32
    %188 = arith.index_cast %187 : i32 to index
    %c0_46 = arith.constant 0 : index
    %189 = vector.load %arg12[%188, %c0_46] : memref<128x384xf32, #tpu.memory_space<vmem>>, vector<16x384xf32>
    %190 = arith.truncf %182 : vector<16x128xf32> to vector<16x128xbf16>
    %cst_47 = arith.constant dense<0.000000e+00> : vector<16x384xf32>
    %191 = tpu.matmul %190, %11, %cst_47 {dimension_numbers = #tpu.dot_dimension_numbers<[1], [0], [0], [1], [0, 0, 1, 1], [], []>} : vector<16x128xbf16>, vector<128x384xbf16>, vector<16x384xf32> -> vector<16x384xf32>
    %192 = vector.extract_strided_slice %189 {offsets = [0, 0], sizes = [16, 128], strides = [1, 1]} : vector<16x384xf32> to vector<16x128xf32>
    %193 = vector.extract_strided_slice %191 {offsets = [0, 0], sizes = [16, 128], strides = [1, 1]} : vector<16x384xf32> to vector<16x128xf32>
    %194 = arith.addf %192, %193 : vector<16x128xf32>
    %195 = arith.negf %194 : vector<16x128xf32>
    %196 = math.exp %195 : vector<16x128xf32>
    %cst_48 = arith.constant 1.000000e+00 : f32
    %197 = vector.broadcast %cst_48 : f32 to vector<16x128xf32>
    %198 = arith.addf %197, %196 : vector<16x128xf32>
    %199 = arith.divf %197, %198 : vector<16x128xf32>
    %200 = vector.extract_strided_slice %189 {offsets = [0, 128], sizes = [16, 128], strides = [1, 1]} : vector<16x384xf32> to vector<16x128xf32>
    %201 = vector.extract_strided_slice %191 {offsets = [0, 128], sizes = [16, 128], strides = [1, 1]} : vector<16x384xf32> to vector<16x128xf32>
    %202 = arith.addf %200, %201 : vector<16x128xf32>
    %203 = arith.negf %202 : vector<16x128xf32>
    %204 = math.exp %203 : vector<16x128xf32>
    %cst_49 = arith.constant 1.000000e+00 : f32
    %205 = vector.broadcast %cst_49 : f32 to vector<16x128xf32>
    %206 = arith.addf %205, %204 : vector<16x128xf32>
    %207 = arith.divf %205, %206 : vector<16x128xf32>
    %208 = vector.extract_strided_slice %189 {offsets = [0, 256], sizes = [16, 128], strides = [1, 1]} : vector<16x384xf32> to vector<16x128xf32>
    %209 = vector.extract_strided_slice %191 {offsets = [0, 256], sizes = [16, 128], strides = [1, 1]} : vector<16x384xf32> to vector<16x128xf32>
    %210 = arith.addf %209, %14 : vector<16x128xf32>
    %211 = arith.mulf %199, %210 : vector<16x128xf32>
    %212 = arith.addf %208, %211 : vector<16x128xf32>
    %213 = math.tanh %212 : vector<16x128xf32>
    %214 = arith.subf %182, %213 : vector<16x128xf32>
    %215 = arith.mulf %207, %214 : vector<16x128xf32>
    %216 = arith.addf %213, %215 : vector<16x128xf32>
    %217 = arith.truncf %216 : vector<16x128xf32> to vector<16x128xbf16>
    %218 = arith.index_cast %187 : i32 to index
    %c0_50 = arith.constant 0 : index
    %219 = vector.load %arg13[%218, %c0_50] : memref<128x128xbf16, #tpu.memory_space<vmem>>, vector<16x128xbf16>
    tpu.vector_store %arg13[%218, %c0_50], %217 {strides = array<i32>} : memref<128x128xbf16, #tpu.memory_space<vmem>>, vector<16x128xbf16>,
    %c6_i32 = arith.constant 6 : i32
    %c16_i32_51 = arith.constant 16 : i32
    %220 = arith.muli %c6_i32, %c16_i32_51 : i32
    %221 = tpu.assume_multiple %220, 16 : i32
    %222 = arith.index_cast %221 : i32 to index
    %c0_52 = arith.constant 0 : index
    %223 = vector.load %arg12[%222, %c0_52] : memref<128x384xf32, #tpu.memory_space<vmem>>, vector<16x384xf32>
    %224 = arith.truncf %216 : vector<16x128xf32> to vector<16x128xbf16>
    %cst_53 = arith.constant dense<0.000000e+00> : vector<16x384xf32>
    %225 = tpu.matmul %224, %11, %cst_53 {dimension_numbers = #tpu.dot_dimension_numbers<[1], [0], [0], [1], [0, 0, 1, 1], [], []>} : vector<16x128xbf16>, vector<128x384xbf16>, vector<16x384xf32> -> vector<16x384xf32>
    %226 = vector.extract_strided_slice %223 {offsets = [0, 0], sizes = [16, 128], strides = [1, 1]} : vector<16x384xf32> to vector<16x128xf32>
    %227 = vector.extract_strided_slice %225 {offsets = [0, 0], sizes = [16, 128], strides = [1, 1]} : vector<16x384xf32> to vector<16x128xf32>
    %228 = arith.addf %226, %227 : vector<16x128xf32>
    %229 = arith.negf %228 : vector<16x128xf32>
    %230 = math.exp %229 : vector<16x128xf32>
    %cst_54 = arith.constant 1.000000e+00 : f32
    %231 = vector.broadcast %cst_54 : f32 to vector<16x128xf32>
    %232 = arith.addf %231, %230 : vector<16x128xf32>
    %233 = arith.divf %231, %232 : vector<16x128xf32>
    %234 = vector.extract_strided_slice %223 {offsets = [0, 128], sizes = [16, 128], strides = [1, 1]} : vector<16x384xf32> to vector<16x128xf32>
    %235 = vector.extract_strided_slice %225 {offsets = [0, 128], sizes = [16, 128], strides = [1, 1]} : vector<16x384xf32> to vector<16x128xf32>
    %236 = arith.addf %234, %235 : vector<16x128xf32>
    %237 = arith.negf %236 : vector<16x128xf32>
    %238 = math.exp %237 : vector<16x128xf32>
    %cst_55 = arith.constant 1.000000e+00 : f32
    %239 = vector.broadcast %cst_55 : f32 to vector<16x128xf32>
    %240 = arith.addf %239, %238 : vector<16x128xf32>
    %241 = arith.divf %239, %240 : vector<16x128xf32>
    %242 = vector.extract_strided_slice %223 {offsets = [0, 256], sizes = [16, 128], strides = [1, 1]} : vector<16x384xf32> to vector<16x128xf32>
    %243 = vector.extract_strided_slice %225 {offsets = [0, 256], sizes = [16, 128], strides = [1, 1]} : vector<16x384xf32> to vector<16x128xf32>
    %244 = arith.addf %243, %14 : vector<16x128xf32>
    %245 = arith.mulf %233, %244 : vector<16x128xf32>
    %246 = arith.addf %242, %245 : vector<16x128xf32>
    %247 = math.tanh %246 : vector<16x128xf32>
    %248 = arith.subf %216, %247 : vector<16x128xf32>
    %249 = arith.mulf %241, %248 : vector<16x128xf32>
    %250 = arith.addf %247, %249 : vector<16x128xf32>
    %251 = arith.truncf %250 : vector<16x128xf32> to vector<16x128xbf16>
    %252 = arith.index_cast %221 : i32 to index
    %c0_56 = arith.constant 0 : index
    %253 = vector.load %arg13[%252, %c0_56] : memref<128x128xbf16, #tpu.memory_space<vmem>>, vector<16x128xbf16>
    tpu.vector_store %arg13[%252, %c0_56], %251 {strides = array<i32>} : memref<128x128xbf16, #tpu.memory_space<vmem>>, vector<16x128xbf16>,
    %c7_i32 = arith.constant 7 : i32
    %c16_i32_57 = arith.constant 16 : i32
    %254 = arith.muli %c7_i32, %c16_i32_57 : i32
    %255 = tpu.assume_multiple %254, 16 : i32
    %256 = arith.index_cast %255 : i32 to index
    %c0_58 = arith.constant 0 : index
    %257 = vector.load %arg12[%256, %c0_58] : memref<128x384xf32, #tpu.memory_space<vmem>>, vector<16x384xf32>
    %258 = arith.truncf %250 : vector<16x128xf32> to vector<16x128xbf16>
    %cst_59 = arith.constant dense<0.000000e+00> : vector<16x384xf32>
    %259 = tpu.matmul %258, %11, %cst_59 {dimension_numbers = #tpu.dot_dimension_numbers<[1], [0], [0], [1], [0, 0, 1, 1], [], []>} : vector<16x128xbf16>, vector<128x384xbf16>, vector<16x384xf32> -> vector<16x384xf32>
    %260 = vector.extract_strided_slice %257 {offsets = [0, 0], sizes = [16, 128], strides = [1, 1]} : vector<16x384xf32> to vector<16x128xf32>
    %261 = vector.extract_strided_slice %259 {offsets = [0, 0], sizes = [16, 128], strides = [1, 1]} : vector<16x384xf32> to vector<16x128xf32>
    %262 = arith.addf %260, %261 : vector<16x128xf32>
    %263 = arith.negf %262 : vector<16x128xf32>
    %264 = math.exp %263 : vector<16x128xf32>
    %cst_60 = arith.constant 1.000000e+00 : f32
    %265 = vector.broadcast %cst_60 : f32 to vector<16x128xf32>
    %266 = arith.addf %265, %264 : vector<16x128xf32>
    %267 = arith.divf %265, %266 : vector<16x128xf32>
    %268 = vector.extract_strided_slice %257 {offsets = [0, 128], sizes = [16, 128], strides = [1, 1]} : vector<16x384xf32> to vector<16x128xf32>
    %269 = vector.extract_strided_slice %259 {offsets = [0, 128], sizes = [16, 128], strides = [1, 1]} : vector<16x384xf32> to vector<16x128xf32>
    %270 = arith.addf %268, %269 : vector<16x128xf32>
    %271 = arith.negf %270 : vector<16x128xf32>
    %272 = math.exp %271 : vector<16x128xf32>
    %cst_61 = arith.constant 1.000000e+00 : f32
    %273 = vector.broadcast %cst_61 : f32 to vector<16x128xf32>
    %274 = arith.addf %273, %272 : vector<16x128xf32>
    %275 = arith.divf %273, %274 : vector<16x128xf32>
    %276 = vector.extract_strided_slice %257 {offsets = [0, 256], sizes = [16, 128], strides = [1, 1]} : vector<16x384xf32> to vector<16x128xf32>
    %277 = vector.extract_strided_slice %259 {offsets = [0, 256], sizes = [16, 128], strides = [1, 1]} : vector<16x384xf32> to vector<16x128xf32>
    %278 = arith.addf %277, %14 : vector<16x128xf32>
    %279 = arith.mulf %267, %278 : vector<16x128xf32>
    %280 = arith.addf %276, %279 : vector<16x128xf32>
    %281 = math.tanh %280 : vector<16x128xf32>
    %282 = arith.subf %250, %281 : vector<16x128xf32>
    %283 = arith.mulf %275, %282 : vector<16x128xf32>
    %284 = arith.addf %281, %283 : vector<16x128xf32>
    %285 = arith.truncf %284 : vector<16x128xf32> to vector<16x128xbf16>
    %286 = arith.index_cast %255 : i32 to index
    %c0_62 = arith.constant 0 : index
    %287 = vector.load %arg13[%286, %c0_62] : memref<128x128xbf16, #tpu.memory_space<vmem>>, vector<16x128xbf16>
    tpu.vector_store %arg13[%286, %c0_62], %285 {strides = array<i32>} : memref<128x128xbf16, #tpu.memory_space<vmem>>, vector<16x128xbf16>,
    %c8_i32 = arith.constant 8 : i32
    %c0_63 = arith.constant 0 : index
    %c0_64 = arith.constant 0 : index
    %288 = vector.load %arg11[%c0_63, %c0_64] : memref<16x128xf32, #tpu.memory_space<vmem>>, vector<16x128xf32>
    tpu.vector_store %arg11[%c0_63, %c0_64], %284 {strides = array<i32>} : memref<16x128xf32, #tpu.memory_space<vmem>>, vector<16x128xf32>,
    %c0_65 = arith.constant 0 : index
    %c0_66 = arith.constant 0 : index
    %289 = vector.load %arg13[%c0_65, %c0_66] : memref<128x128xbf16, #tpu.memory_space<vmem>>, vector<128x128xbf16>
    %c0_67 = arith.constant 0 : index
    %c0_68 = arith.constant 0 : index
    %290 = vector.load %arg8[%c0_67, %c0_68] : memref<128x128xbf16, #tpu.memory_space<vmem>>, vector<128x128xbf16>
    %cst_69 = arith.constant dense<0.000000e+00> : vector<128x128xf32>
    %291 = tpu.matmul %289, %290, %cst_69 {dimension_numbers = #tpu.dot_dimension_numbers<[1], [0], [0], [1], [0, 0, 1, 1], [], []>} : vector<128x128xbf16>, vector<128x128xbf16>, vector<128x128xf32> -> vector<128x128xf32>
    %c0_70 = arith.constant 0 : index
    %c0_71 = arith.constant 0 : index
    %292 = vector.load %arg9[%c0_70, %c0_71] : memref<1x128xf32, #tpu.memory_space<vmem>>, vector<1x128xf32>
    %293 = vector.broadcast %292 : vector<1x128xf32> to vector<128x128xf32>
    %294 = arith.addf %291, %293 : vector<128x128xf32>
    %295 = vector.shape_cast %294 : vector<128x128xf32> to vector<8x16x128xf32>
    %296 = arith.truncf %295 : vector<8x16x128xf32> to vector<8x16x128xbf16>
    %c0_72 = arith.constant 0 : index
    %c0_73 = arith.constant 0 : index
    %c0_74 = arith.constant 0 : index
    %297 = vector.load %arg10[%c0_72, %c0_73, %c0_74] : memref<8x16x128xbf16, #tpu.memory_space<vmem>>, vector<8x16x128xbf16>
    tpu.vector_store %arg10[%c0_72, %c0_73, %c0_74], %296 {strides = array<i32>} : memref<8x16x128xbf16, #tpu.memory_space<vmem>>, vector<8x16x128xbf16>,
    return
  }
  func.func @transform_0(%arg0: i32, %arg1: i32) -> (i32, i32) {
    %c0_i32 = arith.constant 0 : i32
    %c0_i32_0 = arith.constant 0 : i32
    return %arg0, %c0_i32 : i32, i32
  }
  func.func @transform_1(%arg0: i32, %arg1: i32) -> (i32, i32, i32) {
    %c0_i32 = arith.constant 0 : i32
    %c0_i32_0 = arith.constant 0 : i32
    return %arg1, %arg0, %c0_i32 : i32, i32, i32
  }
  func.func @transform_2(%arg0: i32, %arg1: i32) -> (i32, i32) {
    %c0_i32 = arith.constant 0 : i32
    %c0_i32_0 = arith.constant 0 : i32
    %c0_i32_1 = arith.constant 0 : i32
    return %c0_i32, %c0_i32_0 : i32, i32
  }
  func.func @transform_3(%arg0: i32, %arg1: i32) -> (i32, i32) {
    %c0_i32 = arith.constant 0 : i32
    %c0_i32_0 = arith.constant 0 : i32
    %c0_i32_1 = arith.constant 0 : i32
    return %c0_i32, %c0_i32_0 : i32, i32
  }
  func.func @transform_4(%arg0: i32, %arg1: i32) -> (i32, i32) {
    %c0_i32 = arith.constant 0 : i32
    %c0_i32_0 = arith.constant 0 : i32
    %c0_i32_1 = arith.constant 0 : i32
    return %c0_i32, %c0_i32_0 : i32, i32
  }
  func.func @transform_5(%arg0: i32, %arg1: i32) -> (i32, i32) {
    %c0_i32 = arith.constant 0 : i32
    %c0_i32_0 = arith.constant 0 : i32
    %c0_i32_1 = arith.constant 0 : i32
    return %c0_i32, %c0_i32_0 : i32, i32
  }
  func.func @transform_6(%arg0: i32, %arg1: i32) -> (i32, i32) {
    %c0_i32 = arith.constant 0 : i32
    %c0_i32_0 = arith.constant 0 : i32
    %c0_i32_1 = arith.constant 0 : i32
    return %c0_i32, %c0_i32_0 : i32, i32
  }
  func.func @transform_7(%arg0: i32, %arg1: i32) -> (i32, i32) {
    %c0_i32 = arith.constant 0 : i32
    %c0_i32_0 = arith.constant 0 : i32
    %c0_i32_1 = arith.constant 0 : i32
    return %c0_i32, %c0_i32_0 : i32, i32
  }
  func.func @transform_8(%arg0: i32, %arg1: i32) -> (i32, i32, i32) {
    %c0_i32 = arith.constant 0 : i32
    %c0_i32_0 = arith.constant 0 : i32
    return %arg1, %arg0, %c0_i32 : i32, i32, i32
  }
}

</mosaic_0001>

<bundles_post_ra>
// kernel: multilayer_rnn_forward.2
= control target key start
LH: loop header
LB: loop body
LE: loop exit
PB: predicated region body
PF: predicated region fallthrough
CT: control target
= control target key end

     0   :  { %v3547_v1 = vmov 0   ;;  %v3549_v42 = vmov 0.0   ;;  %vm2669_vm0 = vmmov 0   ;;  %v82_v61 = vlaneseq  ;;  %s3540_s2 = inlined_call_operand.vmem [shape: bf16[128,384], index: 2, kind: input, shape index: {}]   ;;  %s3541_s1 = inlined_call_operand.vmem [shape: bf16[8,16,128], index: 1, kind: input, shape index: {}]   ;;  %s3542_s4 = inlined_call_operand.vmem [shape: bf16[128,384], index: 4, kind: input, shape index: {}]   ;;  %s3543_s0 = inlined_call_operand.vmem [shape: f32[16,128], index: 0, kind: input, shape index: {}]   ;;  %s3544_s3 = inlined_call_operand.vmem [shape: f32[1,384], index: 3, kind: input, shape index: {}]   ;;  %s3545_s5 = inlined_call_operand.vmem [shape: f32[1,128], index: 5, kind: input, shape index: {}]   ;;  %s3546_s6 = inlined_call_operand.vmem [shape: bf16[8,16,128], index: 6, kind: output, shape index: {}]  }
   0x1   :  { %v2410_v0 = vld [vmem:[%s3540_s2 + $0x4] ss:$12 sps:$4 sm:$0xff]   ;;  %305 = vmatprep.mubr.bf16.mxu0 %v3547_v1  ;;  %v2412_v2 = vld [vmem:[%s3540_s2] ss:$12 sps:$4 sm:$0xff]   ;;  %v2413_v3 = vld [vmem:[%s3540_s2 + $0x1c] ss:$12 sps:$4 sm:$0xff]  }
   0x2   :  { %273 = vmatprep.subr.bf16.mxu0 %v2410_v0  ;;  %v2415_v4 = vld [vmem:[%s3540_s2 + $0x18] ss:$12 sps:$4 sm:$0xff]   ;;  %v2416_v5 = vld [vmem:[%s3540_s2 + $0x34] ss:$12 sps:$4 sm:$0xff]   ;;  %v2418_v6 = vld [vmem:[%s3540_s2 + $0x30] ss:$12 sps:$4 sm:$0xff]  }
   0x3   :  { %274 = vmatpush1.bf16.msra.mxu0 %v2412_v2  ;;  %v2419_v7 = vld [vmem:[%s3540_s2 + $0x4c] ss:$12 sps:$4 sm:$0xff]   ;;  %v2421_v8 = vld [vmem:[%s3540_s2 + $0x48] ss:$12 sps:$4 sm:$0xff]   ;;  %v2434_v9 = vld [vmem:[%s3541_s1] sm:$0xff]   ;;  %v83_v62 = vshrl.u32 %v82_v61, 7 }
   0x4   :  { %275 = vmatprep.subr.bf16.mxu0 %v2413_v3  ;;  %v2422_v10 = vld [vmem:[%s3540_s2 + $0x64] ss:$12 sps:$4 sm:$0xff]   ;;  %2167 = vmatprep.mubr.bf16.mxu1 %v2434_v9  ;;  %v2424_v11 = vld [vmem:[%s3540_s2 + $0x60] ss:$12 sps:$4 sm:$0xff]   ;;  %v2425_v12 = vld [vmem:[%s3540_s2 + $0x7c] ss:$12 sps:$4 sm:$0xff]  }
   0x5   :  { %v2427_v13 = vld [vmem:[%s3540_s2 + $0x78] ss:$12 sps:$4 sm:$0xff]   ;;  %v2447_v14 = vld [vmem:[%s3540_s2 + $0x8] ss:$12 sps:$4 sm:$0xff]   ;;  %v2451_v16 = vld [vmem:[%s3540_s2 + $0x20] ss:$12 sps:$4 sm:$0xff]  }
   0x6   :  { %v2428_v15 = vld [vmem:[%s3540_s2 + $0x94] ss:$12 sps:$4 sm:$0xff]   ;;  %2151 = vmatprep.subr.bf16.mxu1 %v2447_v14  ;;  %v2430_v17 = vld [vmem:[%s3540_s2 + $0x90] ss:$12 sps:$4 sm:$0xff]   ;;  %v2453_v18 = vld [vmem:[%s3540_s2 + $0x38] ss:$12 sps:$4 sm:$0xff]  }
   0x7   :  { %276 = vmatpush1.bf16.msra.mxu0 %v2415_v4  ;;  %2152 = vmatpush3.bf16.msra.mxu1 %v2447_v14  ;;  %v2431_v19 = vld [vmem:[%s3540_s2 + $0xac] ss:$12 sps:$4 sm:$0xff]   ;;  %v2433_v20 = vld [vmem:[%s3540_s2 + $0xa8] ss:$12 sps:$4 sm:$0xff]   ;;  %v2457_v21 = vld [vmem:[%s3540_s2 + $0x50] ss:$12 sps:$4 sm:$0xff]  }
   0x8   :  { %277 = vmatprep.subr.bf16.mxu0 %v2416_v5  ;;  %2153 = vmatprep.subr.bf16.mxu1 %v2451_v16  ;;  %v2772_v22 = vld [vmem:[%s3542_s4 + $0x4] ss:$12 sps:$4 sm:$0xff]   ;;  %v2777_v23 = vld [vmem:[%s3542_s4] ss:$12 sps:$4 sm:$0xff]   ;;  %v2782_v24 = vld [vmem:[%s3542_s4 + $0x1c] ss:$12 sps:$4 sm:$0xff]  }
   0x9   :  { %v2459_v25 = vld [vmem:[%s3540_s2 + $0x68] ss:$12 sps:$4 sm:$0xff]   ;;  %v2791_v26 = vld [vmem:[%s3542_s4 + $0x18] ss:$12 sps:$4 sm:$0xff]   ;;  %v2463_v27 = vld [vmem:[%s3540_s2 + $0x80] ss:$12 sps:$4 sm:$0xff]  }
   0xa   :  { %v2802_v28 = vld [vmem:[%s3542_s4 + $0x34] ss:$12 sps:$4 sm:$0xff]   ;;  %v2438_v29 = vld [vmem:[%s3541_s1 + $0x8] sm:$0xff]   ;;  %v2811_v30 = vld [vmem:[%s3542_s4 + $0x30] ss:$12 sps:$4 sm:$0xff]   ;;  %v92_v63 = vsub.s32 2, %v83_v62 }
   0xb   :  { %278 = vmatpush1.bf16.msra.mxu0 %v2418_v6  ;;  %2154 = vmatpush3.bf16.msra.mxu1 %v2451_v16  ;;  %v2816_v31 = vld [vmem:[%s3542_s4 + $0x4c] ss:$12 sps:$4 sm:$0xff]   ;;  %v2825_v33 = vld [vmem:[%s3542_s4 + $0x48] ss:$12 sps:$4 sm:$0xff]   ;;  %v2469_v34 = vld [vmem:[%s3540_s2 + $0xb0] ss:$12 sps:$4 sm:$0xff]  }
   0xc   :  { %279 = vmatprep.subr.bf16.mxu0 %v2419_v7  ;;  %2155 = vmatprep.subr.bf16.mxu1 %v2453_v18  ;;  %v2465_v32 = vld [vmem:[%s3540_s2 + $0x98] ss:$12 sps:$4 sm:$0xff]   ;;  %v2442_v36 = vld [vmem:[%s3541_s1 + $0x10] sm:$0xff]   ;;  %v2845_v37 = vld [vmem:[%s3542_s4 + $0x60] ss:$12 sps:$4 sm:$0xff]  }
   0xd   :  { %v2836_v35 = vld [vmem:[%s3542_s4 + $0x64] ss:$12 sps:$4 sm:$0xff]   ;;  %v2851_v38 = vld [vmem:[%s3542_s4 + $0x7c] ss:$12 sps:$4 sm:$0xff]   ;;  %v2869_v41 = vld [vmem:[%s3542_s4 + $0x94] ss:$12 sps:$4 sm:$0xff]  }
   0xe   :  { %v2856_v39 = vld [vmem:[%s3542_s4 + $0x8] ss:$12 sps:$4 sm:$0xff]   ;;  %v2863_v40 = vld [vmem:[%s3542_s4 + $0x78] ss:$12 sps:$4 sm:$0xff]   ;;  %v2879_v44 = vld [vmem:[%s3542_s4 + $0x20] ss:$12 sps:$4 sm:$0xff]  }
   0xf   :  { %280 = vmatpush1.bf16.msra.mxu0 %v2421_v8  ;;  %2156 = vmatpush3.bf16.msra.mxu1 %v2453_v18  ;;  %v2446_v43 = vld [vmem:[%s3541_s1 + $0x18] sm:$0xff]   ;;  %v2905_v48 = vld [vmem:[%s3542_s4 + $0xa8] ss:$12 sps:$4 sm:$0xff]   ;;  %v2452_v49 = vld [vmem:[%s3541_s1 + $0x20] sm:$0xff]  }
  0x10   :  { %281 = vmatprep.subr.bf16.mxu0 %v2422_v10  ;;  %2157 = vmatprep.subr.bf16.mxu1 %v2457_v21  ;;  %v2885_v45 = vld [vmem:[%s3542_s4 + $0x90] ss:$12 sps:$4 sm:$0xff]   ;;  %v2892_v46 = vld [vmem:[%s3542_s4 + $0xac] ss:$12 sps:$4 sm:$0xff]   ;;  %v2925_v51 = vld [vmem:[%s3542_s4 + $0x68] ss:$12 sps:$4 sm:$0xff]  }
  0x11   :  { %v2898_v47 = vld [vmem:[%s3542_s4 + $0x38] ss:$12 sps:$4 sm:$0xff]   ;;  %v2916_v50 = vld [vmem:[%s3542_s4 + $0x50] ss:$12 sps:$4 sm:$0xff]   ;;  %v2458_v52 = vld [vmem:[%s3541_s1 + $0x28] sm:$0xff]  }
  0x12   :  { %v2464_v53 = vld [vmem:[%s3541_s1 + $0x30] sm:$0xff]   ;;  %v2939_v54 = vld [vmem:[%s3542_s4 + $0x80] ss:$12 sps:$4 sm:$0xff]   ;;  %v2946_v55 = vld [vmem:[%s3542_s4 + $0x98] ss:$12 sps:$4 sm:$0xff]  }
  0x13   :  { %282 = vmatpush1.bf16.msra.mxu0 %v2424_v11  ;;  %2158 = vmatpush3.bf16.msra.mxu1 %v2457_v21  ;;  %v2470_v56 = vld [vmem:[%s3541_s1 + $0x38] sm:$0xff]   ;;  %v2965_v58 = vld [vmem:[%s3543_s0] sm:$0xff]  ;;  %v2970_v59 = vld [vmem:[%s3543_s0 + $0x8] sm:$0xff] }
  0x14   :  { %283 = vmatprep.subr.bf16.mxu0 %v2425_v12  ;;  %2159 = vmatprep.subr.bf16.mxu1 %v2459_v25  ;;  %v2957_v57 = vld [vmem:[%s3542_s4 + $0xb0] ss:$12 sps:$4 sm:$0xff]   ;;  %v581_v60 = vpack.c.bf16 %v2970_v59, %v2965_v58  ;;  %v80_v0 = vld [vmem:[%s3544_s3] sm:$0x7] }
  0x15   :  { %v3016_v2 = vrot.slane %v80_v0, %v92_v63 }
  0x17   :  { %284 = vmatpush1.bf16.msra.mxu0 %v2427_v13  ;;  %2160 = vmatpush3.bf16.msra.mxu1 %v2459_v25 }
  0x18   :  { %285 = vmatprep.subr.bf16.mxu0 %v2428_v15  ;;  %2161 = vmatprep.subr.bf16.mxu1 %v2463_v27 }
  0x1b   :  { %286 = vmatpush1.bf16.msra.mxu0 %v2430_v17  ;;  %2162 = vmatpush3.bf16.msra.mxu1 %v2463_v27 }
  0x1c   :  { %287 = vmatprep.subr.bf16.mxu0 %v2431_v19  ;;  %2163 = vmatprep.subr.bf16.mxu1 %v2465_v32 }
  0x1f   :  { %288 = vmatpush1.bf16.msra.mxu0 %v2433_v20  ;;  %2164 = vmatpush3.bf16.msra.mxu1 %v2465_v32 }
  0x20   :  { %710 = vmatprep.subr.bf16.mxu0 %v2772_v22  ;;  %2165 = vmatprep.subr.bf16.mxu1 %v2469_v34 }
  0x22   :  { %306 = vmatmul.mubr.bf16.vlgmr.msra.gmra.mrb[0].mxu0 %v2434_v9 }
  0x23   :  { %711 = vmatpush1.bf16.msra.mxu0 %v2777_v23  ;;  %315 = vmatprep.mubr.bf16.mxu0 %v3547_v1 }
  0x24   :  { %712 = vmatprep.subr.bf16.mxu0 %v2782_v24  ;;  %2166 = vmatpush3.bf16.msra.mxu1 %v2469_v34 }
  0x25   :  { %2183 = vmatprep.subr.bf16.mxu1 %v3549_v42 }
  0x27   :  { %713 = vmatpush1.bf16.msra.mxu0 %v2791_v26  ;;  %2168 = vmatmul.mubr.bf16.vlgmr.msra.gmra.mrb[0].mxu1 %v2438_v29 }
  0x28   :  { %714 = vmatprep.subr.bf16.mxu0 %v2802_v28  ;;  %2184 = vmatpush3.bf16.msra.mxu1 %v2856_v39 }
  0x29   :  { %2171 = vmatprep.mubr.bf16.mxu1 %v2442_v36  ;;  %2185 = vmatprep.subr.bf16.mxu1 %v3549_v42 }
  0x2a   :  { %316 = vmatmul.mubr.bf16.gmra.mrb[4].mxu0 %v2438_v29 }
  0x2b   :  { %325 = vmatprep.mubr.bf16.mxu0 %v3547_v1  ;;  %715 = vmatpush1.bf16.msra.mxu0 %v2811_v30 }
  0x2c   :  { %716 = vmatprep.subr.bf16.mxu0 %v2816_v31  ;;  %2186 = vmatpush3.bf16.msra.mxu1 %v2879_v44 }
  0x2d   :  { %2187 = vmatprep.subr.bf16.mxu1 %v3549_v42 }
  0x2f   :  { %717 = vmatpush1.bf16.msra.mxu0 %v2825_v33  ;;  %2172 = vmatmul.mubr.bf16.gmra.mrb[4].mxu1 %v2446_v43 }
  0x30   :  { %718 = vmatprep.subr.bf16.mxu0 %v2836_v35  ;;  %2188 = vmatpush3.bf16.msra.mxu1 %v2898_v47 }
  0x31   :  { %2175 = vmatprep.mubr.bf16.mxu1 %v2452_v49  ;;  %2189 = vmatprep.subr.bf16.mxu1 %v3549_v42 }
  0x32   :  { %326 = vmatmul.mubr.bf16.gmra.mrb[8].mxu0 %v2442_v36 }
  0x33   :  { %335 = vmatprep.mubr.bf16.mxu0 %v3547_v1  ;;  %719 = vmatpush1.bf16.msra.mxu0 %v2845_v37 }
  0x34   :  { %720 = vmatprep.subr.bf16.mxu0 %v2851_v38  ;;  %2190 = vmatpush3.bf16.msra.mxu1 %v2916_v50 }
  0x35   :  { %2191 = vmatprep.subr.bf16.mxu1 %v3549_v42 }
  0x37   :  { %721 = vmatpush1.bf16.msra.mxu0 %v2863_v40  ;;  %2176 = vmatmul.mubr.bf16.gmra.mrb[8].mxu1 %v2458_v52 }
  0x38   :  { %722 = vmatprep.subr.bf16.mxu0 %v2869_v41  ;;  %2192 = vmatpush3.bf16.msra.mxu1 %v2925_v51 }
  0x39   :  { %2179 = vmatprep.mubr.bf16.mxu1 %v2464_v53  ;;  %2193 = vmatprep.subr.bf16.mxu1 %v3549_v42 }
  0x3a   :  { %336 = vmatmul.mubr.bf16.gmra.mrb[12].mxu0 %v2446_v43 }
  0x3b   :  { %345 = vmatprep.mubr.bf16.mxu0 %v3547_v1  ;;  %723 = vmatpush1.bf16.msra.mxu0 %v2885_v45 }
  0x3c   :  { %724 = vmatprep.subr.bf16.mxu0 %v2892_v46  ;;  %2194 = vmatpush3.bf16.msra.mxu1 %v2939_v54 }
  0x3d   :  { %2195 = vmatprep.subr.bf16.mxu1 %v3549_v42 }
  0x3f   :  { %725 = vmatpush1.bf16.msra.mxu0 %v2905_v48  ;;  %2180 = vmatmul.mubr.bf16.gmra.mrb[12].mxu1 %v2470_v56 }
  0x40   :  { %855 = vmatprep.subr.bf16.mxu0 %v2772_v22  ;;  %2196 = vmatpush3.bf16.msra.mxu1 %v2946_v55 }
  0x41   :  { %2199 = vmatprep.mubr.msk.bf16.mxu1 %vm2669_vm0, %v3549_v42  ;;  %2197 = vmatprep.subr.bf16.mxu1 %v3549_v42 }
  0x42   :  { %346 = vmatmul.mubr.bf16.gmra.mrb[16].mxu0 %v2452_v49 }
  0x43   :  { %355 = vmatprep.mubr.bf16.mxu0 %v3547_v1 }
  0x44   :  { %2198 = vmatpush3.bf16.msra.mxu1 %v2957_v57 }
  0x45   :  { %2203 = vmatprep.subr.bf16.mxu1 %v3549_v42 }
  0x47   :  { %2200 = vmatmul.mubr.bf16.vlgmr.msra.gmra.mrb[16].mxu1 %v581_v60 }
  0x48   :  { %2204 = vmatpush3.bf16.msra.mxu1 %v2856_v39  ;;  %2219 = vmatprep.mubr.msk.bf16.mxu1 %vm2669_vm0, %v3549_v42 }
  0x49   :  { %2205 = vmatprep.subr.bf16.mxu1 %v3549_v42 }
  0x4a   :  { %356 = vmatmul.mubr.bf16.gmra.mrb[20].mxu0 %v2458_v52 }
  0x4b   :  { %365 = vmatprep.mubr.bf16.mxu0 %v3547_v1 }
  0x4c   :  { %2206 = vmatpush3.bf16.msra.mxu1 %v2879_v44 }
  0x4d   :  { %2207 = vmatprep.subr.bf16.mxu1 %v3549_v42 }
  0x50   :  { %2208 = vmatpush3.bf16.msra.mxu1 %v2898_v47 }
  0x51   :  { %2209 = vmatprep.subr.bf16.mxu1 %v3549_v42 }
  0x52   :  { %366 = vmatmul.mubr.bf16.gmra.mrb[24].mxu0 %v2464_v53 }
  0x53   :  { %375 = vmatprep.mubr.bf16.mxu0 %v3547_v1 }
  0x54   :  { %2210 = vmatpush3.bf16.msra.mxu1 %v2916_v50 }
  0x55   :  { %2211 = vmatprep.subr.bf16.mxu1 %v3549_v42 }
  0x58   :  { %2212 = vmatpush3.bf16.msra.mxu1 %v2925_v51 }
  0x59   :  { %2213 = vmatprep.subr.bf16.mxu1 %v3549_v42 }
  0x5a   :  { %376 = vmatmul.mubr.bf16.gmra.mrb[28].mxu0 %v2470_v56 }
  0x5b   :  { %742 = vmatprep.mubr.bf16.mxu0 %v3547_v1 }
  0x5c   :  { %2214 = vmatpush3.bf16.msra.mxu1 %v2939_v54 }
  0x5d   :  { %2215 = vmatprep.subr.bf16.mxu1 %v3549_v42 }
  0x60   :  { %2216 = vmatpush3.bf16.msra.mxu1 %v2946_v55 }
  0x61   :  { %2217 = vmatprep.subr.bf16.mxu1 %v3549_v42 }
  0x62   :  { %743 = vmatmul.mubr.bf16.vlgmr.msra.gmra.mrb[0].mxu0 %v581_v60 }
  0x63   :  { %856 = vmatpush1.bf16.msra.mxu0 %v2777_v23  ;;  %887 = vmatprep.mubr.bf16.mxu0 %v3547_v1 }
  0x64   :  { %857 = vmatprep.subr.bf16.mxu0 %v2782_v24  ;;  %2218 = vmatpush3.bf16.msra.mxu1 %v2957_v57 }
  0x65   :  { %2223 = vmatprep.subr.bf16.mxu1 %v3549_v42 }
  0x67   :  { %858 = vmatpush1.bf16.msra.mxu0 %v2791_v26 }
  0x68   :  { %859 = vmatprep.subr.bf16.mxu0 %v2802_v28 }
  0x6b   :  { %860 = vmatpush1.bf16.msra.mxu0 %v2811_v30 }
  0x6c   :  { %861 = vmatprep.subr.bf16.mxu0 %v2816_v31 }
  0x6f   :  { %862 = vmatpush1.bf16.msra.mxu0 %v2825_v33 }
  0x70   :  { %863 = vmatprep.subr.bf16.mxu0 %v2836_v35 }
  0x73   :  { %864 = vmatpush1.bf16.msra.mxu0 %v2845_v37 }
  0x74   :  { %865 = vmatprep.subr.bf16.mxu0 %v2851_v38 }
  0x77   :  { %866 = vmatpush1.bf16.msra.mxu0 %v2863_v40 }
  0x78   :  { %867 = vmatprep.subr.bf16.mxu0 %v2869_v41 }
  0x7b   :  { %868 = vmatpush1.bf16.msra.mxu0 %v2885_v45 }
  0x7c   :  { %869 = vmatprep.subr.bf16.mxu0 %v2892_v46 }
  0x7f   :  { %870 = vmatpush1.bf16.msra.mxu0 %v2905_v48 }
  0x80   :  { %1001 = vmatprep.subr.bf16.mxu0 %v2772_v22 }
  0xfa   :  { %v2169_v3 = vpop.f32.mrb[0].mxu1 }
  0xfb   :  { %v3019_v4 = vadd.f32 %v2169_v3, %v3016_v2  ;;  %v3021_v5 = vpop.f32.mrb[1].mxu1 }
  0xfc   :  { %v2170_v6 = vpop.f32.mrb[2].mxu1 }
  0xfd   :  { %v3024_v7 = vadd.f32 %v2170_v6, %v3016_v2  ;;  %v3026_v8 = vpop.f32.mrb[3].mxu1  ;;  %v84_v6 = vsub.s32 0, %v83_v62 }
 0x102   :  { %v2173_v9 = vpop.f32.mrb[4].mxu1 }
 0x103   :  { %v3029_v10 = vadd.f32 %v2173_v9, %v3016_v2  ;;  %v436_v11 = vpop.f32.mrb[5].mxu1  ;;  %v3064_v9 = vrot.slane %v80_v0, %v84_v6 }
 0x104   :  { %v3032_v12 = vadd.f32 %v436_v11, %v3016_v2  ;;  %v2174_v13 = vpop.f32.mrb[6].mxu1 }
 0x105   :  { %v3035_v14 = vadd.f32 %v2174_v13, %v3016_v2  ;;  %v439_v15 = vpop.f32.mrb[7].mxu1 }
 0x106   :  { %v3038_v16 = vadd.f32 %v439_v15, %v3016_v2  ;;  %v88_v15 = vsub.s32 1, %v83_v62 }
 0x10a   :  { %v2177_v17 = vpop.f32.mrb[8].mxu1 }
 0x10b   :  { %v3041_v18 = vadd.f32 %v2177_v17, %v3016_v2  ;;  %v452_v19 = vpop.f32.mrb[9].mxu1 }
 0x10c   :  { %v3044_v20 = vadd.f32 %v452_v19, %v3016_v2  ;;  %v2178_v21 = vpop.f32.mrb[10].mxu1 }
 0x10d   :  { %v3047_v25 = vadd.f32 %v2178_v21, %v3016_v2  ;;  %v455_v27 = vpop.f32.mrb[11].mxu1 }
 0x10e   :  { %v3050_v29 = vadd.f32 %v455_v27, %v3016_v2 }
 0x112   :  { %v2181_v32 = vpop.f32.mrb[12].mxu1 }
 0x113   :  { %v3053_v34 = vadd.f32 %v2181_v32, %v3016_v2  ;;  %v468_v36 = vpop.f32.mrb[13].mxu1 }
 0x114   :  { %v3056_v43 = vadd.f32 %v468_v36, %v3016_v2  ;;  %v2182_v49 = vpop.f32.mrb[14].mxu1  ;;  %v3068_v36 = vrot.slane %v80_v0, %v88_v15  ;;  %v3075_v0 = vld [vmem:[%s3545_s5] ss:$0 sm:$0xff] }
 0x115   :  { %v3059_v52 = vadd.f32 %v2182_v49, %v3016_v2  ;;  %v471_v53 = vpop.f32.mrb[15].mxu1 }
 0x116   :  { %v3062_v56 = vadd.f32 %v471_v53, %v3016_v2 }
 0x117   :  { %3551 = vst [vmem:[#allocation4_spill] sm:$0xff] %v3059_v52 }
 0x11a   :  { %v787_v60 = vpop.f32.mrb[16].mxu1 }
 0x11b   :  { %v2201_v61 = vpop.f32.mrb[17].mxu1  ;;  %v822_v15 = vadd.f32 %v3075_v0, %v787_v60 }
 0x11c   :  { %v790_v63 = vpop.f32.mrb[18].mxu1 }
 0x11d   :  { %v2202_v3 = vpop.f32.mrb[19].mxu1 }
 0x135   :  { %v744_v11 = vpop.f32.mrb[0].mxu0 }
 0x136   :  { %v2343_v13 = vadd.f32 %v744_v11, %v3064_v9  ;;  %v746_v17 = vpop.f32.mrb[1].mxu0 }
 0x137   :  { %v748_v19 = vpop.f32.mrb[2].mxu0  ;;  %v2344_v53 = vadd.f32 %v746_v17, %v3068_v36 }
 0x138   :  { %v1938_v21 = vmul.f32 -1.442695, %v2343_v13  ;;  %v2345_v27 = vadd.f32 %v748_v19, %v3064_v9  ;;  %v750_v32 = vpop.f32.mrb[3].mxu0 }
 0x139   :  { %v2346_v61 = vadd.f32 %v750_v32, %v3068_v36  ;;  %v1940_v3 = vmul.f32 -1.442695, %v2344_v53 }
 0x13a   :  { %2482 = vpow2.f32 %v1938_v21  ;;  %v1939_v49 = vmul.f32 -1.442695, %v2345_v27  ;;  %v421_v27 = vadd.f32 %v3021_v5, %v3016_v2 }
 0x13b   :  { %v1941_v1 = vmul.f32 -1.442695, %v2346_v61 }
 0x13c   :  { %2484 = vpow2.f32 %v1939_v49  ;;  %v823_v49 = vadd.f32 %v3075_v0, %v790_v63 }
 0x13d   :  { %2486 = vpow2.f32 %v1940_v3 }
 0x144   :  { %v2483_v6 = vpop.eup %2482 }
 0x145   :  { %v802_v11 = vadd.f32 1.0, %v2483_v6 }
 0x146   :  { %v2485_v62 = vpop.eup %2484 }
 0x147   :  { %2488 = vrcp.f32 %v802_v11  ;;  %v803_v13 = vadd.f32 1.0, %v2485_v62  ;;  %v2487_v17 = vpop.eup %2486 }
 0x148   :  { %2490 = vpow2.f32 %v1941_v1  ;;  %v816_v61 = vadd.f32 1.0, %v2487_v17  ;;  %v424_v1 = vadd.f32 %v3026_v8, %v3016_v2 }
 0x149   :  { %2492 = vrcp.f32 %v803_v13 }
 0x151   :  { %v2489_v19 = vpop.eup %2488 }
 0x152   :  { %v2491_v21 = vpop.eup %2490  ;;  %v824_v32 = vmul.f32 %v2489_v19, %v822_v15 }
 0x153   :  { %v2493_v53 = vpop.eup %2492  ;;  %v817_v11 = vadd.f32 1.0, %v2491_v21 }
 0x154   :  { %v826_v3 = vadd.f32 %v824_v32, %v421_v27  ;;  %v825_v6 = vmul.f32 %v2493_v53, %v823_v49 }
 0x156   :  { %2494 = vtanh.f32 %v826_v3  ;;  %v827_v62 = vadd.f32 %v825_v6, %v424_v1 }
 0x157   :  { %2496 = vrcp.f32 %v816_v61 }
 0x158   :  { %2498 = vtanh.f32 %v827_v62 }
 0x159   :  { %2500 = vrcp.f32 %v817_v11 }
 0x160   :  { %v2495_v60 = vpop.eup %2494 }
 0x161   :  { %v2497_v13 = vpop.eup %2496  ;;  %v830_v5 = vsub.f32 %v2965_v58, %v2495_v60  ;;  %v3552_v58 = vmov 0.0  }
 0x162   :  { %v2499_v15 = vpop.eup %2498 }
 0x163   :  { %v831_v63 = vsub.f32 %v2970_v59, %v2499_v15  ;;  %v832_v19 = vmul.f32 %v2497_v13, %v830_v5  ;;  %v2501_v17 = vpop.eup %2500  ;;  %v3553_v59 = vmov 0  }
 0x165   :  { %v833_v42 = vmul.f32 %v2501_v17, %v831_v63  ;;  %v3085_v52 = vadd.f32 %v2495_v60, %v832_v19 }
 0x167   :  { %v3087_v2 = vadd.f32 %v2499_v15, %v833_v42 }
 0x169   :  { %v836_v8 = vpack.c.bf16 %v3087_v2, %v3085_v52 }
 0x16b   :  { %2020 = vst [vmem:[%s3546_s6] sm:$0xff] %v836_v8   ;;  %888 = vmatmul.mubr.bf16.vlgmr.msra.gmra.mrb[4].mxu0 %v836_v8  ;;  %2220 = vmatmul.mubr.bf16.vlgmr.msra.gmra.mrb[20].mxu1 %v836_v8 }
 0x16c   :  { %1002 = vmatpush1.bf16.msra.mxu0 %v2777_v23  ;;  %2224 = vmatpush3.bf16.msra.mxu1 %v2856_v39 }
 0x16d   :  { %1003 = vmatprep.subr.bf16.mxu0 %v2782_v24  ;;  %2225 = vmatprep.subr.bf16.mxu1 %v3552_v58 }
 0x16e   :  { %1033 = vmatprep.mubr.bf16.mxu0 %v3553_v59  ;;  %2239 = vmatprep.mubr.msk.bf16.mxu1 %vm2669_vm0, %v3552_v58 }
 0x170   :  { %1004 = vmatpush1.bf16.msra.mxu0 %v2791_v26  ;;  %2226 = vmatpush3.bf16.msra.mxu1 %v2879_v44 }
 0x171   :  { %1005 = vmatprep.subr.bf16.mxu0 %v2802_v28  ;;  %2227 = vmatprep.subr.bf16.mxu1 %v3552_v58 }
 0x174   :  { %1006 = vmatpush1.bf16.msra.mxu0 %v2811_v30  ;;  %2228 = vmatpush3.bf16.msra.mxu1 %v2898_v47 }
 0x175   :  { %1007 = vmatprep.subr.bf16.mxu0 %v2816_v31  ;;  %2229 = vmatprep.subr.bf16.mxu1 %v3552_v58 }
 0x178   :  { %1008 = vmatpush1.bf16.msra.mxu0 %v2825_v33  ;;  %2230 = vmatpush3.bf16.msra.mxu1 %v2916_v50 }
 0x179   :  { %1009 = vmatprep.subr.bf16.mxu0 %v2836_v35  ;;  %2231 = vmatprep.subr.bf16.mxu1 %v3552_v58 }
 0x17c   :  { %1010 = vmatpush1.bf16.msra.mxu0 %v2845_v37  ;;  %2232 = vmatpush3.bf16.msra.mxu1 %v2925_v51 }
 0x17d   :  { %1011 = vmatprep.subr.bf16.mxu0 %v2851_v38  ;;  %2233 = vmatprep.subr.bf16.mxu1 %v3552_v58 }
 0x180   :  { %1012 = vmatpush1.bf16.msra.mxu0 %v2863_v40  ;;  %2234 = vmatpush3.bf16.msra.mxu1 %v2939_v54 }
 0x181   :  { %1013 = vmatprep.subr.bf16.mxu0 %v2869_v41  ;;  %2235 = vmatprep.subr.bf16.mxu1 %v3552_v58 }
 0x184   :  { %1014 = vmatpush1.bf16.msra.mxu0 %v2885_v45  ;;  %2236 = vmatpush3.bf16.msra.mxu1 %v2946_v55 }
 0x185   :  { %1015 = vmatprep.subr.bf16.mxu0 %v2892_v46  ;;  %2237 = vmatprep.subr.bf16.mxu1 %v3552_v58 }
 0x188   :  { %1016 = vmatpush1.bf16.msra.mxu0 %v2905_v48  ;;  %2238 = vmatpush3.bf16.msra.mxu1 %v2957_v57 }
 0x189   :  { %1147 = vmatprep.subr.bf16.mxu0 %v2772_v22  ;;  %2243 = vmatprep.subr.bf16.mxu1 %v3552_v58 }
 0x23e   :  { %v889_v42 = vpop.f32.mrb[4].mxu0  ;;  %v932_v21 = vpop.f32.mrb[20].mxu1 }
 0x23f   :  { %v2347_v27 = vadd.f32 %v889_v42, %v3064_v9  ;;  %v891_v32 = vpop.f32.mrb[5].mxu0  ;;  %v2221_v49 = vpop.f32.mrb[21].mxu1 }
 0x240   :  { %v893_v53 = vpop.f32.mrb[6].mxu0  ;;  %v935_v61 = vpop.f32.mrb[22].mxu1  ;;  %v2348_v60 = vadd.f32 %v891_v32, %v3068_v36 }
 0x241   :  { %v1944_v1 = vmul.f32 -1.442695, %v2347_v27  ;;  %v2349_v3 = vadd.f32 %v893_v53, %v3064_v9  ;;  %v895_v6 = vpop.f32.mrb[7].mxu0  ;;  %v2222_v11 = vpop.f32.mrb[23].mxu1  ;;  %v967_v27 = vadd.f32 %v3075_v0, %v932_v21  ;;  %v968_v32 = vadd.f32 %v3075_v0, %v935_v61 }
 0x242   :  { %v2350_v13 = vadd.f32 %v895_v6, %v3068_v36  ;;  %v1946_v5 = vmul.f32 -1.442695, %v2348_v60 }
 0x243   :  { %2502 = vpow2.f32 %v1944_v1  ;;  %v1945_v62 = vmul.f32 -1.442695, %v2349_v3 }
 0x244   :  { %v1947_v63 = vmul.f32 -1.442695, %v2350_v13 }
 0x245   :  { %2504 = vpow2.f32 %v1945_v62 }
 0x246   :  { %2506 = vpow2.f32 %v1946_v5 }
 0x24d   :  { %v2503_v15 = vpop.eup %2502 }
 0x24e   :  { %v947_v19 = vadd.f32 1.0, %v2503_v15 }
 0x24f   :  { %v2505_v17 = vpop.eup %2504 }
 0x250   :  { %2508 = vrcp.f32 %v947_v19  ;;  %v948_v8 = vadd.f32 1.0, %v2505_v17  ;;  %v2507_v42 = vpop.eup %2506 }
 0x251   :  { %2510 = vpow2.f32 %v1947_v63  ;;  %v961_v6 = vadd.f32 1.0, %v2507_v42 }
 0x252   :  { %2512 = vrcp.f32 %v948_v8 }
 0x25a   :  { %v2509_v49 = vpop.eup %2508 }
 0x25b   :  { %v2511_v53 = vpop.eup %2510  ;;  %v969_v1 = vmul.f32 %v2509_v49, %v967_v27 }
 0x25c   :  { %v2513_v3 = vpop.eup %2512  ;;  %v962_v13 = vadd.f32 1.0, %v2511_v53 }
 0x25d   :  { %v971_v11 = vadd.f32 %v969_v1, %v3019_v4  ;;  %v970_v62 = vmul.f32 %v2513_v3, %v968_v32 }
 0x25f   :  { %2514 = vtanh.f32 %v971_v11  ;;  %v972_v60 = vadd.f32 %v970_v62, %v3024_v7 }
 0x260   :  { %2516 = vrcp.f32 %v961_v6 }
 0x261   :  { %2518 = vtanh.f32 %v972_v60 }
 0x262   :  { %2520 = vrcp.f32 %v962_v13 }
 0x269   :  { %v2515_v5 = vpop.eup %2514 }
 0x26a   :  { %v2517_v15 = vpop.eup %2516  ;;  %v975_v21 = vsub.f32 %v3085_v52, %v2515_v5 }
 0x26b   :  { %v2519_v63 = vpop.eup %2518 }
 0x26c   :  { %v976_v19 = vsub.f32 %v3087_v2, %v2519_v63  ;;  %v977_v61 = vmul.f32 %v2517_v15, %v975_v21  ;;  %v2521_v17 = vpop.eup %2520 }
 0x26e   :  { %v978_v8 = vmul.f32 %v2521_v17, %v976_v19  ;;  %v3139_v42 = vadd.f32 %v2515_v5, %v977_v61 }
 0x270   :  { %v3141_v4 = vadd.f32 %v2519_v63, %v978_v8 }
 0x272   :  { %v981_v7 = vpack.c.bf16 %v3141_v4, %v3139_v42 }
 0x274   :  { %2056 = vst [vmem:[%s3546_s6 + $0x8] sm:$0xff] %v981_v7   ;;  %1034 = vmatmul.mubr.bf16.vlgmr.msra.gmra.mrb[8].mxu0 %v981_v7  ;;  %2240 = vmatmul.mubr.bf16.vlgmr.msra.gmra.mrb[24].mxu1 %v981_v7 }
 0x275   :  { %1148 = vmatpush1.bf16.msra.mxu0 %v2777_v23  ;;  %2244 = vmatpush3.bf16.msra.mxu1 %v2856_v39 }
 0x276   :  { %1149 = vmatprep.subr.bf16.mxu0 %v2782_v24  ;;  %2245 = vmatprep.subr.bf16.mxu1 %v3552_v58 }
 0x277   :  { %1179 = vmatprep.mubr.bf16.mxu0 %v3553_v59  ;;  %2259 = vmatprep.mubr.msk.bf16.mxu1 %vm2669_vm0, %v3552_v58 }
 0x279   :  { %1150 = vmatpush1.bf16.msra.mxu0 %v2791_v26  ;;  %2246 = vmatpush3.bf16.msra.mxu1 %v2879_v44 }
 0x27a   :  { %1151 = vmatprep.subr.bf16.mxu0 %v2802_v28  ;;  %2247 = vmatprep.subr.bf16.mxu1 %v3552_v58 }
 0x27d   :  { %1152 = vmatpush1.bf16.msra.mxu0 %v2811_v30  ;;  %2248 = vmatpush3.bf16.msra.mxu1 %v2898_v47 }
 0x27e   :  { %1153 = vmatprep.subr.bf16.mxu0 %v2816_v31  ;;  %2249 = vmatprep.subr.bf16.mxu1 %v3552_v58 }
 0x281   :  { %1154 = vmatpush1.bf16.msra.mxu0 %v2825_v33  ;;  %2250 = vmatpush3.bf16.msra.mxu1 %v2916_v50 }
 0x282   :  { %1155 = vmatprep.subr.bf16.mxu0 %v2836_v35  ;;  %2251 = vmatprep.subr.bf16.mxu1 %v3552_v58 }
 0x285   :  { %1156 = vmatpush1.bf16.msra.mxu0 %v2845_v37  ;;  %2252 = vmatpush3.bf16.msra.mxu1 %v2925_v51 }
 0x286   :  { %1157 = vmatprep.subr.bf16.mxu0 %v2851_v38  ;;  %2253 = vmatprep.subr.bf16.mxu1 %v3552_v58 }
 0x289   :  { %1158 = vmatpush1.bf16.msra.mxu0 %v2863_v40  ;;  %2254 = vmatpush3.bf16.msra.mxu1 %v2939_v54 }
 0x28a   :  { %1159 = vmatprep.subr.bf16.mxu0 %v2869_v41  ;;  %2255 = vmatprep.subr.bf16.mxu1 %v3552_v58 }
 0x28d   :  { %1160 = vmatpush1.bf16.msra.mxu0 %v2885_v45  ;;  %2256 = vmatpush3.bf16.msra.mxu1 %v2946_v55 }
 0x28e   :  { %1161 = vmatprep.subr.bf16.mxu0 %v2892_v46  ;;  %2257 = vmatprep.subr.bf16.mxu1 %v3552_v58 }
 0x291   :  { %1162 = vmatpush1.bf16.msra.mxu0 %v2905_v48  ;;  %2258 = vmatpush3.bf16.msra.mxu1 %v2957_v57 }
 0x292   :  { %1293 = vmatprep.subr.bf16.mxu0 %v2772_v22  ;;  %2263 = vmatprep.subr.bf16.mxu1 %v3552_v58 }
 0x347   :  { %v1035_v52 = vpop.f32.mrb[8].mxu0  ;;  %v1078_v2 = vpop.f32.mrb[24].mxu1 }
 0x348   :  { %v2351_v27 = vadd.f32 %v1035_v52, %v3064_v9  ;;  %v1037_v49 = vpop.f32.mrb[9].mxu0  ;;  %v2241_v53 = vpop.f32.mrb[25].mxu1  ;;  %v1113_v7 = vadd.f32 %v3075_v0, %v1078_v2 }
 0x349   :  { %v1039_v1 = vpop.f32.mrb[10].mxu0  ;;  %v1081_v32 = vpop.f32.mrb[26].mxu1  ;;  %v2352_v13 = vadd.f32 %v1037_v49, %v3068_v36 }
 0x34a   :  { %v1952_v3 = vmul.f32 -1.442695, %v2351_v27  ;;  %v2353_v6 = vadd.f32 %v1039_v1, %v3064_v9  ;;  %v1041_v11 = vpop.f32.mrb[11].mxu0  ;;  %v2242_v62 = vpop.f32.mrb[27].mxu1  ;;  %v1114_v49 = vadd.f32 %v3075_v0, %v1081_v32 }
 0x34b   :  { %v2354_v5 = vadd.f32 %v1041_v11, %v3068_v36  ;;  %v1954_v15 = vmul.f32 -1.442695, %v2352_v13 }
 0x34c   :  { %2522 = vpow2.f32 %v1952_v3  ;;  %v1953_v60 = vmul.f32 -1.442695, %v2353_v6 }
 0x34d   :  { %v1955_v63 = vmul.f32 -1.442695, %v2354_v5 }
 0x34e   :  { %2524 = vpow2.f32 %v1953_v60 }
 0x34f   :  { %2526 = vpow2.f32 %v1954_v15 }
 0x356   :  { %v2523_v21 = vpop.eup %2522 }
 0x357   :  { %v1093_v19 = vadd.f32 1.0, %v2523_v21 }
 0x358   :  { %v2525_v61 = vpop.eup %2524 }
 0x359   :  { %2528 = vrcp.f32 %v1093_v19  ;;  %v1094_v17 = vadd.f32 1.0, %v2525_v61  ;;  %v2527_v8 = vpop.eup %2526 }
 0x35a   :  { %2530 = vpow2.f32 %v1955_v63  ;;  %v1107_v3 = vadd.f32 1.0, %v2527_v8 }
 0x35b   :  { %2532 = vrcp.f32 %v1094_v17 }
 0x363   :  { %v2529_v52 = vpop.eup %2528 }
 0x364   :  { %v2531_v27 = vpop.eup %2530  ;;  %v1115_v53 = vmul.f32 %v2529_v52, %v1113_v7 }
 0x365   :  { %v2533_v1 = vpop.eup %2532  ;;  %v1108_v60 = vadd.f32 1.0, %v2531_v27 }
 0x366   :  { %v1117_v6 = vadd.f32 %v1115_v53, %v3032_v12  ;;  %v1116_v11 = vmul.f32 %v2533_v1, %v1114_v49 }
 0x368   :  { %2534 = vtanh.f32 %v1117_v6  ;;  %v1118_v62 = vadd.f32 %v1116_v11, %v3038_v16 }
 0x369   :  { %2536 = vrcp.f32 %v1107_v3 }
 0x36a   :  { %2538 = vtanh.f32 %v1118_v62 }
 0x36b   :  { %2540 = vrcp.f32 %v1108_v60 }
 0x372   :  { %v2535_v13 = vpop.eup %2534 }
 0x373   :  { %v2537_v5 = vpop.eup %2536  ;;  %v1121_v2 = vsub.f32 %v3139_v42, %v2535_v13 }
 0x374   :  { %v2539_v15 = vpop.eup %2538 }
 0x375   :  { %v1122_v21 = vsub.f32 %v3141_v4, %v2539_v15  ;;  %v1123_v32 = vmul.f32 %v2537_v5, %v1121_v2  ;;  %v2541_v63 = vpop.eup %2540 }
 0x377   :  { %v1124_v19 = vmul.f32 %v2541_v63, %v1122_v21  ;;  %v3193_v61 = vadd.f32 %v2535_v13, %v1123_v32 }
 0x379   :  { %v3195_v12 = vadd.f32 %v2539_v15, %v1124_v19 }
 0x37b   :  { %v1127_v16 = vpack.c.bf16 %v3195_v12, %v3193_v61 }
 0x37d   :  { %2057 = vst [vmem:[%s3546_s6 + $0x10] sm:$0xff] %v1127_v16   ;;  %1180 = vmatmul.mubr.bf16.vlgmr.msra.gmra.mrb[12].mxu0 %v1127_v16  ;;  %2260 = vmatmul.mubr.bf16.vlgmr.msra.gmra.mrb[28].mxu1 %v1127_v16 }
 0x37e   :  { %1294 = vmatpush1.bf16.msra.mxu0 %v2777_v23  ;;  %2264 = vmatpush3.bf16.msra.mxu1 %v2856_v39 }
 0x37f   :  { %1295 = vmatprep.subr.bf16.mxu0 %v2782_v24  ;;  %2265 = vmatprep.subr.bf16.mxu1 %v3552_v58 }
 0x380   :  { %1325 = vmatprep.mubr.bf16.mxu0 %v3553_v59  ;;  %2279 = vmatprep.mubr.msk.bf16.mxu1 %vm2669_vm0, %v3552_v58 }
 0x382   :  { %1296 = vmatpush1.bf16.msra.mxu0 %v2791_v26  ;;  %2266 = vmatpush3.bf16.msra.mxu1 %v2879_v44 }
 0x383   :  { %1297 = vmatprep.subr.bf16.mxu0 %v2802_v28  ;;  %2267 = vmatprep.subr.bf16.mxu1 %v3552_v58 }
 0x386   :  { %1298 = vmatpush1.bf16.msra.mxu0 %v2811_v30  ;;  %2268 = vmatpush3.bf16.msra.mxu1 %v2898_v47 }
 0x387   :  { %1299 = vmatprep.subr.bf16.mxu0 %v2816_v31  ;;  %2269 = vmatprep.subr.bf16.mxu1 %v3552_v58 }
 0x38a   :  { %1300 = vmatpush1.bf16.msra.mxu0 %v2825_v33  ;;  %2270 = vmatpush3.bf16.msra.mxu1 %v2916_v50 }
 0x38b   :  { %1301 = vmatprep.subr.bf16.mxu0 %v2836_v35  ;;  %2271 = vmatprep.subr.bf16.mxu1 %v3552_v58 }
 0x38e   :  { %1302 = vmatpush1.bf16.msra.mxu0 %v2845_v37  ;;  %2272 = vmatpush3.bf16.msra.mxu1 %v2925_v51 }
 0x38f   :  { %1303 = vmatprep.subr.bf16.mxu0 %v2851_v38  ;;  %2273 = vmatprep.subr.bf16.mxu1 %v3552_v58 }
 0x392   :  { %1304 = vmatpush1.bf16.msra.mxu0 %v2863_v40  ;;  %2274 = vmatpush3.bf16.msra.mxu1 %v2939_v54 }
 0x393   :  { %1305 = vmatprep.subr.bf16.mxu0 %v2869_v41  ;;  %2275 = vmatprep.subr.bf16.mxu1 %v3552_v58 }
 0x396   :  { %1306 = vmatpush1.bf16.msra.mxu0 %v2885_v45  ;;  %2276 = vmatpush3.bf16.msra.mxu1 %v2946_v55 }
 0x397   :  { %1307 = vmatprep.subr.bf16.mxu0 %v2892_v46  ;;  %2277 = vmatprep.subr.bf16.mxu1 %v3552_v58 }
 0x39a   :  { %1308 = vmatpush1.bf16.msra.mxu0 %v2905_v48  ;;  %2278 = vmatpush3.bf16.msra.mxu1 %v2957_v57 }
 0x39b   :  { %1439 = vmatprep.subr.bf16.mxu0 %v2772_v22  ;;  %2283 = vmatprep.subr.bf16.mxu1 %v3552_v58 }
 0x450   :  { %v1181_v23 = vpop.f32.mrb[12].mxu0  ;;  %v1224_v24 = vpop.f32.mrb[28].mxu1 }
 0x451   :  { %v2355_v26 = vadd.f32 %v1181_v23, %v3064_v9  ;;  %v1183_v28 = vpop.f32.mrb[13].mxu0  ;;  %v2261_v30 = vpop.f32.mrb[29].mxu1  ;;  %v1259_v62 = vadd.f32 %v3075_v0, %v1224_v24 }
 0x452   :  { %v1185_v31 = vpop.f32.mrb[14].mxu0  ;;  %v1227_v33 = vpop.f32.mrb[30].mxu1  ;;  %v2356_v22 = vadd.f32 %v1183_v28, %v3068_v36 }
 0x453   :  { %v1960_v42 = vmul.f32 -1.442695, %v2355_v26  ;;  %v2357_v4 = vadd.f32 %v1185_v31, %v3064_v9  ;;  %v1187_v17 = vpop.f32.mrb[15].mxu0  ;;  %v2262_v8 = vpop.f32.mrb[31].mxu1  ;;  %v1260_v2 = vadd.f32 %v3075_v0, %v1227_v33 }
 0x454   :  { %v2358_v52 = vadd.f32 %v1187_v17, %v3068_v36  ;;  %v1962_v27 = vmul.f32 -1.442695, %v2356_v22  ;;  %v3276_v17 = vld [vmem:[%s3542_s4 + $0x18] ss:$12 sps:$4 sm:$0xff]   ;;  %v3290_v8 = vld [vmem:[%s3542_s4 + $0x30] ss:$12 sps:$4 sm:$0xff]  }
 0x455   :  { %2542 = vpow2.f32 %v1960_v42  ;;  %v1961_v7 = vmul.f32 -1.442695, %v2357_v4 }
 0x456   :  { %v1963_v49 = vmul.f32 -1.442695, %v2358_v52 }
 0x457   :  { %2544 = vpow2.f32 %v1961_v7  ;;  %v3304_v7 = vld [vmem:[%s3542_s4 + $0x48] ss:$12 sps:$4 sm:$0xff]  }
 0x458   :  { %2546 = vpow2.f32 %v1962_v27 }
 0x45f   :  { %v2543_v53 = vpop.eup %2542 }
 0x460   :  { %v1239_v1 = vadd.f32 1.0, %v2543_v53 }
 0x461   :  { %v2545_v3 = vpop.eup %2544 }
 0x462   :  { %2548 = vrcp.f32 %v1239_v1  ;;  %v1240_v6 = vadd.f32 1.0, %v2545_v3  ;;  %v2547_v11 = vpop.eup %2546 }
 0x463   :  { %2550 = vpow2.f32 %v1963_v49  ;;  %v1253_v21 = vadd.f32 1.0, %v2547_v11 }
 0x464   :  { %2552 = vrcp.f32 %v1240_v6 }
 0x46c   :  { %v2549_v60 = vpop.eup %2548 }
 0x46d   :  { %v2551_v13 = vpop.eup %2550  ;;  %v1261_v5 = vmul.f32 %v2549_v60, %v1259_v62 }
 0x46e   :  { %v2553_v15 = vpop.eup %2552  ;;  %v1254_v16 = vadd.f32 1.0, %v2551_v13 }
 0x46f   :  { %v1263_v32 = vadd.f32 %v1261_v5, %v3029_v10  ;;  %v1262_v63 = vmul.f32 %v2553_v15, %v1260_v2 }
 0x471   :  { %2554 = vtanh.f32 %v1263_v32  ;;  %v1264_v19 = vadd.f32 %v1262_v63, %v3035_v14 }
 0x472   :  { %2556 = vrcp.f32 %v1253_v21 }
 0x473   :  { %2558 = vtanh.f32 %v1264_v19 }
 0x474   :  { %2560 = vrcp.f32 %v1254_v16 }
 0x47b   :  { %v2555_v23 = vpop.eup %2554 }
 0x47c   :  { %v2557_v26 = vpop.eup %2556  ;;  %v1267_v24 = vsub.f32 %v3193_v61, %v2555_v23  ;;  %v3259_v61 = vld [vmem:[%s3542_s4] ss:$12 sps:$4 sm:$0xff]  }
 0x47d   :  { %v2559_v28 = vpop.eup %2558 }
 0x47e   :  { %v1268_v30 = vsub.f32 %v3195_v12, %v2559_v28  ;;  %v1269_v31 = vmul.f32 %v2557_v26, %v1267_v24  ;;  %v2561_v33 = vpop.eup %2560  ;;  %v3266_v12 = vld [vmem:[%s3542_s4 + $0x1c] ss:$12 sps:$4 sm:$0xff]  }
 0x480   :  { %v1270_v42 = vmul.f32 %v2561_v33, %v1268_v30  ;;  %v3247_v4 = vadd.f32 %v2555_v23, %v1269_v31 }
 0x482   :  { %v3249_v10 = vadd.f32 %v2559_v28, %v1270_v42 }
 0x484   :  { %v1273_v14 = vpack.c.bf16 %v3249_v10, %v3247_v4 }
 0x486   :  { %2058 = vst [vmem:[%s3546_s6 + $0x18] sm:$0xff] %v1273_v14   ;;  %1326 = vmatmul.mubr.bf16.vlgmr.msra.gmra.mrb[16].mxu0 %v1273_v14  ;;  %2280 = vmatmul.mubr.bf16.vlgmr.msra.gmra.mrb[32].mxu1 %v1273_v14  ;;  %v3375_v14 = vld [vmem:[%s3542_s4 + $0x38] ss:$12 sps:$4 sm:$0xff]  }
 0x487   :  { %1440 = vmatpush1.bf16.msra.mxu0 %v3259_v61  ;;  %2284 = vmatpush3.bf16.msra.mxu1 %v2856_v39  ;;  %v3283_v39 = vld [vmem:[%s3542_s4 + $0x34] ss:$12 sps:$4 sm:$0xff]  }
 0x488   :  { %1441 = vmatprep.subr.bf16.mxu0 %v3266_v12  ;;  %2285 = vmatprep.subr.bf16.mxu1 %v3552_v58 }
 0x489   :  { %1471 = vmatprep.mubr.bf16.mxu0 %v3553_v59  ;;  %2299 = vmatprep.mubr.msk.bf16.mxu1 %vm2669_vm0, %v3552_v58 }
 0x48b   :  { %1442 = vmatpush1.bf16.msra.mxu0 %v3276_v17  ;;  %2286 = vmatpush3.bf16.msra.mxu1 %v2879_v44  ;;  %v3297_v44 = vld [vmem:[%s3542_s4 + $0x4c] ss:$12 sps:$4 sm:$0xff]  }
 0x48c   :  { %1443 = vmatprep.subr.bf16.mxu0 %v3283_v39  ;;  %2287 = vmatprep.subr.bf16.mxu1 %v3552_v58 }
 0x48f   :  { %1444 = vmatpush1.bf16.msra.mxu0 %v3290_v8  ;;  %2288 = vmatpush3.bf16.msra.mxu1 %v2898_v47 }
 0x490   :  { %1445 = vmatprep.subr.bf16.mxu0 %v3297_v44  ;;  %2289 = vmatprep.subr.bf16.mxu1 %v3552_v58 }
 0x493   :  { %1446 = vmatpush1.bf16.msra.mxu0 %v3304_v7  ;;  %2290 = vmatpush3.bf16.msra.mxu1 %v2916_v50 }
 0x494   :  { %1447 = vmatprep.subr.bf16.mxu0 %v2836_v35  ;;  %2291 = vmatprep.subr.bf16.mxu1 %v3552_v58  ;;  %v3327_v35 = vld [vmem:[%s3542_s4 + $0x4] ss:$12 sps:$4 sm:$0xff]  }
 0x497   :  { %1448 = vmatpush1.bf16.msra.mxu0 %v2845_v37  ;;  %2292 = vmatpush3.bf16.msra.mxu1 %v2925_v51 }
 0x498   :  { %1449 = vmatprep.subr.bf16.mxu0 %v2851_v38  ;;  %2293 = vmatprep.subr.bf16.mxu1 %v3552_v58 }
 0x49b   :  { %1450 = vmatpush1.bf16.msra.mxu0 %v2863_v40  ;;  %2294 = vmatpush3.bf16.msra.mxu1 %v2939_v54 }
 0x49c   :  { %1451 = vmatprep.subr.bf16.mxu0 %v2869_v41  ;;  %2295 = vmatprep.subr.bf16.mxu1 %v3552_v58 }
 0x49f   :  { %1452 = vmatpush1.bf16.msra.mxu0 %v2885_v45  ;;  %2296 = vmatpush3.bf16.msra.mxu1 %v2946_v55 }
 0x4a0   :  { %1453 = vmatprep.subr.bf16.mxu0 %v2892_v46  ;;  %2297 = vmatprep.subr.bf16.mxu1 %v3552_v58 }
 0x4a3   :  { %1454 = vmatpush1.bf16.msra.mxu0 %v2905_v48  ;;  %2298 = vmatpush3.bf16.msra.mxu1 %v2957_v57 }
 0x4a4   :  { %1585 = vmatprep.subr.bf16.mxu0 %v3327_v35  ;;  %2303 = vmatprep.subr.bf16.mxu1 %v3552_v58 }
 0x559   :  { %v1327_v37 = vpop.f32.mrb[16].mxu0  ;;  %v1370_v38 = vpop.f32.mrb[32].mxu1 }
 0x55a   :  { %v2359_v40 = vadd.f32 %v1327_v37, %v3064_v9  ;;  %v1329_v41 = vpop.f32.mrb[17].mxu0  ;;  %v2281_v45 = vpop.f32.mrb[33].mxu1  ;;  %v1405_v11 = vadd.f32 %v3075_v0, %v1370_v38  ;;  %v3384_v37 = vld [vmem:[%s3542_s4 + $0x50] ss:$12 sps:$4 sm:$0xff]  }
 0x55b   :  { %v1331_v46 = vpop.f32.mrb[18].mxu0  ;;  %v1373_v47 = vpop.f32.mrb[34].mxu1  ;;  %v2360_v57 = vadd.f32 %v1329_v41, %v3068_v36  ;;  %v3390_v38 = vld [vmem:[%s3542_s4 + $0x64] ss:$12 sps:$4 sm:$0xff]   ;;  %v3403_v41 = vld [vmem:[%s3542_s4 + $0x68] ss:$12 sps:$4 sm:$0xff]  }
 0x55c   :  { %v1968_v48 = vmul.f32 -1.442695, %v2359_v40  ;;  %v2361_v50 = vadd.f32 %v1331_v46, %v3064_v9  ;;  %v1333_v51 = vpop.f32.mrb[19].mxu0  ;;  %v2282_v54 = vpop.f32.mrb[35].mxu1  ;;  %v1406_v5 = vadd.f32 %v3075_v0, %v1373_v47  ;;  %v3397_v40 = vld [vmem:[%s3542_s4 + $0x60] ss:$12 sps:$4 sm:$0xff]  }
 0x55d   :  { %v2362_v22 = vadd.f32 %v1333_v51, %v3068_v36  ;;  %v1970_v52 = vmul.f32 -1.442695, %v2360_v57  ;;  %v3409_v45 = vld [vmem:[%s3542_s4 + $0x7c] ss:$12 sps:$4 sm:$0xff]   ;;  %v3416_v46 = vld [vmem:[%s3542_s4 + $0x78] ss:$12 sps:$4 sm:$0xff]  }
 0x55e   :  { %2562 = vpow2.f32 %v1968_v48  ;;  %v1969_v55 = vmul.f32 -1.442695, %v2361_v50  ;;  %v3422_v47 = vld [vmem:[%s3542_s4 + $0x80] ss:$12 sps:$4 sm:$0xff]   ;;  %v3435_v50 = vld [vmem:[%s3542_s4 + $0x90] ss:$12 sps:$4 sm:$0xff]  }
 0x55f   :  { %v1971_v53 = vmul.f32 -1.442695, %v2362_v22  ;;  %v3428_v48 = vld [vmem:[%s3542_s4 + $0x94] ss:$12 sps:$4 sm:$0xff]   ;;  %v3441_v51 = vld [vmem:[%s3542_s4 + $0x98] ss:$12 sps:$4 sm:$0xff]  }
 0x560   :  { %2564 = vpow2.f32 %v1969_v55  ;;  %v3447_v54 = vld [vmem:[%s3542_s4 + $0xac] ss:$12 sps:$4 sm:$0xff]   ;;  %v3454_v55 = vld [vmem:[%s3542_s4 + $0xa8] ss:$12 sps:$4 sm:$0xff]   ;;  %v3460_v57 = vld [vmem:[%s3542_s4 + $0xb0] ss:$12 sps:$4 sm:$0xff]  }
 0x561   :  { %2566 = vpow2.f32 %v1970_v52 }
 0x568   :  { %v2563_v27 = vpop.eup %2562 }
 0x569   :  { %v1385_v49 = vadd.f32 1.0, %v2563_v27 }
 0x56a   :  { %v2565_v1 = vpop.eup %2564 }
 0x56b   :  { %2568 = vrcp.f32 %v1385_v49  ;;  %v1386_v3 = vadd.f32 1.0, %v2565_v1  ;;  %v2567_v6 = vpop.eup %2566 }
 0x56c   :  { %2570 = vpow2.f32 %v1971_v53  ;;  %v1399_v15 = vadd.f32 1.0, %v2567_v6 }
 0x56d   :  { %2572 = vrcp.f32 %v1386_v3 }
 0x575   :  { %v2569_v62 = vpop.eup %2568 }
 0x576   :  { %v2571_v60 = vpop.eup %2570  ;;  %v1407_v13 = vmul.f32 %v2569_v62, %v1405_v11 }
 0x577   :  { %v2573_v2 = vpop.eup %2572  ;;  %v1400_v19 = vadd.f32 1.0, %v2571_v60 }
 0x578   :  { %v1409_v21 = vadd.f32 %v1407_v13, %v3044_v20  ;;  %v1408_v32 = vmul.f32 %v2573_v2, %v1406_v5 }
 0x57a   :  { %2574 = vtanh.f32 %v1409_v21  ;;  %v1410_v63 = vadd.f32 %v1408_v32, %v3050_v29 }
 0x57b   :  { %2576 = vrcp.f32 %v1399_v15 }
 0x57c   :  { %2578 = vtanh.f32 %v1410_v63 }
 0x57d   :  { %2580 = vrcp.f32 %v1400_v19 }
 0x584   :  { %v2575_v16 = vpop.eup %2574 }
 0x585   :  { %v2577_v23 = vpop.eup %2576  ;;  %v1413_v26 = vsub.f32 %v3247_v4, %v2575_v16  ;;  %v3354_v4 = vld [vmem:[%s3542_s4 + $0x8] ss:$12 sps:$4 sm:$0xff]  }
 0x586   :  { %v2579_v24 = vpop.eup %2578 }
 0x587   :  { %v1414_v28 = vsub.f32 %v3249_v10, %v2579_v24  ;;  %v1415_v30 = vmul.f32 %v2577_v23, %v1413_v26  ;;  %v2581_v31 = vpop.eup %2580  ;;  %v3366_v10 = vld [vmem:[%s3542_s4 + $0x20] ss:$12 sps:$4 sm:$0xff]  }
 0x589   :  { %v1416_v33 = vmul.f32 %v2581_v31, %v1414_v28  ;;  %v3341_v42 = vadd.f32 %v2575_v16, %v1415_v30 }
 0x58b   :  { %v3343_v20 = vadd.f32 %v2579_v24, %v1416_v33 }
 0x58d   :  { %v1419_v29 = vpack.c.bf16 %v3343_v20, %v3341_v42 }
 0x58f   :  { %2059 = vst [vmem:[%s3546_s6 + $0x20] sm:$0xff] %v1419_v29   ;;  %1472 = vmatmul.mubr.bf16.vlgmr.msra.gmra.mrb[20].mxu0 %v1419_v29  ;;  %2300 = vmatmul.mubr.bf16.vlgmr.msra.gmra.mrb[36].mxu1 %v1419_v29 }
 0x590   :  { %1586 = vmatpush1.bf16.msra.mxu0 %v3259_v61  ;;  %2304 = vmatpush3.bf16.msra.mxu1 %v3354_v4 }
 0x591   :  { %1587 = vmatprep.subr.bf16.mxu0 %v3266_v12  ;;  %2305 = vmatprep.subr.bf16.mxu1 %v3552_v58 }
 0x592   :  { %1617 = vmatprep.mubr.bf16.mxu0 %v3553_v59  ;;  %2319 = vmatprep.mubr.msk.bf16.mxu1 %vm2669_vm0, %v3552_v58 }
 0x594   :  { %1588 = vmatpush1.bf16.msra.mxu0 %v3276_v17  ;;  %2306 = vmatpush3.bf16.msra.mxu1 %v3366_v10 }
 0x595   :  { %1589 = vmatprep.subr.bf16.mxu0 %v3283_v39  ;;  %2307 = vmatprep.subr.bf16.mxu1 %v3552_v58 }
 0x598   :  { %1590 = vmatpush1.bf16.msra.mxu0 %v3290_v8  ;;  %2308 = vmatpush3.bf16.msra.mxu1 %v3375_v14 }
 0x599   :  { %1591 = vmatprep.subr.bf16.mxu0 %v3297_v44  ;;  %2309 = vmatprep.subr.bf16.mxu1 %v3552_v58 }
 0x59c   :  { %1592 = vmatpush1.bf16.msra.mxu0 %v3304_v7  ;;  %2310 = vmatpush3.bf16.msra.mxu1 %v3384_v37 }
 0x59d   :  { %1593 = vmatprep.subr.bf16.mxu0 %v3390_v38  ;;  %2311 = vmatprep.subr.bf16.mxu1 %v3552_v58 }
 0x5a0   :  { %1594 = vmatpush1.bf16.msra.mxu0 %v3397_v40  ;;  %2312 = vmatpush3.bf16.msra.mxu1 %v3403_v41 }
 0x5a1   :  { %1595 = vmatprep.subr.bf16.mxu0 %v3409_v45  ;;  %2313 = vmatprep.subr.bf16.mxu1 %v3552_v58 }
 0x5a4   :  { %1596 = vmatpush1.bf16.msra.mxu0 %v3416_v46  ;;  %2314 = vmatpush3.bf16.msra.mxu1 %v3422_v47 }
 0x5a5   :  { %1597 = vmatprep.subr.bf16.mxu0 %v3428_v48  ;;  %2315 = vmatprep.subr.bf16.mxu1 %v3552_v58 }
 0x5a8   :  { %1598 = vmatpush1.bf16.msra.mxu0 %v3435_v50  ;;  %2316 = vmatpush3.bf16.msra.mxu1 %v3441_v51 }
 0x5a9   :  { %1599 = vmatprep.subr.bf16.mxu0 %v3447_v54  ;;  %2317 = vmatprep.subr.bf16.mxu1 %v3552_v58 }
 0x5ac   :  { %1600 = vmatpush1.bf16.msra.mxu0 %v3454_v55  ;;  %2318 = vmatpush3.bf16.msra.mxu1 %v3460_v57 }
 0x5ad   :  { %1731 = vmatprep.subr.bf16.mxu0 %v3327_v35  ;;  %2323 = vmatprep.subr.bf16.mxu1 %v3552_v58 }
 0x662   :  { %v1473_v22 = vpop.f32.mrb[20].mxu0  ;;  %v1516_v52 = vpop.f32.mrb[36].mxu1 }
 0x663   :  { %v2363_v27 = vadd.f32 %v1473_v22, %v3064_v9  ;;  %v1475_v53 = vpop.f32.mrb[21].mxu0  ;;  %v2301_v49 = vpop.f32.mrb[37].mxu1  ;;  %v1551_v23 = vadd.f32 %v3075_v0, %v1516_v52 }
 0x664   :  { %v1477_v1 = vpop.f32.mrb[22].mxu0  ;;  %v1519_v3 = vpop.f32.mrb[38].mxu1  ;;  %v2364_v35 = vadd.f32 %v1475_v53, %v3068_v36 }
 0x665   :  { %v1976_v6 = vmul.f32 -1.442695, %v2363_v27  ;;  %v2365_v11 = vadd.f32 %v1477_v1, %v3064_v9  ;;  %v1479_v62 = vpop.f32.mrb[23].mxu0  ;;  %v2302_v60 = vpop.f32.mrb[39].mxu1  ;;  %v1552_v30 = vadd.f32 %v3075_v0, %v1519_v3 }
 0x666   :  { %v2366_v5 = vadd.f32 %v1479_v62, %v3068_v36  ;;  %v1978_v2 = vmul.f32 -1.442695, %v2364_v35 }
 0x667   :  { %2582 = vpow2.f32 %v1976_v6  ;;  %v1977_v13 = vmul.f32 -1.442695, %v2365_v11 }
 0x668   :  { %v1979_v21 = vmul.f32 -1.442695, %v2366_v5 }
 0x669   :  { %2584 = vpow2.f32 %v1977_v13 }
 0x66a   :  { %2586 = vpow2.f32 %v1978_v2 }
 0x671   :  { %v2583_v15 = vpop.eup %2582 }
 0x672   :  { %v1531_v32 = vadd.f32 1.0, %v2583_v15 }
 0x673   :  { %v2585_v63 = vpop.eup %2584 }
 0x674   :  { %2588 = vrcp.f32 %v1531_v32  ;;  %v1532_v19 = vadd.f32 1.0, %v2585_v63  ;;  %v2587_v16 = vpop.eup %2586 }
 0x675   :  { %2590 = vpow2.f32 %v1979_v21  ;;  %v1545_v33 = vadd.f32 1.0, %v2587_v16 }
 0x676   :  { %2592 = vrcp.f32 %v1532_v19 }
 0x67e   :  { %v2589_v26 = vpop.eup %2588 }
 0x67f   :  { %v2591_v24 = vpop.eup %2590  ;;  %v1553_v28 = vmul.f32 %v2589_v26, %v1551_v23 }
 0x680   :  { %v2593_v31 = vpop.eup %2592  ;;  %v1546_v53 = vadd.f32 1.0, %v2591_v24 }
 0x681   :  { %v1555_v29 = vadd.f32 %v1553_v28, %v3041_v18  ;;  %v1554_v22 = vmul.f32 %v2593_v31, %v1552_v30 }
 0x683   :  { %2594 = vtanh.f32 %v1555_v29  ;;  %v1556_v27 = vadd.f32 %v1554_v22, %v3047_v25 }
 0x684   :  { %2596 = vrcp.f32 %v1545_v33 }
 0x685   :  { %2598 = vtanh.f32 %v1556_v27 }
 0x686   :  { %2600 = vrcp.f32 %v1546_v53 }
 0x68d   :  { %v2595_v49 = vpop.eup %2594 }
 0x68e   :  { %v2597_v1 = vpop.eup %2596  ;;  %v1559_v52 = vsub.f32 %v3341_v42, %v2595_v49 }
 0x68f   :  { %v2599_v6 = vpop.eup %2598 }
 0x690   :  { %v1560_v11 = vsub.f32 %v3343_v20, %v2599_v6  ;;  %v1561_v0 = vmul.f32 %v2597_v1, %v1559_v52  ;;  %v2601_v3 = vpop.eup %2600 }
 0x692   :  { %v1562_v62 = vmul.f32 %v2601_v3, %v1560_v11  ;;  %v3475_v60 = vadd.f32 %v2595_v49, %v1561_v0 }
 0x694   :  { %v3477_v18 = vadd.f32 %v2599_v6, %v1562_v62 }
 0x696   :  { %v1565_v25 = vpack.c.bf16 %v3477_v18, %v3475_v60 }
 0x698   :  { %2060 = vst [vmem:[%s3546_s6 + $0x28] sm:$0xff] %v1565_v25   ;;  %1618 = vmatmul.mubr.bf16.vlgmr.msra.gmra.mrb[24].mxu0 %v1565_v25  ;;  %2320 = vmatmul.mubr.bf16.vlgmr.msra.gmra.mrb[40].mxu1 %v1565_v25 }
 0x699   :  { %1732 = vmatpush1.bf16.msra.mxu0 %v3259_v61  ;;  %2324 = vmatpush3.bf16.msra.mxu1 %v3354_v4 }
 0x69a   :  { %1733 = vmatprep.subr.bf16.mxu0 %v3266_v12  ;;  %2325 = vmatprep.subr.bf16.mxu1 %v3552_v58 }
 0x69b   :  { %1763 = vmatprep.mubr.bf16.mxu0 %v3553_v59  ;;  %2339 = vmatprep.mubr.msk.bf16.mxu1 %vm2669_vm0, %v3552_v58 }
 0x69d   :  { %1734 = vmatpush1.bf16.msra.mxu0 %v3276_v17  ;;  %2326 = vmatpush3.bf16.msra.mxu1 %v3366_v10 }
 0x69e   :  { %1735 = vmatprep.subr.bf16.mxu0 %v3283_v39  ;;  %2327 = vmatprep.subr.bf16.mxu1 %v3552_v58 }
 0x6a1   :  { %1736 = vmatpush1.bf16.msra.mxu0 %v3290_v8  ;;  %2328 = vmatpush3.bf16.msra.mxu1 %v3375_v14 }
 0x6a2   :  { %1737 = vmatprep.subr.bf16.mxu0 %v3297_v44  ;;  %2329 = vmatprep.subr.bf16.mxu1 %v3552_v58 }
 0x6a5   :  { %1738 = vmatpush1.bf16.msra.mxu0 %v3304_v7  ;;  %2330 = vmatpush3.bf16.msra.mxu1 %v3384_v37 }
 0x6a6   :  { %1739 = vmatprep.subr.bf16.mxu0 %v3390_v38  ;;  %2331 = vmatprep.subr.bf16.mxu1 %v3552_v58 }
 0x6a9   :  { %1740 = vmatpush1.bf16.msra.mxu0 %v3397_v40  ;;  %2332 = vmatpush3.bf16.msra.mxu1 %v3403_v41 }
 0x6aa   :  { %1741 = vmatprep.subr.bf16.mxu0 %v3409_v45  ;;  %2333 = vmatprep.subr.bf16.mxu1 %v3552_v58 }
 0x6ad   :  { %1742 = vmatpush1.bf16.msra.mxu0 %v3416_v46  ;;  %2334 = vmatpush3.bf16.msra.mxu1 %v3422_v47 }
 0x6ae   :  { %1743 = vmatprep.subr.bf16.mxu0 %v3428_v48  ;;  %2335 = vmatprep.subr.bf16.mxu1 %v3552_v58  ;;  %v2666_v48 = vld [vmem:[%s3545_s5] ss:$0 sm:$0xff] }
 0x6b1   :  { %1744 = vmatpush1.bf16.msra.mxu0 %v3435_v50  ;;  %2336 = vmatpush3.bf16.msra.mxu1 %v3441_v51 }
 0x6b2   :  { %1745 = vmatprep.subr.bf16.mxu0 %v3447_v54  ;;  %2337 = vmatprep.subr.bf16.mxu1 %v3552_v58 }
 0x6b5   :  { %1746 = vmatpush1.bf16.msra.mxu0 %v3454_v55  ;;  %2338 = vmatpush3.bf16.msra.mxu1 %v3460_v57 }
 0x76b   :  { %v1619_v59 = vpop.f32.mrb[24].mxu0  ;;  %v1662_v61 = vpop.f32.mrb[40].mxu1 }
 0x76c   :  { %v2367_v12 = vadd.f32 %v1619_v59, %v3064_v9  ;;  %v1621_v17 = vpop.f32.mrb[25].mxu0  ;;  %v2321_v39 = vpop.f32.mrb[41].mxu1  ;;  %v1697_v50 = vadd.f32 %v2666_v48, %v1662_v61 }
 0x76d   :  { %v1623_v8 = vpop.f32.mrb[26].mxu0  ;;  %v1665_v44 = vpop.f32.mrb[42].mxu1  ;;  %v2368_v58 = vadd.f32 %v1621_v17, %v3068_v36 }
 0x76e   :  { %v1984_v7 = vmul.f32 -1.442695, %v2367_v12  ;;  %v2369_v42 = vadd.f32 %v1623_v8, %v3064_v9  ;;  %v1625_v20 = vpop.f32.mrb[27].mxu0  ;;  %v2322_v4 = vpop.f32.mrb[43].mxu1  ;;  %v1698_v57 = vadd.f32 %v2666_v48, %v1665_v44 }
 0x76f   :  { %v2370_v14 = vadd.f32 %v1625_v20, %v3068_v36  ;;  %v1986_v37 = vmul.f32 -1.442695, %v2368_v58 }
 0x770   :  { %2602 = vpow2.f32 %v1984_v7  ;;  %v1985_v10 = vmul.f32 -1.442695, %v2369_v42 }
 0x771   :  { %v1987_v40 = vmul.f32 -1.442695, %v2370_v14 }
 0x772   :  { %2604 = vpow2.f32 %v1985_v10  ;;  %v3554_v10 = vld [vmem:[#allocation4_spill] sm:$0xff] }
 0x773   :  { %2606 = vpow2.f32 %v1986_v37 }
 0x77a   :  { %v2603_v38 = vpop.eup %2602 }
 0x77b   :  { %v1677_v41 = vadd.f32 1.0, %v2603_v38 }
 0x77c   :  { %v2605_v45 = vpop.eup %2604 }
 0x77d   :  { %2608 = vrcp.f32 %v1677_v41  ;;  %v1678_v46 = vadd.f32 1.0, %v2605_v45  ;;  %v2607_v47 = vpop.eup %2606 }
 0x77e   :  { %2610 = vpow2.f32 %v1987_v40  ;;  %v1691_v35 = vadd.f32 1.0, %v2607_v47 }
 0x77f   :  { %2612 = vrcp.f32 %v1678_v46 }
 0x787   :  { %v2609_v51 = vpop.eup %2608 }
 0x788   :  { %v2611_v54 = vpop.eup %2610  ;;  %v1699_v55 = vmul.f32 %v2609_v51, %v1697_v50 }
 0x789   :  { %v2613_v13 = vpop.eup %2612  ;;  %v1692_v21 = vadd.f32 1.0, %v2611_v54 }
 0x78a   :  { %v1701_v5 = vadd.f32 %v1699_v55, %v3056_v43  ;;  %v1700_v2 = vmul.f32 %v2613_v13, %v1698_v57 }
 0x78c   :  { %2614 = vtanh.f32 %v1701_v5  ;;  %v1702_v15 = vadd.f32 %v1700_v2, %v3062_v56 }
 0x78d   :  { %2616 = vrcp.f32 %v1691_v35 }
 0x78e   :  { %2618 = vtanh.f32 %v1702_v15 }
 0x78f   :  { %2620 = vrcp.f32 %v1692_v21 }
 0x796   :  { %v2615_v32 = vpop.eup %2614 }
 0x797   :  { %v2617_v63 = vpop.eup %2616  ;;  %v1705_v19 = vsub.f32 %v3475_v60, %v2615_v32 }
 0x798   :  { %v2619_v16 = vpop.eup %2618 }
 0x799   :  { %v1706_v23 = vsub.f32 %v3477_v18, %v2619_v16  ;;  %v1707_v26 = vmul.f32 %v2617_v63, %v1705_v19  ;;  %v2621_v24 = vpop.eup %2620 }
 0x79b   :  { %v1708_v28 = vmul.f32 %v2621_v24, %v1706_v23  ;;  %v1709_v30 = vadd.f32 %v2615_v32, %v1707_v26 }
 0x79d   :  { %v1710_v43 = vadd.f32 %v2619_v16, %v1708_v28 }
 0x79f   :  { %v1711_v31 = vpack.c.bf16 %v1710_v43, %v1709_v30 }
 0x7a1   :  { %2061 = vst [vmem:[%s3546_s6 + $0x30] sm:$0xff] %v1711_v31   ;;  %1764 = vmatmul.mubr.bf16.vlgmr.msra.gmra.mrb[28].mxu0 %v1711_v31  ;;  %2340 = vmatmul.mubr.bf16.vlgmr.msra.gmra.mrb[44].mxu1 %v1711_v31 }
 0x874   :  { %v1765_v56 = vpop.f32.mrb[28].mxu0  ;;  %v1808_v33 = vpop.f32.mrb[44].mxu1 }
 0x875   :  { %v2371_v29 = vadd.f32 %v1765_v56, %v3064_v9  ;;  %v1767_v22 = vpop.f32.mrb[29].mxu0  ;;  %v2341_v27 = vpop.f32.mrb[45].mxu1  ;;  %v1843_v17 = vadd.f32 %v2666_v48, %v1808_v33 }
 0x876   :  { %v1769_v53 = vpop.f32.mrb[30].mxu0  ;;  %v1811_v49 = vpop.f32.mrb[46].mxu1  ;;  %v2372_v3 = vadd.f32 %v1767_v22, %v3068_v36 }
 0x877   :  { %v1992_v1 = vmul.f32 -1.442695, %v2371_v29  ;;  %v2373_v52 = vadd.f32 %v1769_v53, %v3064_v9  ;;  %v1771_v6 = vpop.f32.mrb[31].mxu0  ;;  %v2342_v11 = vpop.f32.mrb[47].mxu1  ;;  %v1844_v7 = vadd.f32 %v2666_v48, %v1811_v49 }
 0x878   :  { %v2374_v62 = vadd.f32 %v1771_v6, %v3068_v36  ;;  %v1994_v60 = vmul.f32 -1.442695, %v2372_v3 }
 0x879   :  { %2622 = vpow2.f32 %v1992_v1  ;;  %v1993_v0 = vmul.f32 -1.442695, %v2373_v52 }
 0x87a   :  { %v1995_v25 = vmul.f32 -1.442695, %v2374_v62 }
 0x87b   :  { %2624 = vpow2.f32 %v1993_v0 }
 0x87c   :  { %2626 = vpow2.f32 %v1994_v60 }
 0x883   :  { %v2623_v18 = vpop.eup %2622 }
 0x884   :  { %v1823_v59 = vadd.f32 1.0, %v2623_v18 }
 0x885   :  { %v2625_v61 = vpop.eup %2624 }
 0x886   :  { %2628 = vrcp.f32 %v1823_v59  ;;  %v1824_v12 = vadd.f32 1.0, %v2625_v61  ;;  %v2627_v9 = vpop.eup %2626 }
 0x887   :  { %2630 = vpow2.f32 %v1995_v25  ;;  %v1837_v20 = vadd.f32 1.0, %v2627_v9 }
 0x888   :  { %2632 = vrcp.f32 %v1824_v12 }
 0x890   :  { %v2629_v39 = vpop.eup %2628 }
 0x891   :  { %v2631_v8 = vpop.eup %2630  ;;  %v1845_v44 = vmul.f32 %v2629_v39, %v1843_v17 }
 0x892   :  { %v2633_v42 = vpop.eup %2632  ;;  %v1838_v14 = vadd.f32 1.0, %v2631_v8 }
 0x893   :  { %v1847_v36 = vadd.f32 %v1845_v44, %v3053_v34  ;;  %v1846_v4 = vmul.f32 %v2633_v42, %v1844_v7 }
 0x895   :  { %2634 = vtanh.f32 %v1847_v36  ;;  %v1848_v58 = vadd.f32 %v1846_v4, %v3554_v10 }
 0x896   :  { %2636 = vrcp.f32 %v1837_v20 }
 0x897   :  { %2638 = vtanh.f32 %v1848_v58 }
 0x898   :  { %2640 = vrcp.f32 %v1838_v14 }
 0x89f   :  { %v2635_v37 = vpop.eup %2634 }
 0x8a0   :  { %v2637_v38 = vpop.eup %2636  ;;  %v1851_v40 = vsub.f32 %v1709_v30, %v2635_v37 }
 0x8a1   :  { %v2639_v41 = vpop.eup %2638 }
 0x8a2   :  { %v1853_v45 = vmul.f32 %v2637_v38, %v1851_v40  ;;  %v1852_v46 = vsub.f32 %v1710_v43, %v2639_v41  ;;  %v2641_v47 = vpop.eup %2640 }
 0x8a4   :  { %v1855_v48 = vadd.f32 %v2635_v37, %v1853_v45  ;;  %v1854_v50 = vmul.f32 %v2641_v47, %v1852_v46 }
 0x8a6   :  { %v1856_v51 = vadd.f32 %v2639_v41, %v1854_v50 }
 0x8a8   :  { %v2054_v54 = vpack.c.bf16 %v1856_v51, %v1855_v48 }
 0x8aa   :  { %2062 = vst [vmem:[%s3546_s6 + $0x38] sm:$0xff] %v2054_v54  }

// kernel: multilayer_rnn_forward.3
= control target key start
LH: loop header
LB: loop body
LE: loop exit
PB: predicated region body
PF: predicated region fallthrough
CT: control target
= control target key end

     0   :  { %v3879_v1 = vmov 0   ;;  %v3881_v42 = vmov 0.0   ;;  %vm2918_vm0 = vmmov 0   ;;  %v88_v61 = vlaneseq  ;;  %s3870_s2 = inlined_call_operand.vmem [shape: bf16[128,384], index: 2, kind: input, shape index: {}]   ;;  %s3871_s1 = inlined_call_operand.vmem [shape: bf16[8,16,128], index: 1, kind: input, shape index: {}]   ;;  %s3872_s4 = inlined_call_operand.vmem [shape: bf16[128,384], index: 4, kind: input, shape index: {}]   ;;  %s3873_s0 = inlined_call_operand.vmem [shape: f32[16,128], index: 0, kind: input, shape index: {}]   ;;  %s3874_s3 = inlined_call_operand.vmem [shape: f32[1,384], index: 3, kind: input, shape index: {}]   ;;  %s3875_s5 = inlined_call_operand.vmem [shape: f32[1,128], index: 5, kind: input, shape index: {}]   ;;  %s3876_s6 = inlined_call_operand.vmem [shape: bf16[128,128], index: 6, kind: input, shape index: {}]   ;;  %s3877_s7 = inlined_call_operand.vmem [shape: f32[1,128], index: 7, kind: input, shape index: {}]   ;;  %s3878_s8 = inlined_call_operand.vmem [shape: bf16[8,16,128], index: 8, kind: output, shape index: {}]  }
   0x1   :  { %v2651_v0 = vld [vmem:[%s3870_s2 + $0x4] ss:$12 sps:$4 sm:$0xff]   ;;  %311 = vmatprep.mubr.bf16.mxu0 %v3879_v1  ;;  %v2653_v2 = vld [vmem:[%s3870_s2] ss:$12 sps:$4 sm:$0xff]   ;;  %v2654_v3 = vld [vmem:[%s3870_s2 + $0x1c] ss:$12 sps:$4 sm:$0xff]  }
   0x2   :  { %279 = vmatprep.subr.bf16.mxu0 %v2651_v0  ;;  %v2656_v4 = vld [vmem:[%s3870_s2 + $0x18] ss:$12 sps:$4 sm:$0xff]   ;;  %v2657_v5 = vld [vmem:[%s3870_s2 + $0x34] ss:$12 sps:$4 sm:$0xff]   ;;  %v2659_v6 = vld [vmem:[%s3870_s2 + $0x30] ss:$12 sps:$4 sm:$0xff]  }
   0x3   :  { %280 = vmatpush1.bf16.msra.mxu0 %v2653_v2  ;;  %v2660_v7 = vld [vmem:[%s3870_s2 + $0x4c] ss:$12 sps:$4 sm:$0xff]   ;;  %v2662_v8 = vld [vmem:[%s3870_s2 + $0x48] ss:$12 sps:$4 sm:$0xff]   ;;  %v2675_v9 = vld [vmem:[%s3871_s1] sm:$0xff]   ;;  %v89_v62 = vshrl.u32 %v88_v61, 7 }
   0x4   :  { %281 = vmatprep.subr.bf16.mxu0 %v2654_v3  ;;  %v2663_v10 = vld [vmem:[%s3870_s2 + $0x64] ss:$12 sps:$4 sm:$0xff]   ;;  %2376 = vmatprep.mubr.bf16.mxu1 %v2675_v9  ;;  %v2665_v11 = vld [vmem:[%s3870_s2 + $0x60] ss:$12 sps:$4 sm:$0xff]   ;;  %v2666_v12 = vld [vmem:[%s3870_s2 + $0x7c] ss:$12 sps:$4 sm:$0xff]  }
   0x5   :  { %v2668_v13 = vld [vmem:[%s3870_s2 + $0x78] ss:$12 sps:$4 sm:$0xff]   ;;  %v2688_v14 = vld [vmem:[%s3870_s2 + $0x8] ss:$12 sps:$4 sm:$0xff]   ;;  %v2692_v16 = vld [vmem:[%s3870_s2 + $0x20] ss:$12 sps:$4 sm:$0xff]  }
   0x6   :  { %v2669_v15 = vld [vmem:[%s3870_s2 + $0x94] ss:$12 sps:$4 sm:$0xff]   ;;  %2360 = vmatprep.subr.bf16.mxu1 %v2688_v14  ;;  %v2671_v17 = vld [vmem:[%s3870_s2 + $0x90] ss:$12 sps:$4 sm:$0xff]   ;;  %v2694_v18 = vld [vmem:[%s3870_s2 + $0x38] ss:$12 sps:$4 sm:$0xff]  }
   0x7   :  { %282 = vmatpush1.bf16.msra.mxu0 %v2656_v4  ;;  %2361 = vmatpush3.bf16.msra.mxu1 %v2688_v14  ;;  %v2672_v19 = vld [vmem:[%s3870_s2 + $0xac] ss:$12 sps:$4 sm:$0xff]   ;;  %v2674_v20 = vld [vmem:[%s3870_s2 + $0xa8] ss:$12 sps:$4 sm:$0xff]   ;;  %v2698_v21 = vld [vmem:[%s3870_s2 + $0x50] ss:$12 sps:$4 sm:$0xff]  }
   0x8   :  { %283 = vmatprep.subr.bf16.mxu0 %v2657_v5  ;;  %2362 = vmatprep.subr.bf16.mxu1 %v2692_v16  ;;  %v3031_v22 = vld [vmem:[%s3872_s4 + $0x4] ss:$12 sps:$4 sm:$0xff]   ;;  %v3036_v23 = vld [vmem:[%s3872_s4] ss:$12 sps:$4 sm:$0xff]   ;;  %v3041_v24 = vld [vmem:[%s3872_s4 + $0x1c] ss:$12 sps:$4 sm:$0xff]  }
   0x9   :  { %v2700_v25 = vld [vmem:[%s3870_s2 + $0x68] ss:$12 sps:$4 sm:$0xff]   ;;  %v3050_v26 = vld [vmem:[%s3872_s4 + $0x18] ss:$12 sps:$4 sm:$0xff]   ;;  %v2704_v27 = vld [vmem:[%s3870_s2 + $0x80] ss:$12 sps:$4 sm:$0xff]  }
   0xa   :  { %v3061_v28 = vld [vmem:[%s3872_s4 + $0x34] ss:$12 sps:$4 sm:$0xff]   ;;  %v2679_v29 = vld [vmem:[%s3871_s1 + $0x8] sm:$0xff]   ;;  %v3070_v30 = vld [vmem:[%s3872_s4 + $0x30] ss:$12 sps:$4 sm:$0xff]   ;;  %v98_v63 = vsub.s32 2, %v89_v62 }
   0xb   :  { %284 = vmatpush1.bf16.msra.mxu0 %v2659_v6  ;;  %2363 = vmatpush3.bf16.msra.mxu1 %v2692_v16  ;;  %v3075_v31 = vld [vmem:[%s3872_s4 + $0x4c] ss:$12 sps:$4 sm:$0xff]   ;;  %v3084_v33 = vld [vmem:[%s3872_s4 + $0x48] ss:$12 sps:$4 sm:$0xff]   ;;  %v2710_v34 = vld [vmem:[%s3870_s2 + $0xb0] ss:$12 sps:$4 sm:$0xff]  }
   0xc   :  { %285 = vmatprep.subr.bf16.mxu0 %v2660_v7  ;;  %2364 = vmatprep.subr.bf16.mxu1 %v2694_v18  ;;  %v2706_v32 = vld [vmem:[%s3870_s2 + $0x98] ss:$12 sps:$4 sm:$0xff]   ;;  %v2683_v36 = vld [vmem:[%s3871_s1 + $0x10] sm:$0xff]   ;;  %v3104_v37 = vld [vmem:[%s3872_s4 + $0x60] ss:$12 sps:$4 sm:$0xff]  }
   0xd   :  { %v3095_v35 = vld [vmem:[%s3872_s4 + $0x64] ss:$12 sps:$4 sm:$0xff]   ;;  %v3110_v38 = vld [vmem:[%s3872_s4 + $0x7c] ss:$12 sps:$4 sm:$0xff]   ;;  %v3128_v41 = vld [vmem:[%s3872_s4 + $0x94] ss:$12 sps:$4 sm:$0xff]  }
   0xe   :  { %v3115_v39 = vld [vmem:[%s3872_s4 + $0x8] ss:$12 sps:$4 sm:$0xff]   ;;  %v3122_v40 = vld [vmem:[%s3872_s4 + $0x78] ss:$12 sps:$4 sm:$0xff]   ;;  %v3138_v44 = vld [vmem:[%s3872_s4 + $0x20] ss:$12 sps:$4 sm:$0xff]  }
   0xf   :  { %286 = vmatpush1.bf16.msra.mxu0 %v2662_v8  ;;  %2365 = vmatpush3.bf16.msra.mxu1 %v2694_v18  ;;  %v2687_v43 = vld [vmem:[%s3871_s1 + $0x18] sm:$0xff]   ;;  %v3164_v48 = vld [vmem:[%s3872_s4 + $0xa8] ss:$12 sps:$4 sm:$0xff]   ;;  %v2693_v49 = vld [vmem:[%s3871_s1 + $0x20] sm:$0xff]  }
  0x10   :  { %287 = vmatprep.subr.bf16.mxu0 %v2663_v10  ;;  %2366 = vmatprep.subr.bf16.mxu1 %v2698_v21  ;;  %v3144_v45 = vld [vmem:[%s3872_s4 + $0x90] ss:$12 sps:$4 sm:$0xff]   ;;  %v3151_v46 = vld [vmem:[%s3872_s4 + $0xac] ss:$12 sps:$4 sm:$0xff]   ;;  %v3184_v51 = vld [vmem:[%s3872_s4 + $0x68] ss:$12 sps:$4 sm:$0xff]  }
  0x11   :  { %v3157_v47 = vld [vmem:[%s3872_s4 + $0x38] ss:$12 sps:$4 sm:$0xff]   ;;  %v3175_v50 = vld [vmem:[%s3872_s4 + $0x50] ss:$12 sps:$4 sm:$0xff]   ;;  %v2699_v52 = vld [vmem:[%s3871_s1 + $0x28] sm:$0xff]  }
  0x12   :  { %v2705_v53 = vld [vmem:[%s3871_s1 + $0x30] sm:$0xff]   ;;  %v3198_v54 = vld [vmem:[%s3872_s4 + $0x80] ss:$12 sps:$4 sm:$0xff]   ;;  %v3205_v55 = vld [vmem:[%s3872_s4 + $0x98] ss:$12 sps:$4 sm:$0xff]  }
  0x13   :  { %288 = vmatpush1.bf16.msra.mxu0 %v2665_v11  ;;  %2367 = vmatpush3.bf16.msra.mxu1 %v2698_v21  ;;  %v2711_v56 = vld [vmem:[%s3871_s1 + $0x38] sm:$0xff]   ;;  %v3224_v58 = vld [vmem:[%s3873_s0] sm:$0xff]  ;;  %v3229_v59 = vld [vmem:[%s3873_s0 + $0x8] sm:$0xff] }
  0x14   :  { %289 = vmatprep.subr.bf16.mxu0 %v2666_v12  ;;  %2368 = vmatprep.subr.bf16.mxu1 %v2700_v25  ;;  %v3216_v57 = vld [vmem:[%s3872_s4 + $0xb0] ss:$12 sps:$4 sm:$0xff]   ;;  %v587_v60 = vpack.c.bf16 %v3229_v59, %v3224_v58  ;;  %v86_v0 = vld [vmem:[%s3874_s3] sm:$0x7] }
  0x15   :  { %v3275_v2 = vrot.slane %v86_v0, %v98_v63 }
  0x17   :  { %290 = vmatpush1.bf16.msra.mxu0 %v2668_v13  ;;  %2369 = vmatpush3.bf16.msra.mxu1 %v2700_v25 }
  0x18   :  { %291 = vmatprep.subr.bf16.mxu0 %v2669_v15  ;;  %2370 = vmatprep.subr.bf16.mxu1 %v2704_v27 }
  0x1b   :  { %292 = vmatpush1.bf16.msra.mxu0 %v2671_v17  ;;  %2371 = vmatpush3.bf16.msra.mxu1 %v2704_v27 }
  0x1c   :  { %293 = vmatprep.subr.bf16.mxu0 %v2672_v19  ;;  %2372 = vmatprep.subr.bf16.mxu1 %v2706_v32 }
  0x1f   :  { %294 = vmatpush1.bf16.msra.mxu0 %v2674_v20  ;;  %2373 = vmatpush3.bf16.msra.mxu1 %v2706_v32 }
  0x20   :  { %716 = vmatprep.subr.bf16.mxu0 %v3031_v22  ;;  %2374 = vmatprep.subr.bf16.mxu1 %v2710_v34 }
  0x22   :  { %312 = vmatmul.mubr.bf16.vlgmr.msra.gmra.mrb[0].mxu0 %v2675_v9 }
  0x23   :  { %717 = vmatpush1.bf16.msra.mxu0 %v3036_v23  ;;  %321 = vmatprep.mubr.bf16.mxu0 %v3879_v1 }
  0x24   :  { %718 = vmatprep.subr.bf16.mxu0 %v3041_v24  ;;  %2375 = vmatpush3.bf16.msra.mxu1 %v2710_v34 }
  0x25   :  { %2392 = vmatprep.subr.bf16.mxu1 %v3881_v42 }
  0x27   :  { %719 = vmatpush1.bf16.msra.mxu0 %v3050_v26  ;;  %2377 = vmatmul.mubr.bf16.vlgmr.msra.gmra.mrb[0].mxu1 %v2679_v29 }
  0x28   :  { %720 = vmatprep.subr.bf16.mxu0 %v3061_v28  ;;  %2393 = vmatpush3.bf16.msra.mxu1 %v3115_v39 }
  0x29   :  { %2380 = vmatprep.mubr.bf16.mxu1 %v2683_v36  ;;  %2394 = vmatprep.subr.bf16.mxu1 %v3881_v42 }
  0x2a   :  { %322 = vmatmul.mubr.bf16.gmra.mrb[4].mxu0 %v2679_v29 }
  0x2b   :  { %331 = vmatprep.mubr.bf16.mxu0 %v3879_v1  ;;  %721 = vmatpush1.bf16.msra.mxu0 %v3070_v30 }
  0x2c   :  { %722 = vmatprep.subr.bf16.mxu0 %v3075_v31  ;;  %2395 = vmatpush3.bf16.msra.mxu1 %v3138_v44 }
  0x2d   :  { %2396 = vmatprep.subr.bf16.mxu1 %v3881_v42 }
  0x2f   :  { %723 = vmatpush1.bf16.msra.mxu0 %v3084_v33  ;;  %2381 = vmatmul.mubr.bf16.gmra.mrb[4].mxu1 %v2687_v43 }
  0x30   :  { %724 = vmatprep.subr.bf16.mxu0 %v3095_v35  ;;  %2397 = vmatpush3.bf16.msra.mxu1 %v3157_v47 }
  0x31   :  { %2384 = vmatprep.mubr.bf16.mxu1 %v2693_v49  ;;  %2398 = vmatprep.subr.bf16.mxu1 %v3881_v42 }
  0x32   :  { %332 = vmatmul.mubr.bf16.gmra.mrb[8].mxu0 %v2683_v36 }
  0x33   :  { %341 = vmatprep.mubr.bf16.mxu0 %v3879_v1  ;;  %725 = vmatpush1.bf16.msra.mxu0 %v3104_v37 }
  0x34   :  { %726 = vmatprep.subr.bf16.mxu0 %v3110_v38  ;;  %2399 = vmatpush3.bf16.msra.mxu1 %v3175_v50 }
  0x35   :  { %2400 = vmatprep.subr.bf16.mxu1 %v3881_v42 }
  0x37   :  { %727 = vmatpush1.bf16.msra.mxu0 %v3122_v40  ;;  %2385 = vmatmul.mubr.bf16.gmra.mrb[8].mxu1 %v2699_v52 }
  0x38   :  { %728 = vmatprep.subr.bf16.mxu0 %v3128_v41  ;;  %2401 = vmatpush3.bf16.msra.mxu1 %v3184_v51 }
  0x39   :  { %2388 = vmatprep.mubr.bf16.mxu1 %v2705_v53  ;;  %2402 = vmatprep.subr.bf16.mxu1 %v3881_v42 }
  0x3a   :  { %342 = vmatmul.mubr.bf16.gmra.mrb[12].mxu0 %v2687_v43 }
  0x3b   :  { %351 = vmatprep.mubr.bf16.mxu0 %v3879_v1  ;;  %729 = vmatpush1.bf16.msra.mxu0 %v3144_v45 }
  0x3c   :  { %730 = vmatprep.subr.bf16.mxu0 %v3151_v46  ;;  %2403 = vmatpush3.bf16.msra.mxu1 %v3198_v54 }
  0x3d   :  { %2404 = vmatprep.subr.bf16.mxu1 %v3881_v42 }
  0x3f   :  { %731 = vmatpush1.bf16.msra.mxu0 %v3164_v48  ;;  %2389 = vmatmul.mubr.bf16.gmra.mrb[12].mxu1 %v2711_v56 }
  0x40   :  { %853 = vmatprep.subr.bf16.mxu0 %v3031_v22  ;;  %2405 = vmatpush3.bf16.msra.mxu1 %v3205_v55 }
  0x41   :  { %2408 = vmatprep.mubr.msk.bf16.mxu1 %vm2918_vm0, %v3881_v42  ;;  %2406 = vmatprep.subr.bf16.mxu1 %v3881_v42 }
  0x42   :  { %352 = vmatmul.mubr.bf16.gmra.mrb[16].mxu0 %v2693_v49 }
  0x43   :  { %361 = vmatprep.mubr.bf16.mxu0 %v3879_v1 }
  0x44   :  { %2407 = vmatpush3.bf16.msra.mxu1 %v3216_v57 }
  0x45   :  { %2412 = vmatprep.subr.bf16.mxu1 %v3881_v42 }
  0x47   :  { %2409 = vmatmul.mubr.bf16.vlgmr.msra.gmra.mrb[16].mxu1 %v587_v60 }
  0x48   :  { %2413 = vmatpush3.bf16.msra.mxu1 %v3115_v39  ;;  %2428 = vmatprep.mubr.msk.bf16.mxu1 %vm2918_vm0, %v3881_v42 }
  0x49   :  { %2414 = vmatprep.subr.bf16.mxu1 %v3881_v42 }
  0x4a   :  { %362 = vmatmul.mubr.bf16.gmra.mrb[20].mxu0 %v2699_v52 }
  0x4b   :  { %371 = vmatprep.mubr.bf16.mxu0 %v3879_v1 }
  0x4c   :  { %2415 = vmatpush3.bf16.msra.mxu1 %v3138_v44 }
  0x4d   :  { %2416 = vmatprep.subr.bf16.mxu1 %v3881_v42 }
  0x50   :  { %2417 = vmatpush3.bf16.msra.mxu1 %v3157_v47 }
  0x51   :  { %2418 = vmatprep.subr.bf16.mxu1 %v3881_v42 }
  0x52   :  { %372 = vmatmul.mubr.bf16.gmra.mrb[24].mxu0 %v2705_v53 }
  0x53   :  { %381 = vmatprep.mubr.bf16.mxu0 %v3879_v1 }
  0x54   :  { %2419 = vmatpush3.bf16.msra.mxu1 %v3175_v50 }
  0x55   :  { %2420 = vmatprep.subr.bf16.mxu1 %v3881_v42 }
  0x58   :  { %2421 = vmatpush3.bf16.msra.mxu1 %v3184_v51 }
  0x59   :  { %2422 = vmatprep.subr.bf16.mxu1 %v3881_v42 }
  0x5a   :  { %382 = vmatmul.mubr.bf16.gmra.mrb[28].mxu0 %v2711_v56 }
  0x5b   :  { %748 = vmatprep.mubr.bf16.mxu0 %v3879_v1 }
  0x5c   :  { %2423 = vmatpush3.bf16.msra.mxu1 %v3198_v54 }
  0x5d   :  { %2424 = vmatprep.subr.bf16.mxu1 %v3881_v42 }
  0x60   :  { %2425 = vmatpush3.bf16.msra.mxu1 %v3205_v55 }
  0x61   :  { %2426 = vmatprep.subr.bf16.mxu1 %v3881_v42 }
  0x62   :  { %749 = vmatmul.mubr.bf16.vlgmr.msra.gmra.mrb[0].mxu0 %v587_v60 }
  0x63   :  { %854 = vmatpush1.bf16.msra.mxu0 %v3036_v23  ;;  %885 = vmatprep.mubr.bf16.mxu0 %v3879_v1 }
  0x64   :  { %855 = vmatprep.subr.bf16.mxu0 %v3041_v24  ;;  %2427 = vmatpush3.bf16.msra.mxu1 %v3216_v57 }
  0x65   :  { %2432 = vmatprep.subr.bf16.mxu1 %v3881_v42 }
  0x67   :  { %856 = vmatpush1.bf16.msra.mxu0 %v3050_v26 }
  0x68   :  { %857 = vmatprep.subr.bf16.mxu0 %v3061_v28 }
  0x6b   :  { %858 = vmatpush1.bf16.msra.mxu0 %v3070_v30 }
  0x6c   :  { %859 = vmatprep.subr.bf16.mxu0 %v3075_v31 }
  0x6f   :  { %860 = vmatpush1.bf16.msra.mxu0 %v3084_v33 }
  0x70   :  { %861 = vmatprep.subr.bf16.mxu0 %v3095_v35 }
  0x73   :  { %862 = vmatpush1.bf16.msra.mxu0 %v3104_v37 }
  0x74   :  { %863 = vmatprep.subr.bf16.mxu0 %v3110_v38 }
  0x77   :  { %864 = vmatpush1.bf16.msra.mxu0 %v3122_v40 }
  0x78   :  { %865 = vmatprep.subr.bf16.mxu0 %v3128_v41 }
  0x7b   :  { %866 = vmatpush1.bf16.msra.mxu0 %v3144_v45 }
  0x7c   :  { %867 = vmatprep.subr.bf16.mxu0 %v3151_v46 }
  0x7f   :  { %868 = vmatpush1.bf16.msra.mxu0 %v3164_v48 }
  0x80   :  { %991 = vmatprep.subr.bf16.mxu0 %v3031_v22 }
  0xfa   :  { %v2378_v3 = vpop.f32.mrb[0].mxu1 }
  0xfb   :  { %v3278_v4 = vadd.f32 %v2378_v3, %v3275_v2  ;;  %v3280_v5 = vpop.f32.mrb[1].mxu1 }
  0xfc   :  { %v2379_v6 = vpop.f32.mrb[2].mxu1 }
  0xfd   :  { %v3283_v7 = vadd.f32 %v2379_v6, %v3275_v2  ;;  %v3285_v8 = vpop.f32.mrb[3].mxu1  ;;  %v90_v6 = vsub.s32 0, %v89_v62 }
 0x102   :  { %v2382_v9 = vpop.f32.mrb[4].mxu1 }
 0x103   :  { %v3288_v10 = vadd.f32 %v2382_v9, %v3275_v2  ;;  %v442_v11 = vpop.f32.mrb[5].mxu1  ;;  %v3323_v9 = vrot.slane %v86_v0, %v90_v6 }
 0x104   :  { %v3291_v12 = vadd.f32 %v442_v11, %v3275_v2  ;;  %v2383_v13 = vpop.f32.mrb[6].mxu1 }
 0x105   :  { %v3294_v14 = vadd.f32 %v2383_v13, %v3275_v2  ;;  %v445_v15 = vpop.f32.mrb[7].mxu1 }
 0x106   :  { %v3297_v16 = vadd.f32 %v445_v15, %v3275_v2  ;;  %v94_v15 = vsub.s32 1, %v89_v62 }
 0x10a   :  { %v2386_v17 = vpop.f32.mrb[8].mxu1 }
 0x10b   :  { %v3300_v18 = vadd.f32 %v2386_v17, %v3275_v2  ;;  %v458_v19 = vpop.f32.mrb[9].mxu1 }
 0x10c   :  { %v3303_v20 = vadd.f32 %v458_v19, %v3275_v2  ;;  %v2387_v21 = vpop.f32.mrb[10].mxu1 }
 0x10d   :  { %v3306_v25 = vadd.f32 %v2387_v21, %v3275_v2  ;;  %v461_v27 = vpop.f32.mrb[11].mxu1 }
 0x10e   :  { %v3309_v29 = vadd.f32 %v461_v27, %v3275_v2 }
 0x112   :  { %v2390_v32 = vpop.f32.mrb[12].mxu1 }
 0x113   :  { %v3312_v34 = vadd.f32 %v2390_v32, %v3275_v2  ;;  %v474_v36 = vpop.f32.mrb[13].mxu1 }
 0x114   :  { %v3315_v43 = vadd.f32 %v474_v36, %v3275_v2  ;;  %v2391_v49 = vpop.f32.mrb[14].mxu1  ;;  %v3327_v36 = vrot.slane %v86_v0, %v94_v15  ;;  %v3334_v0 = vld [vmem:[%s3875_s5] ss:$0 sm:$0xff] }
 0x115   :  { %v3318_v52 = vadd.f32 %v2391_v49, %v3275_v2  ;;  %v477_v53 = vpop.f32.mrb[15].mxu1 }
 0x116   :  { %v3321_v56 = vadd.f32 %v477_v53, %v3275_v2 }
 0x117   :  { %3883 = vst [vmem:[#allocation5_spill] sm:$0xff] %v3318_v52 }
 0x11a   :  { %v793_v60 = vpop.f32.mrb[16].mxu1 }
 0x11b   :  { %v2410_v61 = vpop.f32.mrb[17].mxu1  ;;  %v828_v15 = vadd.f32 %v3334_v0, %v793_v60 }
 0x11c   :  { %v796_v63 = vpop.f32.mrb[18].mxu1 }
 0x11d   :  { %v2411_v3 = vpop.f32.mrb[19].mxu1 }
 0x135   :  { %v750_v11 = vpop.f32.mrb[0].mxu0 }
 0x136   :  { %v2584_v13 = vadd.f32 %v750_v11, %v3323_v9  ;;  %v752_v17 = vpop.f32.mrb[1].mxu0 }
 0x137   :  { %v754_v19 = vpop.f32.mrb[2].mxu0  ;;  %v2585_v53 = vadd.f32 %v752_v17, %v3327_v36 }
 0x138   :  { %v2136_v21 = vmul.f32 -1.442695, %v2584_v13  ;;  %v2586_v27 = vadd.f32 %v754_v19, %v3323_v9  ;;  %v756_v32 = vpop.f32.mrb[3].mxu0 }
 0x139   :  { %v2587_v61 = vadd.f32 %v756_v32, %v3327_v36  ;;  %v2138_v3 = vmul.f32 -1.442695, %v2585_v53 }
 0x13a   :  { %2731 = vpow2.f32 %v2136_v21  ;;  %v2137_v49 = vmul.f32 -1.442695, %v2586_v27  ;;  %v427_v27 = vadd.f32 %v3280_v5, %v3275_v2 }
 0x13b   :  { %v2139_v1 = vmul.f32 -1.442695, %v2587_v61 }
 0x13c   :  { %2733 = vpow2.f32 %v2137_v49  ;;  %v829_v49 = vadd.f32 %v3334_v0, %v796_v63 }
 0x13d   :  { %2735 = vpow2.f32 %v2138_v3 }
 0x144   :  { %v2732_v6 = vpop.eup %2731 }
 0x145   :  { %v808_v11 = vadd.f32 1.0, %v2732_v6 }
 0x146   :  { %v2734_v62 = vpop.eup %2733 }
 0x147   :  { %2737 = vrcp.f32 %v808_v11  ;;  %v809_v13 = vadd.f32 1.0, %v2734_v62  ;;  %v2736_v17 = vpop.eup %2735 }
 0x148   :  { %2739 = vpow2.f32 %v2139_v1  ;;  %v822_v61 = vadd.f32 1.0, %v2736_v17  ;;  %v430_v1 = vadd.f32 %v3285_v8, %v3275_v2 }
 0x149   :  { %2741 = vrcp.f32 %v809_v13 }
 0x151   :  { %v2738_v19 = vpop.eup %2737 }
 0x152   :  { %v2740_v21 = vpop.eup %2739  ;;  %v830_v32 = vmul.f32 %v2738_v19, %v828_v15 }
 0x153   :  { %v2742_v53 = vpop.eup %2741  ;;  %v823_v11 = vadd.f32 1.0, %v2740_v21 }
 0x154   :  { %v832_v3 = vadd.f32 %v830_v32, %v427_v27  ;;  %v831_v6 = vmul.f32 %v2742_v53, %v829_v49 }
 0x156   :  { %2743 = vtanh.f32 %v832_v3  ;;  %v833_v62 = vadd.f32 %v831_v6, %v430_v1 }
 0x157   :  { %2745 = vrcp.f32 %v822_v61 }
 0x158   :  { %2747 = vtanh.f32 %v833_v62 }
 0x159   :  { %2749 = vrcp.f32 %v823_v11 }
 0x160   :  { %v2744_v60 = vpop.eup %2743 }
 0x161   :  { %v2746_v13 = vpop.eup %2745  ;;  %v836_v5 = vsub.f32 %v3224_v58, %v2744_v60  ;;  %v3884_v58 = vmov 0.0  }
 0x162   :  { %v2748_v15 = vpop.eup %2747 }
 0x163   :  { %v837_v63 = vsub.f32 %v3229_v59, %v2748_v15  ;;  %v838_v19 = vmul.f32 %v2746_v13, %v836_v5  ;;  %v2750_v17 = vpop.eup %2749  ;;  %v3885_v59 = vmov 0  }
 0x165   :  { %v839_v42 = vmul.f32 %v2750_v17, %v837_v63  ;;  %v3344_v52 = vadd.f32 %v2744_v60, %v838_v19 }
 0x167   :  { %v3346_v2 = vadd.f32 %v2748_v15, %v839_v42 }
 0x169   :  { %v3350_v8 = vpack.c.bf16 %v3346_v2, %v3344_v52 }
 0x16b   :  { %886 = vmatmul.mubr.bf16.vlgmr.msra.gmra.mrb[4].mxu0 %v3350_v8  ;;  %2429 = vmatmul.mubr.bf16.vlgmr.msra.gmra.mrb[20].mxu1 %v3350_v8 }
 0x16c   :  { %992 = vmatpush1.bf16.msra.mxu0 %v3036_v23  ;;  %2433 = vmatpush3.bf16.msra.mxu1 %v3115_v39 }
 0x16d   :  { %993 = vmatprep.subr.bf16.mxu0 %v3041_v24  ;;  %2434 = vmatprep.subr.bf16.mxu1 %v3884_v58 }
 0x16e   :  { %1023 = vmatprep.mubr.bf16.mxu0 %v3885_v59  ;;  %2448 = vmatprep.mubr.msk.bf16.mxu1 %vm2918_vm0, %v3884_v58 }
 0x170   :  { %994 = vmatpush1.bf16.msra.mxu0 %v3050_v26  ;;  %2435 = vmatpush3.bf16.msra.mxu1 %v3138_v44 }
 0x171   :  { %995 = vmatprep.subr.bf16.mxu0 %v3061_v28  ;;  %2436 = vmatprep.subr.bf16.mxu1 %v3884_v58 }
 0x174   :  { %996 = vmatpush1.bf16.msra.mxu0 %v3070_v30  ;;  %2437 = vmatpush3.bf16.msra.mxu1 %v3157_v47 }
 0x175   :  { %997 = vmatprep.subr.bf16.mxu0 %v3075_v31  ;;  %2438 = vmatprep.subr.bf16.mxu1 %v3884_v58 }
 0x178   :  { %998 = vmatpush1.bf16.msra.mxu0 %v3084_v33  ;;  %2439 = vmatpush3.bf16.msra.mxu1 %v3175_v50 }
 0x179   :  { %999 = vmatprep.subr.bf16.mxu0 %v3095_v35  ;;  %2440 = vmatprep.subr.bf16.mxu1 %v3884_v58 }
 0x17c   :  { %1000 = vmatpush1.bf16.msra.mxu0 %v3104_v37  ;;  %2441 = vmatpush3.bf16.msra.mxu1 %v3184_v51 }
 0x17d   :  { %1001 = vmatprep.subr.bf16.mxu0 %v3110_v38  ;;  %2442 = vmatprep.subr.bf16.mxu1 %v3884_v58 }
 0x180   :  { %1002 = vmatpush1.bf16.msra.mxu0 %v3122_v40  ;;  %2443 = vmatpush3.bf16.msra.mxu1 %v3198_v54 }
 0x181   :  { %1003 = vmatprep.subr.bf16.mxu0 %v3128_v41  ;;  %2444 = vmatprep.subr.bf16.mxu1 %v3884_v58 }
 0x184   :  { %1004 = vmatpush1.bf16.msra.mxu0 %v3144_v45  ;;  %2445 = vmatpush3.bf16.msra.mxu1 %v3205_v55 }
 0x185   :  { %1005 = vmatprep.subr.bf16.mxu0 %v3151_v46  ;;  %2446 = vmatprep.subr.bf16.mxu1 %v3884_v58 }
 0x188   :  { %1006 = vmatpush1.bf16.msra.mxu0 %v3164_v48  ;;  %2447 = vmatpush3.bf16.msra.mxu1 %v3216_v57 }
 0x189   :  { %1129 = vmatprep.subr.bf16.mxu0 %v3031_v22  ;;  %2452 = vmatprep.subr.bf16.mxu1 %v3884_v58 }
 0x23e   :  { %v887_v42 = vpop.f32.mrb[4].mxu0  ;;  %v930_v21 = vpop.f32.mrb[20].mxu1 }
 0x23f   :  { %v2588_v27 = vadd.f32 %v887_v42, %v3323_v9  ;;  %v889_v32 = vpop.f32.mrb[5].mxu0  ;;  %v2430_v49 = vpop.f32.mrb[21].mxu1 }
 0x240   :  { %v891_v53 = vpop.f32.mrb[6].mxu0  ;;  %v933_v61 = vpop.f32.mrb[22].mxu1  ;;  %v2589_v60 = vadd.f32 %v889_v32, %v3327_v36  ;;  %v965_v49 = vadd.f32 %v3334_v0, %v930_v21 }
 0x241   :  { %v2140_v1 = vmul.f32 -1.442695, %v2588_v27  ;;  %v2590_v3 = vadd.f32 %v891_v53, %v3323_v9  ;;  %v893_v6 = vpop.f32.mrb[7].mxu0  ;;  %v2431_v11 = vpop.f32.mrb[23].mxu1  ;;  %v966_v32 = vadd.f32 %v3334_v0, %v933_v61 }
 0x242   :  { %v2591_v13 = vadd.f32 %v893_v6, %v3327_v36  ;;  %v2142_v5 = vmul.f32 -1.442695, %v2589_v60 }
 0x243   :  { %2751 = vpow2.f32 %v2140_v1  ;;  %v2141_v62 = vmul.f32 -1.442695, %v2590_v3 }
 0x244   :  { %v2143_v63 = vmul.f32 -1.442695, %v2591_v13 }
 0x245   :  { %2753 = vpow2.f32 %v2141_v62 }
 0x246   :  { %2755 = vpow2.f32 %v2142_v5 }
 0x24d   :  { %v2752_v15 = vpop.eup %2751 }
 0x24e   :  { %v945_v19 = vadd.f32 1.0, %v2752_v15 }
 0x24f   :  { %v2754_v17 = vpop.eup %2753 }
 0x250   :  { %2757 = vrcp.f32 %v945_v19  ;;  %v946_v42 = vadd.f32 1.0, %v2754_v17  ;;  %v2756_v27 = vpop.eup %2755 }
 0x251   :  { %2759 = vpow2.f32 %v2143_v63  ;;  %v959_v6 = vadd.f32 1.0, %v2756_v27 }
 0x252   :  { %2761 = vrcp.f32 %v946_v42 }
 0x25a   :  { %v2758_v53 = vpop.eup %2757 }
 0x25b   :  { %v2760_v1 = vpop.eup %2759  ;;  %v967_v3 = vmul.f32 %v2758_v53, %v965_v49 }
 0x25c   :  { %v2762_v11 = vpop.eup %2761  ;;  %v960_v5 = vadd.f32 1.0, %v2760_v1 }
 0x25d   :  { %v969_v62 = vadd.f32 %v967_v3, %v3278_v4  ;;  %v968_v60 = vmul.f32 %v2762_v11, %v966_v32 }
 0x25f   :  { %2763 = vtanh.f32 %v969_v62  ;;  %v970_v13 = vadd.f32 %v968_v60, %v3283_v7 }
 0x260   :  { %2765 = vrcp.f32 %v959_v6 }
 0x261   :  { %2767 = vtanh.f32 %v970_v13 }
 0x262   :  { %2769 = vrcp.f32 %v960_v5 }
 0x269   :  { %v2764_v15 = vpop.eup %2763 }
 0x26a   :  { %v2766_v63 = vpop.eup %2765  ;;  %v973_v21 = vsub.f32 %v3344_v52, %v2764_v15 }
 0x26b   :  { %v2768_v19 = vpop.eup %2767 }
 0x26c   :  { %v974_v17 = vsub.f32 %v3346_v2, %v2768_v19  ;;  %v975_v61 = vmul.f32 %v2766_v63, %v973_v21  ;;  %v2770_v42 = vpop.eup %2769 }
 0x26e   :  { %v976_v27 = vmul.f32 %v2770_v42, %v974_v17  ;;  %v3399_v49 = vadd.f32 %v2764_v15, %v975_v61 }
 0x270   :  { %v3401_v4 = vadd.f32 %v2768_v19, %v976_v27 }
 0x272   :  { %v3405_v7 = vpack.c.bf16 %v3401_v4, %v3399_v49 }
 0x274   :  { %1024 = vmatmul.mubr.bf16.vlgmr.msra.gmra.mrb[8].mxu0 %v3405_v7  ;;  %2449 = vmatmul.mubr.bf16.vlgmr.msra.gmra.mrb[24].mxu1 %v3405_v7 }
 0x275   :  { %1130 = vmatpush1.bf16.msra.mxu0 %v3036_v23  ;;  %2453 = vmatpush3.bf16.msra.mxu1 %v3115_v39 }
 0x276   :  { %1131 = vmatprep.subr.bf16.mxu0 %v3041_v24  ;;  %2454 = vmatprep.subr.bf16.mxu1 %v3884_v58 }
 0x277   :  { %1161 = vmatprep.mubr.bf16.mxu0 %v3885_v59  ;;  %2468 = vmatprep.mubr.msk.bf16.mxu1 %vm2918_vm0, %v3884_v58 }
 0x279   :  { %1132 = vmatpush1.bf16.msra.mxu0 %v3050_v26  ;;  %2455 = vmatpush3.bf16.msra.mxu1 %v3138_v44 }
 0x27a   :  { %1133 = vmatprep.subr.bf16.mxu0 %v3061_v28  ;;  %2456 = vmatprep.subr.bf16.mxu1 %v3884_v58 }
 0x27d   :  { %1134 = vmatpush1.bf16.msra.mxu0 %v3070_v30  ;;  %2457 = vmatpush3.bf16.msra.mxu1 %v3157_v47 }
 0x27e   :  { %1135 = vmatprep.subr.bf16.mxu0 %v3075_v31  ;;  %2458 = vmatprep.subr.bf16.mxu1 %v3884_v58 }
 0x281   :  { %1136 = vmatpush1.bf16.msra.mxu0 %v3084_v33  ;;  %2459 = vmatpush3.bf16.msra.mxu1 %v3175_v50 }
 0x282   :  { %1137 = vmatprep.subr.bf16.mxu0 %v3095_v35  ;;  %2460 = vmatprep.subr.bf16.mxu1 %v3884_v58 }
 0x285   :  { %1138 = vmatpush1.bf16.msra.mxu0 %v3104_v37  ;;  %2461 = vmatpush3.bf16.msra.mxu1 %v3184_v51 }
 0x286   :  { %1139 = vmatprep.subr.bf16.mxu0 %v3110_v38  ;;  %2462 = vmatprep.subr.bf16.mxu1 %v3884_v58 }
 0x289   :  { %1140 = vmatpush1.bf16.msra.mxu0 %v3122_v40  ;;  %2463 = vmatpush3.bf16.msra.mxu1 %v3198_v54 }
 0x28a   :  { %1141 = vmatprep.subr.bf16.mxu0 %v3128_v41  ;;  %2464 = vmatprep.subr.bf16.mxu1 %v3884_v58 }
 0x28d   :  { %1142 = vmatpush1.bf16.msra.mxu0 %v3144_v45  ;;  %2465 = vmatpush3.bf16.msra.mxu1 %v3205_v55 }
 0x28e   :  { %1143 = vmatprep.subr.bf16.mxu0 %v3151_v46  ;;  %2466 = vmatprep.subr.bf16.mxu1 %v3884_v58 }
 0x291   :  { %1144 = vmatpush1.bf16.msra.mxu0 %v3164_v48  ;;  %2467 = vmatpush3.bf16.msra.mxu1 %v3216_v57 }
 0x292   :  { %1267 = vmatprep.subr.bf16.mxu0 %v3031_v22  ;;  %2472 = vmatprep.subr.bf16.mxu1 %v3884_v58 }
 0x347   :  { %v1025_v52 = vpop.f32.mrb[8].mxu0  ;;  %v1068_v2 = vpop.f32.mrb[24].mxu1 }
 0x348   :  { %v2592_v53 = vadd.f32 %v1025_v52, %v3323_v9  ;;  %v1027_v1 = vpop.f32.mrb[9].mxu0  ;;  %v2450_v3 = vpop.f32.mrb[25].mxu1 }
 0x349   :  { %v1029_v32 = vpop.f32.mrb[10].mxu0  ;;  %v1071_v11 = vpop.f32.mrb[26].mxu1  ;;  %v2593_v15 = vadd.f32 %v1027_v1, %v3327_v36 }
 0x34a   :  { %v2144_v6 = vmul.f32 -1.442695, %v2592_v53  ;;  %v2594_v62 = vadd.f32 %v1029_v32, %v3323_v9  ;;  %v1031_v60 = vpop.f32.mrb[11].mxu0  ;;  %v2451_v13 = vpop.f32.mrb[27].mxu1  ;;  %v1103_v53 = vadd.f32 %v3334_v0, %v1068_v2  ;;  %v1104_v1 = vadd.f32 %v3334_v0, %v1071_v11 }
 0x34b   :  { %v2595_v63 = vadd.f32 %v1031_v60, %v3327_v36  ;;  %v2146_v21 = vmul.f32 -1.442695, %v2593_v15 }
 0x34c   :  { %2771 = vpow2.f32 %v2144_v6  ;;  %v2145_v5 = vmul.f32 -1.442695, %v2594_v62 }
 0x34d   :  { %v2147_v17 = vmul.f32 -1.442695, %v2595_v63 }
 0x34e   :  { %2773 = vpow2.f32 %v2145_v5 }
 0x34f   :  { %2775 = vpow2.f32 %v2146_v21 }
 0x356   :  { %v2772_v19 = vpop.eup %2771 }
 0x357   :  { %v1083_v61 = vadd.f32 1.0, %v2772_v19 }
 0x358   :  { %v2774_v42 = vpop.eup %2773 }
 0x359   :  { %2777 = vrcp.f32 %v1083_v61  ;;  %v1084_v27 = vadd.f32 1.0, %v2774_v42  ;;  %v2776_v52 = vpop.eup %2775 }
 0x35a   :  { %2779 = vpow2.f32 %v2147_v17  ;;  %v1097_v60 = vadd.f32 1.0, %v2776_v52 }
 0x35b   :  { %2781 = vrcp.f32 %v1084_v27 }
 0x363   :  { %v2778_v3 = vpop.eup %2777 }
 0x364   :  { %v2780_v32 = vpop.eup %2779  ;;  %v1105_v6 = vmul.f32 %v2778_v3, %v1103_v53 }
 0x365   :  { %v2782_v62 = vpop.eup %2781  ;;  %v1098_v63 = vadd.f32 1.0, %v2780_v32 }
 0x366   :  { %v1107_v13 = vadd.f32 %v1105_v6, %v3291_v12  ;;  %v1106_v5 = vmul.f32 %v2782_v62, %v1104_v1 }
 0x368   :  { %2783 = vtanh.f32 %v1107_v13  ;;  %v1108_v15 = vadd.f32 %v1106_v5, %v3297_v16 }
 0x369   :  { %2785 = vrcp.f32 %v1097_v60 }
 0x36a   :  { %2787 = vtanh.f32 %v1108_v15 }
 0x36b   :  { %2789 = vrcp.f32 %v1098_v63 }
 0x372   :  { %v2784_v21 = vpop.eup %2783 }
 0x373   :  { %v2786_v19 = vpop.eup %2785  ;;  %v1111_v2 = vsub.f32 %v3399_v49, %v2784_v21 }
 0x374   :  { %v2788_v17 = vpop.eup %2787 }
 0x375   :  { %v1112_v61 = vsub.f32 %v3401_v4, %v2788_v17  ;;  %v1113_v11 = vmul.f32 %v2786_v19, %v1111_v2  ;;  %v2790_v42 = vpop.eup %2789 }
 0x377   :  { %v1114_v27 = vmul.f32 %v2790_v42, %v1112_v61  ;;  %v3454_v52 = vadd.f32 %v2784_v21, %v1113_v11 }
 0x379   :  { %v3456_v12 = vadd.f32 %v2788_v17, %v1114_v27 }
 0x37b   :  { %v3460_v16 = vpack.c.bf16 %v3456_v12, %v3454_v52 }
 0x37d   :  { %1162 = vmatmul.mubr.bf16.vlgmr.msra.gmra.mrb[12].mxu0 %v3460_v16  ;;  %2469 = vmatmul.mubr.bf16.vlgmr.msra.gmra.mrb[28].mxu1 %v3460_v16 }
 0x37e   :  { %1268 = vmatpush1.bf16.msra.mxu0 %v3036_v23  ;;  %2473 = vmatpush3.bf16.msra.mxu1 %v3115_v39 }
 0x37f   :  { %1269 = vmatprep.subr.bf16.mxu0 %v3041_v24  ;;  %2474 = vmatprep.subr.bf16.mxu1 %v3884_v58 }
 0x380   :  { %1299 = vmatprep.mubr.bf16.mxu0 %v3885_v59  ;;  %2488 = vmatprep.mubr.msk.bf16.mxu1 %vm2918_vm0, %v3884_v58 }
 0x382   :  { %1270 = vmatpush1.bf16.msra.mxu0 %v3050_v26  ;;  %2475 = vmatpush3.bf16.msra.mxu1 %v3138_v44 }
 0x383   :  { %1271 = vmatprep.subr.bf16.mxu0 %v3061_v28  ;;  %2476 = vmatprep.subr.bf16.mxu1 %v3884_v58 }
 0x386   :  { %1272 = vmatpush1.bf16.msra.mxu0 %v3070_v30  ;;  %2477 = vmatpush3.bf16.msra.mxu1 %v3157_v47 }
 0x387   :  { %1273 = vmatprep.subr.bf16.mxu0 %v3075_v31  ;;  %2478 = vmatprep.subr.bf16.mxu1 %v3884_v58 }
 0x38a   :  { %1274 = vmatpush1.bf16.msra.mxu0 %v3084_v33  ;;  %2479 = vmatpush3.bf16.msra.mxu1 %v3175_v50 }
 0x38b   :  { %1275 = vmatprep.subr.bf16.mxu0 %v3095_v35  ;;  %2480 = vmatprep.subr.bf16.mxu1 %v3884_v58 }
 0x38e   :  { %1276 = vmatpush1.bf16.msra.mxu0 %v3104_v37  ;;  %2481 = vmatpush3.bf16.msra.mxu1 %v3184_v51 }
 0x38f   :  { %1277 = vmatprep.subr.bf16.mxu0 %v3110_v38  ;;  %2482 = vmatprep.subr.bf16.mxu1 %v3884_v58 }
 0x392   :  { %1278 = vmatpush1.bf16.msra.mxu0 %v3122_v40  ;;  %2483 = vmatpush3.bf16.msra.mxu1 %v3198_v54 }
 0x393   :  { %1279 = vmatprep.subr.bf16.mxu0 %v3128_v41  ;;  %2484 = vmatprep.subr.bf16.mxu1 %v3884_v58 }
 0x396   :  { %1280 = vmatpush1.bf16.msra.mxu0 %v3144_v45  ;;  %2485 = vmatpush3.bf16.msra.mxu1 %v3205_v55 }
 0x397   :  { %1281 = vmatprep.subr.bf16.mxu0 %v3151_v46  ;;  %2486 = vmatprep.subr.bf16.mxu1 %v3884_v58 }
 0x39a   :  { %1282 = vmatpush1.bf16.msra.mxu0 %v3164_v48  ;;  %2487 = vmatpush3.bf16.msra.mxu1 %v3216_v57 }
 0x39b   :  { %1405 = vmatprep.subr.bf16.mxu0 %v3031_v22  ;;  %2492 = vmatprep.subr.bf16.mxu1 %v3884_v58 }
 0x450   :  { %v1163_v23 = vpop.f32.mrb[12].mxu0  ;;  %v1206_v24 = vpop.f32.mrb[28].mxu1 }
 0x451   :  { %v2596_v26 = vadd.f32 %v1163_v23, %v3323_v9  ;;  %v1165_v28 = vpop.f32.mrb[13].mxu0  ;;  %v2470_v30 = vpop.f32.mrb[29].mxu1  ;;  %v1241_v19 = vadd.f32 %v3334_v0, %v1206_v24 }
 0x452   :  { %v1167_v31 = vpop.f32.mrb[14].mxu0  ;;  %v1209_v49 = vpop.f32.mrb[30].mxu1  ;;  %v2597_v22 = vadd.f32 %v1165_v28, %v3327_v36 }
 0x453   :  { %v2148_v4 = vmul.f32 -1.442695, %v2596_v26  ;;  %v2598_v53 = vadd.f32 %v1167_v31, %v3323_v9  ;;  %v1169_v3 = vpop.f32.mrb[15].mxu0  ;;  %v2471_v32 = vpop.f32.mrb[31].mxu1  ;;  %v1242_v11 = vadd.f32 %v3334_v0, %v1209_v49 }
 0x454   :  { %v2599_v1 = vadd.f32 %v1169_v3, %v3327_v36  ;;  %v2150_v62 = vmul.f32 -1.442695, %v2597_v22 }
 0x455   :  { %2791 = vpow2.f32 %v2148_v4  ;;  %v2149_v6 = vmul.f32 -1.442695, %v2598_v53 }
 0x456   :  { %v2151_v13 = vmul.f32 -1.442695, %v2599_v1  ;;  %v3539_v1 = vld [vmem:[%s3872_s4 + $0x18] ss:$12 sps:$4 sm:$0xff]  }
 0x457   :  { %2793 = vpow2.f32 %v2149_v6 }
 0x458   :  { %2795 = vpow2.f32 %v2150_v62  ;;  %v3553_v62 = vld [vmem:[%s3872_s4 + $0x30] ss:$12 sps:$4 sm:$0xff]  }
 0x45f   :  { %v2792_v60 = vpop.eup %2791 }
 0x460   :  { %v1221_v5 = vadd.f32 1.0, %v2792_v60 }
 0x461   :  { %v2794_v15 = vpop.eup %2793 }
 0x462   :  { %2797 = vrcp.f32 %v1221_v5  ;;  %v1222_v63 = vadd.f32 1.0, %v2794_v15  ;;  %v2796_v21 = vpop.eup %2795 }
 0x463   :  { %2799 = vpow2.f32 %v2151_v13  ;;  %v1235_v27 = vadd.f32 1.0, %v2796_v21 }
 0x464   :  { %2801 = vrcp.f32 %v1222_v63 }
 0x46c   :  { %v2798_v2 = vpop.eup %2797 }
 0x46d   :  { %v2800_v17 = vpop.eup %2799  ;;  %v1243_v61 = vmul.f32 %v2798_v2, %v1241_v19 }
 0x46e   :  { %v2802_v42 = vpop.eup %2801  ;;  %v1236_v30 = vadd.f32 1.0, %v2800_v17 }
 0x46f   :  { %v1245_v23 = vadd.f32 %v1243_v61, %v3288_v10  ;;  %v1244_v26 = vmul.f32 %v2802_v42, %v1242_v11 }
 0x471   :  { %2803 = vtanh.f32 %v1245_v23  ;;  %v1246_v28 = vadd.f32 %v1244_v26, %v3294_v14 }
 0x472   :  { %2805 = vrcp.f32 %v1235_v27 }
 0x473   :  { %2807 = vtanh.f32 %v1246_v28 }
 0x474   :  { %2809 = vrcp.f32 %v1236_v30 }
 0x47b   :  { %v2804_v31 = vpop.eup %2803 }
 0x47c   :  { %v2806_v4 = vpop.eup %2805  ;;  %v1249_v24 = vsub.f32 %v3454_v52, %v2804_v31  ;;  %v3522_v52 = vld [vmem:[%s3872_s4] ss:$12 sps:$4 sm:$0xff]  }
 0x47d   :  { %v2808_v53 = vpop.eup %2807 }
 0x47e   :  { %v1250_v3 = vsub.f32 %v3456_v12, %v2808_v53  ;;  %v1251_v49 = vmul.f32 %v2806_v4, %v1249_v24  ;;  %v2810_v32 = vpop.eup %2809  ;;  %v3529_v12 = vld [vmem:[%s3872_s4 + $0x1c] ss:$12 sps:$4 sm:$0xff]  }
 0x480   :  { %v1252_v6 = vmul.f32 %v2810_v32, %v1250_v3  ;;  %v3509_v22 = vadd.f32 %v2804_v31, %v1251_v49 }
 0x482   :  { %v3511_v10 = vadd.f32 %v2808_v53, %v1252_v6 }
 0x484   :  { %v3515_v14 = vpack.c.bf16 %v3511_v10, %v3509_v22 }
 0x486   :  { %1300 = vmatmul.mubr.bf16.vlgmr.msra.gmra.mrb[16].mxu0 %v3515_v14  ;;  %2489 = vmatmul.mubr.bf16.vlgmr.msra.gmra.mrb[32].mxu1 %v3515_v14 }
 0x487   :  { %1406 = vmatpush1.bf16.msra.mxu0 %v3522_v52  ;;  %2493 = vmatpush3.bf16.msra.mxu1 %v3115_v39  ;;  %v3546_v39 = vld [vmem:[%s3872_s4 + $0x34] ss:$12 sps:$4 sm:$0xff]  }
 0x488   :  { %1407 = vmatprep.subr.bf16.mxu0 %v3529_v12  ;;  %2494 = vmatprep.subr.bf16.mxu1 %v3884_v58 }
 0x489   :  { %1437 = vmatprep.mubr.bf16.mxu0 %v3885_v59  ;;  %2508 = vmatprep.mubr.msk.bf16.mxu1 %vm2918_vm0, %v3884_v58 }
 0x48b   :  { %1408 = vmatpush1.bf16.msra.mxu0 %v3539_v1  ;;  %2495 = vmatpush3.bf16.msra.mxu1 %v3138_v44  ;;  %v3560_v44 = vld [vmem:[%s3872_s4 + $0x4c] ss:$12 sps:$4 sm:$0xff]  }
 0x48c   :  { %1409 = vmatprep.subr.bf16.mxu0 %v3546_v39  ;;  %2496 = vmatprep.subr.bf16.mxu1 %v3884_v58 }
 0x48f   :  { %1410 = vmatpush1.bf16.msra.mxu0 %v3553_v62  ;;  %2497 = vmatpush3.bf16.msra.mxu1 %v3157_v47 }
 0x490   :  { %1411 = vmatprep.subr.bf16.mxu0 %v3560_v44  ;;  %2498 = vmatprep.subr.bf16.mxu1 %v3884_v58 }
 0x493   :  { %1412 = vmatpush1.bf16.msra.mxu0 %v3084_v33  ;;  %2499 = vmatpush3.bf16.msra.mxu1 %v3175_v50  ;;  %v3585_v33 = vld [vmem:[%s3872_s4 + $0x4] ss:$12 sps:$4 sm:$0xff]  }
 0x494   :  { %1413 = vmatprep.subr.bf16.mxu0 %v3095_v35  ;;  %2500 = vmatprep.subr.bf16.mxu1 %v3884_v58 }
 0x497   :  { %1414 = vmatpush1.bf16.msra.mxu0 %v3104_v37  ;;  %2501 = vmatpush3.bf16.msra.mxu1 %v3184_v51 }
 0x498   :  { %1415 = vmatprep.subr.bf16.mxu0 %v3110_v38  ;;  %2502 = vmatprep.subr.bf16.mxu1 %v3884_v58 }
 0x49b   :  { %1416 = vmatpush1.bf16.msra.mxu0 %v3122_v40  ;;  %2503 = vmatpush3.bf16.msra.mxu1 %v3198_v54 }
 0x49c   :  { %1417 = vmatprep.subr.bf16.mxu0 %v3128_v41  ;;  %2504 = vmatprep.subr.bf16.mxu1 %v3884_v58 }
 0x49f   :  { %1418 = vmatpush1.bf16.msra.mxu0 %v3144_v45  ;;  %2505 = vmatpush3.bf16.msra.mxu1 %v3205_v55 }
 0x4a0   :  { %1419 = vmatprep.subr.bf16.mxu0 %v3151_v46  ;;  %2506 = vmatprep.subr.bf16.mxu1 %v3884_v58 }
 0x4a3   :  { %1420 = vmatpush1.bf16.msra.mxu0 %v3164_v48  ;;  %2507 = vmatpush3.bf16.msra.mxu1 %v3216_v57 }
 0x4a4   :  { %1543 = vmatprep.subr.bf16.mxu0 %v3585_v33  ;;  %2512 = vmatprep.subr.bf16.mxu1 %v3884_v58 }
 0x559   :  { %v1301_v35 = vpop.f32.mrb[16].mxu0  ;;  %v1344_v37 = vpop.f32.mrb[32].mxu1 }
 0x55a   :  { %v2600_v38 = vadd.f32 %v1301_v35, %v3323_v9  ;;  %v1303_v40 = vpop.f32.mrb[17].mxu0  ;;  %v2490_v41 = vpop.f32.mrb[33].mxu1  ;;  %v1379_v2 = vadd.f32 %v3334_v0, %v1344_v37 }
 0x55b   :  { %v1305_v45 = vpop.f32.mrb[18].mxu0  ;;  %v1347_v46 = vpop.f32.mrb[34].mxu1  ;;  %v2601_v55 = vadd.f32 %v1303_v40, %v3327_v36  ;;  %v3642_v40 = vld [vmem:[%s3872_s4 + $0x48] ss:$12 sps:$4 sm:$0xff]   ;;  %v3648_v41 = vld [vmem:[%s3872_s4 + $0x50] ss:$12 sps:$4 sm:$0xff]  }
 0x55c   :  { %v2152_v47 = vmul.f32 -1.442695, %v2600_v38  ;;  %v2602_v48 = vadd.f32 %v1305_v45, %v3323_v9  ;;  %v1307_v50 = vpop.f32.mrb[19].mxu0  ;;  %v2491_v51 = vpop.f32.mrb[35].mxu1  ;;  %v1380_v42 = vadd.f32 %v3334_v0, %v1347_v46  ;;  %v3634_v38 = vld [vmem:[%s3872_s4 + $0x38] ss:$12 sps:$4 sm:$0xff]  }
 0x55d   :  { %v2603_v57 = vadd.f32 %v1307_v50, %v3327_v36  ;;  %v2154_v60 = vmul.f32 -1.442695, %v2601_v55  ;;  %v3654_v45 = vld [vmem:[%s3872_s4 + $0x64] ss:$12 sps:$4 sm:$0xff]   ;;  %v3661_v46 = vld [vmem:[%s3872_s4 + $0x60] ss:$12 sps:$4 sm:$0xff]  }
 0x55e   :  { %2811 = vpow2.f32 %v2152_v47  ;;  %v2153_v54 = vmul.f32 -1.442695, %v2602_v48  ;;  %v3667_v47 = vld [vmem:[%s3872_s4 + $0x68] ss:$12 sps:$4 sm:$0xff]   ;;  %v3680_v50 = vld [vmem:[%s3872_s4 + $0x78] ss:$12 sps:$4 sm:$0xff]  }
 0x55f   :  { %v2155_v5 = vmul.f32 -1.442695, %v2603_v57  ;;  %v3673_v48 = vld [vmem:[%s3872_s4 + $0x7c] ss:$12 sps:$4 sm:$0xff]   ;;  %v3686_v51 = vld [vmem:[%s3872_s4 + $0x80] ss:$12 sps:$4 sm:$0xff]  }
 0x560   :  { %2813 = vpow2.f32 %v2153_v54  ;;  %v3692_v54 = vld [vmem:[%s3872_s4 + $0x94] ss:$12 sps:$4 sm:$0xff]   ;;  %v3699_v55 = vld [vmem:[%s3872_s4 + $0x90] ss:$12 sps:$4 sm:$0xff]   ;;  %v3705_v57 = vld [vmem:[%s3872_s4 + $0x98] ss:$12 sps:$4 sm:$0xff]  }
 0x561   :  { %2815 = vpow2.f32 %v2154_v60  ;;  %v3711_v60 = vld [vmem:[%s3872_s4 + $0xac] ss:$12 sps:$4 sm:$0xff]  }
 0x568   :  { %v2812_v13 = vpop.eup %2811 }
 0x569   :  { %v1359_v15 = vadd.f32 1.0, %v2812_v13  ;;  %v3718_v13 = vld [vmem:[%s3872_s4 + $0xa8] ss:$12 sps:$4 sm:$0xff]  }
 0x56a   :  { %v2814_v63 = vpop.eup %2813 }
 0x56b   :  { %2817 = vrcp.f32 %v1359_v15  ;;  %v1360_v21 = vadd.f32 1.0, %v2814_v63  ;;  %v2816_v19 = vpop.eup %2815 }
 0x56c   :  { %2819 = vpow2.f32 %v2155_v5  ;;  %v1373_v23 = vadd.f32 1.0, %v2816_v19  ;;  %v3724_v5 = vld [vmem:[%s3872_s4 + $0xb0] ss:$12 sps:$4 sm:$0xff]  }
 0x56d   :  { %2821 = vrcp.f32 %v1360_v21 }
 0x575   :  { %v2818_v17 = vpop.eup %2817 }
 0x576   :  { %v2820_v61 = vpop.eup %2819  ;;  %v1381_v11 = vmul.f32 %v2818_v17, %v1379_v2 }
 0x577   :  { %v2822_v27 = vpop.eup %2821  ;;  %v1374_v31 = vadd.f32 1.0, %v2820_v61 }
 0x578   :  { %v1383_v26 = vadd.f32 %v1381_v11, %v3303_v20  ;;  %v1382_v28 = vmul.f32 %v2822_v27, %v1380_v42 }
 0x57a   :  { %2823 = vtanh.f32 %v1383_v26  ;;  %v1384_v30 = vadd.f32 %v1382_v28, %v3309_v29 }
 0x57b   :  { %2825 = vrcp.f32 %v1373_v23 }
 0x57c   :  { %2827 = vtanh.f32 %v1384_v30 }
 0x57d   :  { %2829 = vrcp.f32 %v1374_v31 }
 0x584   :  { %v2824_v4 = vpop.eup %2823 }
 0x585   :  { %v2826_v24 = vpop.eup %2825  ;;  %v1387_v53 = vsub.f32 %v3509_v22, %v2824_v4  ;;  %v3613_v22 = vld [vmem:[%s3872_s4 + $0x8] ss:$12 sps:$4 sm:$0xff]  }
 0x586   :  { %v2828_v3 = vpop.eup %2827 }
 0x587   :  { %v1388_v49 = vsub.f32 %v3511_v10, %v2828_v3  ;;  %v1389_v32 = vmul.f32 %v2826_v24, %v1387_v53  ;;  %v2830_v6 = vpop.eup %2829  ;;  %v3625_v10 = vld [vmem:[%s3872_s4 + $0x20] ss:$12 sps:$4 sm:$0xff]  }
 0x589   :  { %v1390_v35 = vmul.f32 %v2830_v6, %v1388_v49  ;;  %v3599_v37 = vadd.f32 %v2824_v4, %v1389_v32 }
 0x58b   :  { %v3601_v20 = vadd.f32 %v2828_v3, %v1390_v35 }
 0x58d   :  { %v3605_v29 = vpack.c.bf16 %v3601_v20, %v3599_v37 }
 0x58f   :  { %1438 = vmatmul.mubr.bf16.vlgmr.msra.gmra.mrb[20].mxu0 %v3605_v29  ;;  %2509 = vmatmul.mubr.bf16.vlgmr.msra.gmra.mrb[36].mxu1 %v3605_v29 }
 0x590   :  { %1544 = vmatpush1.bf16.msra.mxu0 %v3522_v52  ;;  %2513 = vmatpush3.bf16.msra.mxu1 %v3613_v22 }
 0x591   :  { %1545 = vmatprep.subr.bf16.mxu0 %v3529_v12  ;;  %2514 = vmatprep.subr.bf16.mxu1 %v3884_v58 }
 0x592   :  { %1575 = vmatprep.mubr.bf16.mxu0 %v3885_v59  ;;  %2528 = vmatprep.mubr.msk.bf16.mxu1 %vm2918_vm0, %v3884_v58 }
 0x594   :  { %1546 = vmatpush1.bf16.msra.mxu0 %v3539_v1  ;;  %2515 = vmatpush3.bf16.msra.mxu1 %v3625_v10 }
 0x595   :  { %1547 = vmatprep.subr.bf16.mxu0 %v3546_v39  ;;  %2516 = vmatprep.subr.bf16.mxu1 %v3884_v58 }
 0x598   :  { %1548 = vmatpush1.bf16.msra.mxu0 %v3553_v62  ;;  %2517 = vmatpush3.bf16.msra.mxu1 %v3634_v38 }
 0x599   :  { %1549 = vmatprep.subr.bf16.mxu0 %v3560_v44  ;;  %2518 = vmatprep.subr.bf16.mxu1 %v3884_v58 }
 0x59c   :  { %1550 = vmatpush1.bf16.msra.mxu0 %v3642_v40  ;;  %2519 = vmatpush3.bf16.msra.mxu1 %v3648_v41 }
 0x59d   :  { %1551 = vmatprep.subr.bf16.mxu0 %v3654_v45  ;;  %2520 = vmatprep.subr.bf16.mxu1 %v3884_v58 }
 0x5a0   :  { %1552 = vmatpush1.bf16.msra.mxu0 %v3661_v46  ;;  %2521 = vmatpush3.bf16.msra.mxu1 %v3667_v47 }
 0x5a1   :  { %1553 = vmatprep.subr.bf16.mxu0 %v3673_v48  ;;  %2522 = vmatprep.subr.bf16.mxu1 %v3884_v58 }
 0x5a4   :  { %1554 = vmatpush1.bf16.msra.mxu0 %v3680_v50  ;;  %2523 = vmatpush3.bf16.msra.mxu1 %v3686_v51 }
 0x5a5   :  { %1555 = vmatprep.subr.bf16.mxu0 %v3692_v54  ;;  %2524 = vmatprep.subr.bf16.mxu1 %v3884_v58 }
 0x5a8   :  { %1556 = vmatpush1.bf16.msra.mxu0 %v3699_v55  ;;  %2525 = vmatpush3.bf16.msra.mxu1 %v3705_v57 }
 0x5a9   :  { %1557 = vmatprep.subr.bf16.mxu0 %v3711_v60  ;;  %2526 = vmatprep.subr.bf16.mxu1 %v3884_v58 }
 0x5ac   :  { %1558 = vmatpush1.bf16.msra.mxu0 %v3718_v13  ;;  %2527 = vmatpush3.bf16.msra.mxu1 %v3724_v5 }
 0x5ad   :  { %2532 = vmatprep.subr.bf16.mxu1 %v3884_v58  ;;  %1681 = vmatprep.subr.bf16.mxu0 %v3585_v33 }
 0x662   :  { %v1439_v15 = vpop.f32.mrb[20].mxu0  ;;  %v1482_v63 = vpop.f32.mrb[36].mxu1 }
 0x663   :  { %v2604_v21 = vadd.f32 %v1439_v15, %v3323_v9  ;;  %v1441_v19 = vpop.f32.mrb[21].mxu0  ;;  %v2510_v2 = vpop.f32.mrb[37].mxu1  ;;  %v1517_v32 = vadd.f32 %v3334_v0, %v1482_v63 }
 0x664   :  { %v1443_v17 = vpop.f32.mrb[22].mxu0  ;;  %v1485_v61 = vpop.f32.mrb[38].mxu1  ;;  %v2605_v28 = vadd.f32 %v1441_v19, %v3327_v36 }
 0x665   :  { %v2156_v11 = vmul.f32 -1.442695, %v2604_v21  ;;  %v2606_v42 = vadd.f32 %v1443_v17, %v3323_v9  ;;  %v1445_v27 = vpop.f32.mrb[23].mxu0  ;;  %v2511_v23 = vpop.f32.mrb[39].mxu1  ;;  %v1518_v21 = vadd.f32 %v3334_v0, %v1485_v61 }
 0x666   :  { %v2607_v33 = vadd.f32 %v1445_v27, %v3327_v36  ;;  %v2158_v30 = vmul.f32 -1.442695, %v2605_v28 }
 0x667   :  { %2831 = vpow2.f32 %v2156_v11  ;;  %v2157_v26 = vmul.f32 -1.442695, %v2606_v42 }
 0x668   :  { %v2159_v4 = vmul.f32 -1.442695, %v2607_v33 }
 0x669   :  { %2833 = vpow2.f32 %v2157_v26 }
 0x66a   :  { %2835 = vpow2.f32 %v2158_v30 }
 0x671   :  { %v2832_v31 = vpop.eup %2831 }
 0x672   :  { %v1497_v24 = vadd.f32 1.0, %v2832_v31 }
 0x673   :  { %v2834_v53 = vpop.eup %2833 }
 0x674   :  { %2837 = vrcp.f32 %v1497_v24  ;;  %v1498_v3 = vadd.f32 1.0, %v2834_v53  ;;  %v2836_v49 = vpop.eup %2835 }
 0x675   :  { %2839 = vpow2.f32 %v2159_v4  ;;  %v1511_v2 = vadd.f32 1.0, %v2836_v49 }
 0x676   :  { %2841 = vrcp.f32 %v1498_v3 }
 0x67e   :  { %v2838_v6 = vpop.eup %2837 }
 0x67f   :  { %v2840_v35 = vpop.eup %2839  ;;  %v1519_v15 = vmul.f32 %v2838_v6, %v1517_v32 }
 0x680   :  { %v2842_v19 = vpop.eup %2841  ;;  %v1512_v27 = vadd.f32 1.0, %v2840_v35 }
 0x681   :  { %v1521_v17 = vadd.f32 %v1519_v15, %v3300_v18  ;;  %v1520_v11 = vmul.f32 %v2842_v19, %v1518_v21 }
 0x683   :  { %2843 = vtanh.f32 %v1521_v17  ;;  %v1522_v42 = vadd.f32 %v1520_v11, %v3306_v25 }
 0x684   :  { %2845 = vrcp.f32 %v1511_v2 }
 0x685   :  { %2847 = vtanh.f32 %v1522_v42 }
 0x686   :  { %2849 = vrcp.f32 %v1512_v27 }
 0x68d   :  { %v2844_v23 = vpop.eup %2843 }
 0x68e   :  { %v2846_v26 = vpop.eup %2845  ;;  %v1525_v63 = vsub.f32 %v3599_v37, %v2844_v23 }
 0x68f   :  { %v2848_v28 = vpop.eup %2847 }
 0x690   :  { %v1526_v33 = vsub.f32 %v3601_v20, %v2848_v28  ;;  %v1527_v0 = vmul.f32 %v2846_v26, %v1525_v63  ;;  %v2850_v61 = vpop.eup %2849  ;;  %v2725_v26 = vld [vmem:[%s3876_s6 + $0x10] sm:$0xff]   ;;  %v2726_v63 = vld [vmem:[%s3876_s6 + $0x18] sm:$0xff]  }
 0x692   :  { %v1528_v30 = vmul.f32 %v2850_v61, %v1526_v33  ;;  %v3739_v31 = vadd.f32 %v2844_v23, %v1527_v0  ;;  %v2724_v23 = vld [vmem:[%s3876_s6 + $0x8] sm:$0xff]   ;;  %v2729_v33 = vld [vmem:[%s3876_s6 + $0x30] sm:$0xff]   ;;  %v2730_v0 = vld [vmem:[%s3876_s6 + $0x38] sm:$0xff]  }
 0x694   :  { %v3741_v18 = vadd.f32 %v2848_v28, %v1528_v30  ;;  %v2727_v28 = vld [vmem:[%s3876_s6 + $0x20] sm:$0xff]  }
 0x696   :  { %v3745_v25 = vpack.c.bf16 %v3741_v18, %v3739_v31 }
 0x698   :  { %1576 = vmatmul.mubr.bf16.vlgmr.msra.gmra.mrb[24].mxu0 %v3745_v25  ;;  %2529 = vmatmul.mubr.bf16.vlgmr.msra.gmra.mrb[40].mxu1 %v3745_v25 }
 0x699   :  { %2533 = vmatpush3.bf16.msra.mxu1 %v3613_v22  ;;  %1682 = vmatpush1.bf16.msra.mxu0 %v3522_v52 }
 0x69a   :  { %2534 = vmatprep.subr.bf16.mxu1 %v3884_v58  ;;  %1683 = vmatprep.subr.bf16.mxu0 %v3529_v12 }
 0x69b   :  { %1713 = vmatprep.mubr.bf16.mxu0 %v3885_v59  ;;  %2548 = vmatprep.mubr.msk.bf16.mxu1 %vm2918_vm0, %v3884_v58  ;;  %v2723_v59 = vld [vmem:[%s3876_s6] sm:$0xff]  }
 0x69d   :  { %2535 = vmatpush3.bf16.msra.mxu1 %v3625_v10  ;;  %1684 = vmatpush1.bf16.msra.mxu0 %v3539_v1 }
 0x69e   :  { %2536 = vmatprep.subr.bf16.mxu1 %v3884_v58  ;;  %1685 = vmatprep.subr.bf16.mxu0 %v3546_v39 }
 0x6a1   :  { %2537 = vmatpush3.bf16.msra.mxu1 %v3634_v38  ;;  %1686 = vmatpush1.bf16.msra.mxu0 %v3553_v62 }
 0x6a2   :  { %2538 = vmatprep.subr.bf16.mxu1 %v3884_v58  ;;  %1687 = vmatprep.subr.bf16.mxu0 %v3560_v44 }
 0x6a5   :  { %2539 = vmatpush3.bf16.msra.mxu1 %v3648_v41  ;;  %1688 = vmatpush1.bf16.msra.mxu0 %v3642_v40 }
 0x6a6   :  { %2540 = vmatprep.subr.bf16.mxu1 %v3884_v58  ;;  %1689 = vmatprep.subr.bf16.mxu0 %v3654_v45 }
 0x6a9   :  { %2541 = vmatpush3.bf16.msra.mxu1 %v3667_v47  ;;  %1690 = vmatpush1.bf16.msra.mxu0 %v3661_v46 }
 0x6aa   :  { %2542 = vmatprep.subr.bf16.mxu1 %v3884_v58  ;;  %1691 = vmatprep.subr.bf16.mxu0 %v3673_v48 }
 0x6ad   :  { %2543 = vmatpush3.bf16.msra.mxu1 %v3686_v51  ;;  %1692 = vmatpush1.bf16.msra.mxu0 %v3680_v50 }
 0x6ae   :  { %2544 = vmatprep.subr.bf16.mxu1 %v3884_v58  ;;  %1693 = vmatprep.subr.bf16.mxu0 %v3692_v54 }
 0x6b1   :  { %2545 = vmatpush3.bf16.msra.mxu1 %v3705_v57  ;;  %1694 = vmatpush1.bf16.msra.mxu0 %v3699_v55  ;;  %v3792_v55 = vld [vmem:[%s3875_s5] ss:$0 sm:$0xff] }
 0x6b2   :  { %2546 = vmatprep.subr.bf16.mxu1 %v3884_v58  ;;  %1695 = vmatprep.subr.bf16.mxu0 %v3711_v60 }
 0x6b5   :  { %2547 = vmatpush3.bf16.msra.mxu1 %v3724_v5  ;;  %1696 = vmatpush1.bf16.msra.mxu0 %v3718_v13 }
 0x6b6   :  { %2552 = vmatprep.subr.bf16.mxu1 %v2723_v59 }
 0x76b   :  { %v1577_v52 = vpop.f32.mrb[24].mxu0  ;;  %v1620_v12 = vpop.f32.mrb[40].mxu1 }
 0x76c   :  { %v2608_v1 = vadd.f32 %v1577_v52, %v3323_v9  ;;  %v1579_v39 = vpop.f32.mrb[25].mxu0  ;;  %v2530_v62 = vpop.f32.mrb[41].mxu1  ;;  %v1655_v57 = vadd.f32 %v3792_v55, %v1620_v12 }
 0x76d   :  { %v1581_v44 = vpop.f32.mrb[26].mxu0  ;;  %v1623_v37 = vpop.f32.mrb[42].mxu1  ;;  %v2609_v40 = vadd.f32 %v1579_v39, %v3327_v36 }
 0x76e   :  { %v2160_v58 = vmul.f32 -1.442695, %v2608_v1  ;;  %v2610_v20 = vadd.f32 %v1581_v44, %v3323_v9  ;;  %v1583_v22 = vpop.f32.mrb[27].mxu0  ;;  %v2531_v10 = vpop.f32.mrb[43].mxu1  ;;  %v1656_v4 = vadd.f32 %v3792_v55, %v1623_v37 }
 0x76f   :  { %v2611_v41 = vadd.f32 %v1583_v22, %v3327_v36  ;;  %v2162_v45 = vmul.f32 -1.442695, %v2609_v40 }
 0x770   :  { %2851 = vpow2.f32 %v2160_v58  ;;  %v2161_v38 = vmul.f32 -1.442695, %v2610_v20 }
 0x771   :  { %v2163_v47 = vmul.f32 -1.442695, %v2611_v41 }
 0x772   :  { %2853 = vpow2.f32 %v2161_v38 }
 0x773   :  { %2855 = vpow2.f32 %v2162_v45 }
 0x77a   :  { %v2852_v46 = vpop.eup %2851 }
 0x77b   :  { %v1635_v48 = vadd.f32 1.0, %v2852_v46 }
 0x77c   :  { %v2854_v50 = vpop.eup %2853 }
 0x77d   :  { %2857 = vrcp.f32 %v1635_v48  ;;  %v1636_v51 = vadd.f32 1.0, %v2854_v50  ;;  %v2856_v54 = vpop.eup %2855 }
 0x77e   :  { %2859 = vpow2.f32 %v2163_v47  ;;  %v1649_v53 = vadd.f32 1.0, %v2856_v54  ;;  %v3886_v54 = vld [vmem:[#allocation5_spill] sm:$0xff] }
 0x77f   :  { %2861 = vrcp.f32 %v1636_v51  ;;  %v2168_v51 = vld [vmem:[%s3877_s7] ss:$0 sm:$0xff] }
 0x787   :  { %v2858_v60 = vpop.eup %2857 }
 0x788   :  { %v2860_v13 = vpop.eup %2859  ;;  %v1657_v5 = vmul.f32 %v2858_v60, %v1655_v57 }
 0x789   :  { %v2862_v24 = vpop.eup %2861  ;;  %v1650_v6 = vadd.f32 1.0, %v2860_v13 }
 0x78a   :  { %v1659_v3 = vadd.f32 %v1657_v5, %v3315_v43  ;;  %v1658_v49 = vmul.f32 %v2862_v24, %v1656_v4 }
 0x78c   :  { %2863 = vtanh.f32 %v1659_v3  ;;  %v1660_v32 = vadd.f32 %v1658_v49, %v3321_v56 }
 0x78d   :  { %2865 = vrcp.f32 %v1649_v53 }
 0x78e   :  { %2867 = vtanh.f32 %v1660_v32 }
 0x78f   :  { %2869 = vrcp.f32 %v1650_v6 }
 0x796   :  { %v2864_v35 = vpop.eup %2863 }
 0x797   :  { %v2866_v15 = vpop.eup %2865  ;;  %v1663_v21 = vsub.f32 %v3739_v31, %v2864_v35 }
 0x798   :  { %v2868_v19 = vpop.eup %2867 }
 0x799   :  { %v1664_v2 = vsub.f32 %v3741_v18, %v2868_v19  ;;  %v1665_v17 = vmul.f32 %v2866_v15, %v1663_v21  ;;  %v2870_v11 = vpop.eup %2869 }
 0x79b   :  { %v1666_v42 = vmul.f32 %v2870_v11, %v1664_v2  ;;  %v3800_v27 = vadd.f32 %v2864_v35, %v1665_v17 }
 0x79d   :  { %v3802_v43 = vadd.f32 %v2868_v19, %v1666_v42 }
 0x79f   :  { %v1669_v56 = vpack.c.bf16 %v3802_v43, %v3800_v27 }
 0x7a1   :  { %1714 = vmatmul.mubr.bf16.vlgmr.msra.gmra.mrb[28].mxu0 %v1669_v56  ;;  %2549 = vmatmul.mubr.bf16.vlgmr.msra.gmra.mrb[44].mxu1 %v1669_v56 }
 0x7a2   :  { %2553 = vmatpush3.bf16.msra.mxu1 %v2723_v59  ;;  %2568 = vmatprep.mubr.bf16.mxu1 %v3350_v8  ;;  %v2728_v8 = vld [vmem:[%s3876_s6 + $0x28] sm:$0xff]  }
 0x7a3   :  { %2554 = vmatprep.subr.bf16.mxu1 %v2724_v23 }
 0x7a6   :  { %2555 = vmatpush3.bf16.msra.mxu1 %v2724_v23 }
 0x7a7   :  { %2556 = vmatprep.subr.bf16.mxu1 %v2725_v26 }
 0x7aa   :  { %2557 = vmatpush3.bf16.msra.mxu1 %v2725_v26 }
 0x7ab   :  { %2558 = vmatprep.subr.bf16.mxu1 %v2726_v63 }
 0x7ae   :  { %2559 = vmatpush3.bf16.msra.mxu1 %v2726_v63 }
 0x7af   :  { %2560 = vmatprep.subr.bf16.mxu1 %v2727_v28 }
 0x7b2   :  { %2561 = vmatpush3.bf16.msra.mxu1 %v2727_v28 }
 0x7b3   :  { %2562 = vmatprep.subr.bf16.mxu1 %v2728_v8 }
 0x7b6   :  { %2563 = vmatpush3.bf16.msra.mxu1 %v2728_v8 }
 0x7b7   :  { %2564 = vmatprep.subr.bf16.mxu1 %v2729_v33 }
 0x7ba   :  { %2565 = vmatpush3.bf16.msra.mxu1 %v2729_v33 }
 0x7bb   :  { %2566 = vmatprep.subr.bf16.mxu1 %v2730_v0 }
 0x7be   :  { %2567 = vmatpush3.bf16.msra.mxu1 %v2730_v0 }
 0x7c1   :  { %2569 = vmatmul.mubr.bf16.vlgmr.msra.gmra.mrb[48].mxu1 %v3405_v7 }
 0x7c2   :  { %2572 = vmatprep.mubr.bf16.mxu1 %v3460_v16 }
 0x7c9   :  { %2573 = vmatmul.mubr.bf16.gmra.mrb[52].mxu1 %v3515_v14 }
 0x7ca   :  { %2576 = vmatprep.mubr.bf16.mxu1 %v3605_v29 }
 0x7d1   :  { %2577 = vmatmul.mubr.bf16.gmra.mrb[56].mxu1 %v3745_v25 }
 0x7d2   :  { %2580 = vmatprep.mubr.bf16.mxu1 %v1669_v56 }
 0x874   :  { %v1715_v61 = vpop.f32.mrb[28].mxu0  ;;  %v1758_v30 = vpop.f32.mrb[44].mxu1 }
 0x875   :  { %v2612_v31 = vadd.f32 %v1715_v61, %v3323_v9  ;;  %v1717_v18 = vpop.f32.mrb[29].mxu0  ;;  %v2550_v59 = vpop.f32.mrb[45].mxu1  ;;  %v1793_v10 = vadd.f32 %v3792_v55, %v1758_v30 }
 0x876   :  { %v1719_v52 = vpop.f32.mrb[30].mxu0  ;;  %v1761_v12 = vpop.f32.mrb[46].mxu1  ;;  %v2613_v29 = vadd.f32 %v1717_v18, %v3327_v36 }
 0x877   :  { %v2164_v1 = vmul.f32 -1.442695, %v2612_v31  ;;  %v2614_v7 = vadd.f32 %v1719_v52, %v3323_v9  ;;  %v1721_v39 = vpop.f32.mrb[31].mxu0  ;;  %v2551_v16 = vpop.f32.mrb[47].mxu1  ;;  %v1794_v45 = vadd.f32 %v3792_v55, %v1761_v12 }
 0x878   :  { %v2615_v25 = vadd.f32 %v1721_v39, %v3327_v36  ;;  %v2166_v62 = vmul.f32 -1.442695, %v2613_v29 }
 0x879   :  { %2871 = vpow2.f32 %v2164_v1  ;;  %v2165_v14 = vmul.f32 -1.442695, %v2614_v7 }
 0x87a   :  { %v2167_v37 = vmul.f32 -1.442695, %v2615_v25 }
 0x87b   :  { %2873 = vpow2.f32 %v2165_v14 }
 0x87c   :  { %2875 = vpow2.f32 %v2166_v62 }
 0x883   :  { %v2872_v44 = vpop.eup %2871 }
 0x884   :  { %v1773_v58 = vadd.f32 1.0, %v2872_v44 }
 0x885   :  { %v2874_v20 = vpop.eup %2873 }
 0x886   :  { %2877 = vrcp.f32 %v1773_v58  ;;  %v1774_v22 = vadd.f32 1.0, %v2874_v20  ;;  %v2876_v9 = vpop.eup %2875 }
 0x887   :  { %2879 = vpow2.f32 %v2167_v37  ;;  %v1787_v36 = vadd.f32 1.0, %v2876_v9 }
 0x888   :  { %2881 = vrcp.f32 %v1774_v22 }
 0x890   :  { %v2878_v38 = vpop.eup %2877 }
 0x891   :  { %v2880_v40 = vpop.eup %2879  ;;  %v1795_v41 = vmul.f32 %v2878_v38, %v1793_v10 }
 0x892   :  { %v2882_v46 = vpop.eup %2881  ;;  %v1788_v60 = vadd.f32 1.0, %v2880_v40 }
 0x893   :  { %v1797_v47 = vadd.f32 %v1795_v41, %v3312_v34  ;;  %v1796_v48 = vmul.f32 %v2882_v46, %v1794_v45 }
 0x894   :  { %v2570_v50 = vpop.f32.mrb[48].mxu1 }
 0x895   :  { %2883 = vtanh.f32 %v1797_v47  ;;  %v1798_v57 = vadd.f32 %v1796_v48, %v3886_v54  ;;  %v1925_v13 = vpop.f32.mrb[49].mxu1  ;;  %v1934_v4 = vadd.f32 %v2570_v50, %v2168_v51 }
 0x896   :  { %2885 = vrcp.f32 %v1787_v36  ;;  %v2571_v5 = vpop.f32.mrb[50].mxu1  ;;  %v1926_v53 = vadd.f32 %v2168_v51, %v1925_v13 }
 0x897   :  { %2887 = vtanh.f32 %v1798_v57  ;;  %v1937_v55 = vadd.f32 %v2571_v5, %v2168_v51  ;;  %v1928_v24 = vpop.f32.mrb[51].mxu1 }
 0x898   :  { %v1929_v3 = vadd.f32 %v2168_v51, %v1928_v24  ;;  %2889 = vrcp.f32 %v1788_v60 }
 0x899   :  { %v2217_v34 = vpack.c.bf16 %v1937_v55, %v1934_v4 }
 0x89a   :  { %v2212_v49 = vpack.c.bf16 %v1929_v3, %v1926_v53 }
 0x89b   :  { %2249 = vst [vmem:[%s3878_s8 + $0x8] sm:$0xff] %v2217_v34  }
 0x89c   :  { %2213 = vst [vmem:[%s3878_s8] sm:$0xff] %v2212_v49   ;;  %v2574_v32 = vpop.f32.mrb[52].mxu1 }
 0x89d   :  { %v1941_v6 = vpop.f32.mrb[53].mxu1  ;;  %v1950_v21 = vadd.f32 %v2574_v32, %v2168_v51 }
 0x89e   :  { %v2575_v35 = vpop.f32.mrb[54].mxu1  ;;  %v1942_v11 = vadd.f32 %v2168_v51, %v1941_v6 }
 0x89f   :  { %v2884_v15 = vpop.eup %2883  ;;  %v1953_v19 = vadd.f32 %v2575_v35, %v2168_v51  ;;  %v1944_v2 = vpop.f32.mrb[55].mxu1 }
 0x8a0   :  { %v2886_v17 = vpop.eup %2885  ;;  %v1945_v42 = vadd.f32 %v2168_v51, %v1944_v2  ;;  %v1801_v56 = vsub.f32 %v3800_v27, %v2884_v15 }
 0x8a1   :  { %v2888_v23 = vpop.eup %2887  ;;  %v2227_v26 = vpack.c.bf16 %v1953_v19, %v1950_v21 }
 0x8a2   :  { %v2222_v63 = vpack.c.bf16 %v1945_v42, %v1942_v11  ;;  %v1802_v28 = vsub.f32 %v3802_v43, %v2888_v23  ;;  %v1803_v8 = vmul.f32 %v2886_v17, %v1801_v56  ;;  %v2890_v33 = vpop.eup %2889 }
 0x8a3   :  { %2251 = vst [vmem:[%s3878_s8 + $0x18] sm:$0xff] %v2227_v26  }
 0x8a4   :  { %2250 = vst [vmem:[%s3878_s8 + $0x10] sm:$0xff] %v2222_v63   ;;  %v2578_v0 = vpop.f32.mrb[56].mxu1  ;;  %v1804_v61 = vmul.f32 %v2890_v33, %v1802_v28  ;;  %v1805_v30 = vadd.f32 %v2884_v15, %v1803_v8 }
 0x8a5   :  { %v1957_v31 = vpop.f32.mrb[57].mxu1  ;;  %v1966_v59 = vadd.f32 %v2578_v0, %v2168_v51 }
 0x8a6   :  { %v2579_v27 = vpop.f32.mrb[58].mxu1  ;;  %v1806_v18 = vadd.f32 %v2888_v23, %v1804_v61  ;;  %v1958_v43 = vadd.f32 %v2168_v51, %v1957_v31 }
 0x8a7   :  { %v1969_v52 = vadd.f32 %v2579_v27, %v2168_v51  ;;  %v1960_v12 = vpop.f32.mrb[59].mxu1 }
 0x8a8   :  { %v1961_v1 = vadd.f32 %v2168_v51, %v1960_v12  ;;  %v1807_v7 = vpack.c.bf16 %v1806_v18, %v1805_v30 }
 0x8a9   :  { %v2237_v39 = vpack.c.bf16 %v1969_v52, %v1966_v59 }
 0x8aa   :  { %v2232_v16 = vpack.c.bf16 %v1961_v1, %v1958_v43  ;;  %2581 = vmatmul.mubr.bf16.gmra.mrb[60].mxu1 %v1807_v7 }
 0x8ab   :  { %2253 = vst [vmem:[%s3878_s8 + $0x28] sm:$0xff] %v2237_v39  }
 0x8ac   :  { %2252 = vst [vmem:[%s3878_s8 + $0x20] sm:$0xff] %v2232_v16  }
 0x97d   :  { %v2582_v14 = vpop.f32.mrb[60].mxu1 }
 0x97e   :  { %v1973_v29 = vpop.f32.mrb[61].mxu1  ;;  %v1982_v62 = vadd.f32 %v2582_v14, %v2168_v51 }
 0x97f   :  { %v2583_v25 = vpop.f32.mrb[62].mxu1  ;;  %v1974_v58 = vadd.f32 %v2168_v51, %v1973_v29 }
 0x980   :  { %v1985_v44 = vadd.f32 %v2583_v25, %v2168_v51  ;;  %v1976_v37 = vpop.f32.mrb[63].mxu1 }
 0x981   :  { %v1977_v20 = vadd.f32 %v2168_v51, %v1976_v37 }
 0x982   :  { %v2247_v22 = vpack.c.bf16 %v1985_v44, %v1982_v62 }
 0x983   :  { %v2242_v9 = vpack.c.bf16 %v1977_v20, %v1974_v58 }
 0x984   :  { %2255 = vst [vmem:[%s3878_s8 + $0x38] sm:$0xff] %v2247_v22  }
 0x985   :  { %2254 = vst [vmem:[%s3878_s8 + $0x30] sm:$0xff] %v2242_v9  }

</bundles_post_ra>
